<compile_context>
chip_gen: v7x
topology: tpu7x:2x2x1
jax: 0.10.0
libtpu: 0.0.40
codegen_flags: <defaults>
</compile_context>

<pallas_src>
import functools

import jax
import jax.numpy as jnp
from jax.experimental import pallas as pl
from jax.experimental.pallas import tpu as pltpu


# --------------------------------------------------------------------------
# Kernel A: power iteration -> spectrally normalized weight (runs once).
# --------------------------------------------------------------------------
def _power_iter_kernel(w_t_ref, u_ref, o_ref, *, niter):
    # w_t_ref: (WIDTH, Cout) f32  = W.view(Cout, -1).T
    # u_ref:   (1, Cout)     f32  power-iteration buffer u (as a row)
    # o_ref:   (WIDTH, Cout) f32  = W.T / sigma
    w_t = w_t_ref[...]
    u = u_ref[...]
    v = jnp.zeros((w_t.shape[0], 1), jnp.float32)
    for _ in range(niter):                              # niter is static & small
        # v = W^T u, l2-normalize (rsqrt -> EUP slot)
        v = jnp.sum(w_t * u, axis=1, keepdims=True)
        v = v * jax.lax.rsqrt(jnp.sum(v * v) + 1e-24)
        # u = W v, l2-normalize
        wv = jnp.sum(w_t * v, axis=0, keepdims=True)
        u = wv * jax.lax.rsqrt(jnp.sum(wv * wv) + 1e-24)
    wv = jnp.sum(w_t * v, axis=0, keepdims=True)        # (W v)^T
    sigma = jnp.sum(u * wv)                             # u^T W v
    o_ref[...] = w_t / sigma


# --------------------------------------------------------------------------
# Kernel B: direct conv, one batch image per grid step (no HBM im2col).
# --------------------------------------------------------------------------
def _conv_taps_kernel(x_ref, w_ref, b_ref, o_ref, *, H, W, KH, KW):
    # x_ref: (1, H+2ph, W+2pw, Cin) bf16   spatially padded NHWC image
    # w_ref: (KH*KW, Cin, COUT_PAD) bf16   spectrally normalized, tap-major
    # b_ref: (1, COUT_PAD)          f32
    # o_ref: (1, H*W, COUT_PAD)     f32    lane-dense output
    cin = x_ref.shape[-1]
    cout_pad = o_ref.shape[-1]
    hw = H * W
    # Start the f32 accumulator at the broadcast bias (hoisted out of the
    # tap loop; epilogue becomes a single store).
    acc = jnp.broadcast_to(b_ref[...], (hw, cout_pad)).astype(jnp.float32)
    for ki in range(KH):                               # static KHxKW unroll
        for kj in range(KW):
            xs = x_ref[0, ki:ki + H, kj:kj + W, :]     # (H, W, Cin) bf16
            xs = xs.reshape(hw, cin)                   # layout-trivial when W % 8 == 0
            acc = acc + jnp.dot(xs, w_ref[ki * KW + kj],
                                preferred_element_type=jnp.float32)
    o_ref[...] = acc[None]


# --------------------------------------------------------------------------
# Wrapper
# --------------------------------------------------------------------------
def spectral_norm_conv2d(x, w, b, u, niter=1):
    """Forward of SpectralNorm(nn.Conv2d(Cin, Cout, K, padding=K//2)).

    x: (N, Cin, H, W); w: (Cout, Cin, KH, KW); b: (Cout,); u: (Cout, 1).
    Returns (N, Cout, H, W) float32.
    """
    assert niter >= 1, "niter >= 1 required (matches module default)"
    N, Cin, H, W = x.shape
    Cout, _, KH, KW = w.shape
    ph, pw = KH // 2, KW // 2
    HW = H * W
    WIDTH = Cin * KH * KW
    COUT_PAD = ((Cout + 127) // 128) * 128     # lane-dense output / MXU N dim

    # ---- Kernel A: spectral normalization of the weight (tiny, one shot) ----
    w_t = w.reshape(Cout, WIDTH).T.astype(jnp.float32)        # (WIDTH, Cout)
    u_row = u.reshape(1, Cout).astype(jnp.float32)
    w_sn_t = pl.pallas_call(
        functools.partial(_power_iter_kernel, niter=niter),
        out_shape=jax.ShapeDtypeStruct((WIDTH, Cout), jnp.float32),
        in_specs=[pl.BlockSpec(memory_space=pltpu.MemorySpace.VMEM)] * 2,
        out_specs=pl.BlockSpec(memory_space=pltpu.MemorySpace.VMEM),
    )(w_t, u_row)

    # Tap-major, lane-padded bf16 copy of W/sigma for the MXU (tiny XLA glue).
    w_taps = w_sn_t.reshape(Cin, KH * KW, Cout).transpose(1, 0, 2)  # (taps, Cin, Cout)
    w_taps = jnp.pad(w_taps, ((0, 0), (0, 0), (0, COUT_PAD - Cout)))
    w_taps = w_taps.astype(jnp.bfloat16)
    b_row = jnp.pad(b.astype(jnp.float32).reshape(1, Cout),
                    ((0, 0), (0, COUT_PAD - Cout)))

    # ---- Kernel B: the conv, gridded over batch ----
    # NCHW -> spatially padded NHWC bf16 (single fused XLA pass) so the
    # contraction axis (Cin) sits on lanes and in-kernel im2col is free.
    x_nhwc = jnp.pad(x.astype(jnp.bfloat16).transpose(0, 2, 3, 1),
                     ((0, 0), (ph, ph), (pw, pw), (0, 0)))
    Hp, Wp = H + 2 * ph, W + 2 * pw

    out_flat = pl.pallas_call(
        functools.partial(_conv_taps_kernel, H=H, W=W, KH=KH, KW=KW),
        out_shape=jax.ShapeDtypeStruct((N, HW, COUT_PAD), jnp.float32),
        grid_spec=pltpu.PrefetchScalarGridSpec(
            num_scalar_prefetch=0,
            grid=(N,),
            in_specs=[
                pl.BlockSpec((1, Hp, Wp, Cin), lambda n: (n, 0, 0, 0)),
                # Constant block index -> weight/bias DMA'd once, stay resident.
                pl.BlockSpec((KH * KW, Cin, COUT_PAD), lambda n: (0, 0, 0)),
                pl.BlockSpec((1, COUT_PAD), lambda n: (0, 0)),
            ],
            out_specs=pl.BlockSpec((1, HW, COUT_PAD), lambda n: (n, 0, 0)),
        ),
        compiler_params=pltpu.CompilerParams(
            dimension_semantics=("parallel",),       # shard batch across TCs (v7x)
            vmem_limit_bytes=32 * 1024 * 1024,       # tiles << limit on v5e/v6e/v7x
        ),
    )(x_nhwc, w_taps, b_row)

    # Slice off lane padding, back to NCHW to match the PyTorch module.
    return out_flat[:, :, :Cout].reshape(N, H, W, Cout).transpose(0, 3, 1, 2)


# --------------------------------------------------------------------------
# Pure-JAX reference mirroring the PyTorch module
# --------------------------------------------------------------------------
def reference_forward(x, w, b, u, niter=1):
    h = w.shape[0]
    wm = w.reshape(h, -1).astype(jnp.float32)
    uu = u.astype(jnp.float32)
    v = None
    for _ in range(niter):
        v = wm.T @ uu
        v = v / (jnp.linalg.norm(v) + 1e-12)
        uu = wm @ v
        uu = uu / (jnp.linalg.norm(uu) + 1e-12)
    sigma = (uu.T @ wm @ v)[0, 0]
    w_sn = w.astype(jnp.float32) / sigma
    out = jax.lax.conv_general_dilated(
        x.astype(jnp.float32), w_sn, (1, 1), "SAME",
        dimension_numbers=("NCHW", "OIHW", "NCHW"),
        precision=jax.lax.Precision.HIGHEST,
    )
    return out + b.reshape(1, -1, 1, 1)


if __name__ == "__main__":
    key = jax.random.PRNGKey(0)
    k_x, k_w, k_b, k_u = jax.random.split(key, 4)

    # SpectralNorm(nn.Conv2d(4, 8, kernel_size=3, padding=1), niter=1)
    N, Cin, H, W = 2, 4, 16, 16
    Cout, KH, KW = 8, 3, 3
    niter = 1

    x = jax.random.normal(k_x, (N, Cin, H, W), dtype=jnp.float32)
    w = jax.random.normal(k_w, (Cout, Cin, KH, KW), dtype=jnp.float32) * 0.1
    b = jax.random.normal(k_b, (Cout,), dtype=jnp.float32) * 0.1
    u = jax.random.normal(k_u, (Cout, 1), dtype=jnp.float32)  # module.u buffer
    # (module.v buffer is overwritten before first use; it never affects the output.)

    fwd = jax.jit(functools.partial(spectral_norm_conv2d, niter=niter))
    out = jax.block_until_ready(fwd(x, w, b, u))

    ref = jax.block_until_ready(reference_forward(x, w, b, u, niter=niter))
    assert out.shape == (N, Cout, H, W)
    max_err = float(jnp.max(jnp.abs(out - ref)))
    assert jnp.allclose(out, ref, rtol=2e-2, atol=2e-2), f"max abs err = {max_err}"

    print("KERNEL_OK")
</pallas_src>

<mosaic_0001>
module attributes {stable_mosaic.version = 11 : i64} {
  func.func @_power_iter_kernel(%arg0: memref<36x8xf32, #tpu.memory_space<vmem>>, %arg1: memref<1x8xf32, #tpu.memory_space<vmem>>, %arg2: memref<36x8xf32, #tpu.memory_space<vmem>>) attributes {dimension_semantics = [], scalar_prefetch = 0 : i64, scratch_operands = 0 : i64, tpu.core_type = #tpu.core_type<tc>} {
    %c0 = arith.constant 0 : index
    %c0_0 = arith.constant 0 : index
    %0 = vector.load %arg0[%c0, %c0_0] : memref<36x8xf32, #tpu.memory_space<vmem>>, vector<36x8xf32>
    %c0_1 = arith.constant 0 : index
    %c0_2 = arith.constant 0 : index
    %1 = vector.load %arg1[%c0_1, %c0_2] : memref<1x8xf32, #tpu.memory_space<vmem>>, vector<1x8xf32>
    %2 = vector.broadcast %1 : vector<1x8xf32> to vector<36x8xf32>
    %3 = arith.mulf %0, %2 : vector<36x8xf32>
    %cst = arith.constant dense<0.000000e+00> : vector<36xf32>
    %4 = vector.multi_reduction <add>, %3, %cst [1] : vector<36x8xf32> to vector<36xf32>
    %5 = vector.shape_cast %4 : vector<36xf32> to vector<36x1xf32>
    %6 = arith.mulf %5, %5 : vector<36x1xf32>
    %7 = vector.shape_cast %6 : vector<36x1xf32> to vector<1x36x1xf32>
    %cst_3 = arith.constant dense<0.000000e+00> : vector<1xf32>
    %8 = vector.multi_reduction <add>, %7, %cst_3 [1, 2] : vector<1x36x1xf32> to vector<1xf32>
    %9 = vector.shape_cast %8 : vector<1xf32> to vector<1x1x1xf32>
    %10 = vector.extract %9[0, 0, 0] : f32 from vector<1x1x1xf32>
    %cst_4 = arith.constant 1.000000e-24 : f32
    %11 = arith.addf %10, %cst_4 : f32
    %12 = math.rsqrt %11 : f32
    %13 = vector.broadcast %12 : f32 to vector<36x1xf32>
    %14 = arith.mulf %5, %13 : vector<36x1xf32>
    %15 = vector.broadcast %14 : vector<36x1xf32> to vector<36x8xf32>
    %16 = arith.mulf %0, %15 : vector<36x8xf32>
    %cst_5 = arith.constant dense<0.000000e+00> : vector<8xf32>
    %17 = vector.multi_reduction <add>, %16, %cst_5 [0] : vector<36x8xf32> to vector<8xf32>
    %18 = vector.shape_cast %17 : vector<8xf32> to vector<1x8xf32>
    %19 = arith.mulf %18, %18 : vector<1x8xf32>
    %20 = vector.shape_cast %19 : vector<1x8xf32> to vector<1x1x8xf32>
    %cst_6 = arith.constant dense<0.000000e+00> : vector<1xf32>
    %21 = vector.multi_reduction <add>, %20, %cst_6 [1, 2] : vector<1x1x8xf32> to vector<1xf32>
    %22 = vector.shape_cast %21 : vector<1xf32> to vector<1x1x1xf32>
    %23 = vector.extract %22[0, 0, 0] : f32 from vector<1x1x1xf32>
    %cst_7 = arith.constant 1.000000e-24 : f32
    %24 = arith.addf %23, %cst_7 : f32
    %25 = math.rsqrt %24 : f32
    %26 = vector.broadcast %25 : f32 to vector<1x8xf32>
    %27 = arith.mulf %18, %26 : vector<1x8xf32>
    %28 = vector.broadcast %14 : vector<36x1xf32> to vector<36x8xf32>
    %29 = arith.mulf %0, %28 : vector<36x8xf32>
    %cst_8 = arith.constant dense<0.000000e+00> : vector<8xf32>
    %30 = vector.multi_reduction <add>, %29, %cst_8 [0] : vector<36x8xf32> to vector<8xf32>
    %31 = vector.shape_cast %30 : vector<8xf32> to vector<1x8xf32>
    %32 = arith.mulf %27, %31 : vector<1x8xf32>
    %33 = vector.shape_cast %32 : vector<1x8xf32> to vector<1x1x8xf32>
    %cst_9 = arith.constant dense<0.000000e+00> : vector<1xf32>
    %34 = vector.multi_reduction <add>, %33, %cst_9 [1, 2] : vector<1x1x8xf32> to vector<1xf32>
    %35 = vector.shape_cast %34 : vector<1xf32> to vector<1x1x1xf32>
    %36 = vector.extract %35[0, 0, 0] : f32 from vector<1x1x1xf32>
    %37 = vector.broadcast %36 : f32 to vector<36x8xf32>
    %38 = arith.divf %0, %37 : vector<36x8xf32>
    %c0_10 = arith.constant 0 : index
    %c0_11 = arith.constant 0 : index
    %39 = vector.load %arg2[%c0_10, %c0_11] : memref<36x8xf32, #tpu.memory_space<vmem>>, vector<36x8xf32>
    tpu.vector_store %arg2[%c0_10, %c0_11], %38 {strides = array<i32>} : memref<36x8xf32, #tpu.memory_space<vmem>>, vector<36x8xf32>,
    return
  }
}

module attributes {stable_mosaic.version = 11 : i64} {
  func.func @_conv_taps_kernel(%arg0: i32, %arg1: memref<1x18x18x4xbf16, #tpu.memory_space<vmem>>, %arg2: memref<9x4x128xbf16, #tpu.memory_space<vmem>>, %arg3: memref<1x128xf32, #tpu.memory_space<vmem>>, %arg4: memref<1x256x128xf32, #tpu.memory_space<vmem>>) attributes {dimension_semantics = [#tpu.dimension_semantics<parallel>], iteration_bounds = array<i64: 2>, scalar_prefetch = 0 : i64, scratch_operands = 0 : i64, tpu.core_type = #tpu.core_type<tc>, window_params = [{transform_indices = @transform_0, window_bounds = array<i64: 1, 18, 18, 4>}, {pipeline_mode = #tpu.pipeline_mode<synchronous>, transform_indices = @transform_1, window_bounds = array<i64: 9, 4, 128>}, {pipeline_mode = #tpu.pipeline_mode<synchronous>, transform_indices = @transform_2, window_bounds = array<i64: 1, 128>}, {transform_indices = @transform_3, window_bounds = array<i64: 1, 256, 128>}]} {
    %c0 = arith.constant 0 : index
    %c0_0 = arith.constant 0 : index
    %0 = vector.load %arg3[%c0, %c0_0] : memref<1x128xf32, #tpu.memory_space<vmem>>, vector<1x128xf32>
    %1 = vector.shape_cast %0 : vector<1x128xf32> to vector<1x128xf32>
    %2 = vector.broadcast %1 : vector<1x128xf32> to vector<256x128xf32>
    %c0_1 = arith.constant 0 : index
    %c0_2 = arith.constant 0 : index
    %c0_3 = arith.constant 0 : index
    %c0_4 = arith.constant 0 : index
    %3 = vector.load %arg1[%c0_1, %c0_2, %c0_3, %c0_4] : memref<1x18x18x4xbf16, #tpu.memory_space<vmem>>, vector<1x16x16x4xbf16>
    %4 = vector.shape_cast %3 : vector<1x16x16x4xbf16> to vector<16x16x4xbf16>
    %5 = vector.shape_cast %4 : vector<16x16x4xbf16> to vector<256x4xbf16>
    %c0_5 = arith.constant 0 : index
    %c0_6 = arith.constant 0 : index
    %c0_7 = arith.constant 0 : index
    %6 = vector.load %arg2[%c0_5, %c0_6, %c0_7] : memref<9x4x128xbf16, #tpu.memory_space<vmem>>, vector<1x4x128xbf16>
    %7 = vector.shape_cast %6 : vector<1x4x128xbf16> to vector<4x128xbf16>
    %cst = arith.constant dense<0.000000e+00> : vector<256x128xf32>
    %8 = tpu.matmul %5, %7, %cst {dimension_numbers = #tpu.dot_dimension_numbers<[1], [0], [0], [1], [0, 0, 1, 1], [], []>} : vector<256x4xbf16>, vector<4x128xbf16>, vector<256x128xf32> -> vector<256x128xf32>
    %9 = arith.addf %2, %8 : vector<256x128xf32>
    %c0_8 = arith.constant 0 : index
    %c0_9 = arith.constant 0 : index
    %c1 = arith.constant 1 : index
    %c0_10 = arith.constant 0 : index
    %10 = vector.load %arg1[%c0_8, %c0_9, %c1, %c0_10] : memref<1x18x18x4xbf16, #tpu.memory_space<vmem>>, vector<1x16x16x4xbf16>
    %11 = vector.shape_cast %10 : vector<1x16x16x4xbf16> to vector<16x16x4xbf16>
    %12 = vector.shape_cast %11 : vector<16x16x4xbf16> to vector<256x4xbf16>
    %c1_11 = arith.constant 1 : index
    %c0_12 = arith.constant 0 : index
    %c0_13 = arith.constant 0 : index
    %13 = vector.load %arg2[%c1_11, %c0_12, %c0_13] : memref<9x4x128xbf16, #tpu.memory_space<vmem>>, vector<1x4x128xbf16>
    %14 = vector.shape_cast %13 : vector<1x4x128xbf16> to vector<4x128xbf16>
    %cst_14 = arith.constant dense<0.000000e+00> : vector<256x128xf32>
    %15 = tpu.matmul %12, %14, %cst_14 {dimension_numbers = #tpu.dot_dimension_numbers<[1], [0], [0], [1], [0, 0, 1, 1], [], []>} : vector<256x4xbf16>, vector<4x128xbf16>, vector<256x128xf32> -> vector<256x128xf32>
    %16 = arith.addf %9, %15 : vector<256x128xf32>
    %c0_15 = arith.constant 0 : index
    %c0_16 = arith.constant 0 : index
    %c2 = arith.constant 2 : index
    %c0_17 = arith.constant 0 : index
    %17 = vector.load %arg1[%c0_15, %c0_16, %c2, %c0_17] : memref<1x18x18x4xbf16, #tpu.memory_space<vmem>>, vector<1x16x16x4xbf16>
    %18 = vector.shape_cast %17 : vector<1x16x16x4xbf16> to vector<16x16x4xbf16>
    %19 = vector.shape_cast %18 : vector<16x16x4xbf16> to vector<256x4xbf16>
    %c2_18 = arith.constant 2 : index
    %c0_19 = arith.constant 0 : index
    %c0_20 = arith.constant 0 : index
    %20 = vector.load %arg2[%c2_18, %c0_19, %c0_20] : memref<9x4x128xbf16, #tpu.memory_space<vmem>>, vector<1x4x128xbf16>
    %21 = vector.shape_cast %20 : vector<1x4x128xbf16> to vector<4x128xbf16>
    %cst_21 = arith.constant dense<0.000000e+00> : vector<256x128xf32>
    %22 = tpu.matmul %19, %21, %cst_21 {dimension_numbers = #tpu.dot_dimension_numbers<[1], [0], [0], [1], [0, 0, 1, 1], [], []>} : vector<256x4xbf16>, vector<4x128xbf16>, vector<256x128xf32> -> vector<256x128xf32>
    %23 = arith.addf %16, %22 : vector<256x128xf32>
    %c0_22 = arith.constant 0 : index
    %c1_23 = arith.constant 1 : index
    %c0_24 = arith.constant 0 : index
    %c0_25 = arith.constant 0 : index
    %24 = vector.load %arg1[%c0_22, %c1_23, %c0_24, %c0_25] : memref<1x18x18x4xbf16, #tpu.memory_space<vmem>>, vector<1x16x16x4xbf16>
    %25 = vector.shape_cast %24 : vector<1x16x16x4xbf16> to vector<16x16x4xbf16>
    %26 = vector.shape_cast %25 : vector<16x16x4xbf16> to vector<256x4xbf16>
    %c3 = arith.constant 3 : index
    %c0_26 = arith.constant 0 : index
    %c0_27 = arith.constant 0 : index
    %27 = vector.load %arg2[%c3, %c0_26, %c0_27] : memref<9x4x128xbf16, #tpu.memory_space<vmem>>, vector<1x4x128xbf16>
    %28 = vector.shape_cast %27 : vector<1x4x128xbf16> to vector<4x128xbf16>
    %cst_28 = arith.constant dense<0.000000e+00> : vector<256x128xf32>
    %29 = tpu.matmul %26, %28, %cst_28 {dimension_numbers = #tpu.dot_dimension_numbers<[1], [0], [0], [1], [0, 0, 1, 1], [], []>} : vector<256x4xbf16>, vector<4x128xbf16>, vector<256x128xf32> -> vector<256x128xf32>
    %30 = arith.addf %23, %29 : vector<256x128xf32>
    %c0_29 = arith.constant 0 : index
    %c1_30 = arith.constant 1 : index
    %c1_31 = arith.constant 1 : index
    %c0_32 = arith.constant 0 : index
    %31 = vector.load %arg1[%c0_29, %c1_30, %c1_31, %c0_32] : memref<1x18x18x4xbf16, #tpu.memory_space<vmem>>, vector<1x16x16x4xbf16>
    %32 = vector.shape_cast %31 : vector<1x16x16x4xbf16> to vector<16x16x4xbf16>
    %33 = vector.shape_cast %32 : vector<16x16x4xbf16> to vector<256x4xbf16>
    %c4 = arith.constant 4 : index
    %c0_33 = arith.constant 0 : index
    %c0_34 = arith.constant 0 : index
    %34 = vector.load %arg2[%c4, %c0_33, %c0_34] : memref<9x4x128xbf16, #tpu.memory_space<vmem>>, vector<1x4x128xbf16>
    %35 = vector.shape_cast %34 : vector<1x4x128xbf16> to vector<4x128xbf16>
    %cst_35 = arith.constant dense<0.000000e+00> : vector<256x128xf32>
    %36 = tpu.matmul %33, %35, %cst_35 {dimension_numbers = #tpu.dot_dimension_numbers<[1], [0], [0], [1], [0, 0, 1, 1], [], []>} : vector<256x4xbf16>, vector<4x128xbf16>, vector<256x128xf32> -> vector<256x128xf32>
    %37 = arith.addf %30, %36 : vector<256x128xf32>
    %c0_36 = arith.constant 0 : index
    %c1_37 = arith.constant 1 : index
    %c2_38 = arith.constant 2 : index
    %c0_39 = arith.constant 0 : index
    %38 = vector.load %arg1[%c0_36, %c1_37, %c2_38, %c0_39] : memref<1x18x18x4xbf16, #tpu.memory_space<vmem>>, vector<1x16x16x4xbf16>
    %39 = vector.shape_cast %38 : vector<1x16x16x4xbf16> to vector<16x16x4xbf16>
    %40 = vector.shape_cast %39 : vector<16x16x4xbf16> to vector<256x4xbf16>
    %c5 = arith.constant 5 : index
    %c0_40 = arith.constant 0 : index
    %c0_41 = arith.constant 0 : index
    %41 = vector.load %arg2[%c5, %c0_40, %c0_41] : memref<9x4x128xbf16, #tpu.memory_space<vmem>>, vector<1x4x128xbf16>
    %42 = vector.shape_cast %41 : vector<1x4x128xbf16> to vector<4x128xbf16>
    %cst_42 = arith.constant dense<0.000000e+00> : vector<256x128xf32>
    %43 = tpu.matmul %40, %42, %cst_42 {dimension_numbers = #tpu.dot_dimension_numbers<[1], [0], [0], [1], [0, 0, 1, 1], [], []>} : vector<256x4xbf16>, vector<4x128xbf16>, vector<256x128xf32> -> vector<256x128xf32>
    %44 = arith.addf %37, %43 : vector<256x128xf32>
    %c0_43 = arith.constant 0 : index
    %c2_44 = arith.constant 2 : index
    %c0_45 = arith.constant 0 : index
    %c0_46 = arith.constant 0 : index
    %45 = vector.load %arg1[%c0_43, %c2_44, %c0_45, %c0_46] : memref<1x18x18x4xbf16, #tpu.memory_space<vmem>>, vector<1x16x16x4xbf16>
    %46 = vector.shape_cast %45 : vector<1x16x16x4xbf16> to vector<16x16x4xbf16>
    %47 = vector.shape_cast %46 : vector<16x16x4xbf16> to vector<256x4xbf16>
    %c6 = arith.constant 6 : index
    %c0_47 = arith.constant 0 : index
    %c0_48 = arith.constant 0 : index
    %48 = vector.load %arg2[%c6, %c0_47, %c0_48] : memref<9x4x128xbf16, #tpu.memory_space<vmem>>, vector<1x4x128xbf16>
    %49 = vector.shape_cast %48 : vector<1x4x128xbf16> to vector<4x128xbf16>
    %cst_49 = arith.constant dense<0.000000e+00> : vector<256x128xf32>
    %50 = tpu.matmul %47, %49, %cst_49 {dimension_numbers = #tpu.dot_dimension_numbers<[1], [0], [0], [1], [0, 0, 1, 1], [], []>} : vector<256x4xbf16>, vector<4x128xbf16>, vector<256x128xf32> -> vector<256x128xf32>
    %51 = arith.addf %44, %50 : vector<256x128xf32>
    %c0_50 = arith.constant 0 : index
    %c2_51 = arith.constant 2 : index
    %c1_52 = arith.constant 1 : index
    %c0_53 = arith.constant 0 : index
    %52 = vector.load %arg1[%c0_50, %c2_51, %c1_52, %c0_53] : memref<1x18x18x4xbf16, #tpu.memory_space<vmem>>, vector<1x16x16x4xbf16>
    %53 = vector.shape_cast %52 : vector<1x16x16x4xbf16> to vector<16x16x4xbf16>
    %54 = vector.shape_cast %53 : vector<16x16x4xbf16> to vector<256x4xbf16>
    %c7 = arith.constant 7 : index
    %c0_54 = arith.constant 0 : index
    %c0_55 = arith.constant 0 : index
    %55 = vector.load %arg2[%c7, %c0_54, %c0_55] : memref<9x4x128xbf16, #tpu.memory_space<vmem>>, vector<1x4x128xbf16>
    %56 = vector.shape_cast %55 : vector<1x4x128xbf16> to vector<4x128xbf16>
    %cst_56 = arith.constant dense<0.000000e+00> : vector<256x128xf32>
    %57 = tpu.matmul %54, %56, %cst_56 {dimension_numbers = #tpu.dot_dimension_numbers<[1], [0], [0], [1], [0, 0, 1, 1], [], []>} : vector<256x4xbf16>, vector<4x128xbf16>, vector<256x128xf32> -> vector<256x128xf32>
    %58 = arith.addf %51, %57 : vector<256x128xf32>
    %c0_57 = arith.constant 0 : index
    %c2_58 = arith.constant 2 : index
    %c2_59 = arith.constant 2 : index
    %c0_60 = arith.constant 0 : index
    %59 = vector.load %arg1[%c0_57, %c2_58, %c2_59, %c0_60] : memref<1x18x18x4xbf16, #tpu.memory_space<vmem>>, vector<1x16x16x4xbf16>
    %60 = vector.shape_cast %59 : vector<1x16x16x4xbf16> to vector<16x16x4xbf16>
    %61 = vector.shape_cast %60 : vector<16x16x4xbf16> to vector<256x4xbf16>
    %c8 = arith.constant 8 : index
    %c0_61 = arith.constant 0 : index
    %c0_62 = arith.constant 0 : index
    %62 = vector.load %arg2[%c8, %c0_61, %c0_62] : memref<9x4x128xbf16, #tpu.memory_space<vmem>>, vector<1x4x128xbf16>
    %63 = vector.shape_cast %62 : vector<1x4x128xbf16> to vector<4x128xbf16>
    %cst_63 = arith.constant dense<0.000000e+00> : vector<256x128xf32>
    %64 = tpu.matmul %61, %63, %cst_63 {dimension_numbers = #tpu.dot_dimension_numbers<[1], [0], [0], [1], [0, 0, 1, 1], [], []>} : vector<256x4xbf16>, vector<4x128xbf16>, vector<256x128xf32> -> vector<256x128xf32>
    %65 = arith.addf %58, %64 : vector<256x128xf32>
    %66 = vector.shape_cast %65 : vector<256x128xf32> to vector<1x256x128xf32>
    %c0_64 = arith.constant 0 : index
    %c0_65 = arith.constant 0 : index
    %c0_66 = arith.constant 0 : index
    %67 = vector.load %arg4[%c0_64, %c0_65, %c0_66] : memref<1x256x128xf32, #tpu.memory_space<vmem>>, vector<1x256x128xf32>
    tpu.vector_store %arg4[%c0_64, %c0_65, %c0_66], %66 {strides = array<i32>} : memref<1x256x128xf32, #tpu.memory_space<vmem>>, vector<1x256x128xf32>,
    return
  }
  func.func @transform_0(%arg0: i32) -> (i32, i32, i32, i32) {
    %c0_i32 = arith.constant 0 : i32
    %c0_i32_0 = arith.constant 0 : i32
    %c0_i32_1 = arith.constant 0 : i32
    %c0_i32_2 = arith.constant 0 : i32
    return %arg0, %c0_i32, %c0_i32_0, %c0_i32_1 : i32, i32, i32, i32
  }
  func.func @transform_1(%arg0: i32) -> (i32, i32, i32) {
    %c0_i32 = arith.constant 0 : i32
    %c0_i32_0 = arith.constant 0 : i32
    %c0_i32_1 = arith.constant 0 : i32
    %c0_i32_2 = arith.constant 0 : i32
    return %c0_i32, %c0_i32_0, %c0_i32_1 : i32, i32, i32
  }
  func.func @transform_2(%arg0: i32) -> (i32, i32) {
    %c0_i32 = arith.constant 0 : i32
    %c0_i32_0 = arith.constant 0 : i32
    %c0_i32_1 = arith.constant 0 : i32
    return %c0_i32, %c0_i32_0 : i32, i32
  }
  func.func @transform_3(%arg0: i32) -> (i32, i32, i32) {
    %c0_i32 = arith.constant 0 : i32
    %c0_i32_0 = arith.constant 0 : i32
    %c0_i32_1 = arith.constant 0 : i32
    return %arg0, %c0_i32, %c0_i32_0 : i32, i32, i32
  }
}

</mosaic_0001>

<bundles_post_ra>
// kernel: spectral_norm_conv2d.2
= control target key start
LH: loop header
LB: loop body
LE: loop exit
PB: predicated region body
PF: predicated region fallthrough
CT: control target
= control target key end

     0   :  { %vm28_vm0 = vcmask 64512   ;;  %vm41_vm1 = vcmask 60416   ;;  %vm50_vm2 = vcmask 7168   ;;  %vm58_vm3 = vcmask 3072   ;;  %s252_s0 = inlined_call_operand.vmem [shape: f32[36,8], index: 0, kind: input, shape index: {}]   ;;  %s253_s1 = inlined_call_operand.vmem [shape: f32[1,8], index: 1, kind: input, shape index: {}]   ;;  %s254_s2 = inlined_call_operand.vmem [shape: f32[36,8], index: 2, kind: output, shape index: {}]  }
   0x1   :  { %v180_v0 = vld [vmem:[%s252_s0] sm:$0xff]  ;;  %v188_v2 = vld [vmem:[%s252_s0 + $0x10] sm:$0xff]  ;;  %v195_v5 = vld [vmem:[%s252_s0 + $0x8] sm:$0xff]  ;;  %vm101_vm4 = vcmask 57344  }
   0x2   :  { %v145_v1 = vld [vmem:[%s253_s1] ss:$0 sm:$0xff]  ;;  %v200_v6 = vld [vmem:[%s252_s0 + $0x18] sm:$0xff] }
   0x3   :  { %v23_v3 = vmul.f32 %v145_v1, %v180_v0  ;;  %v25_v4 = vmul.f32 %v145_v1, %v188_v2  ;;  %v24_v7 = vmul.f32 %v145_v1, %v195_v5  ;;  %v26_v8 = vmul.f32 %v145_v1, %v200_v6  ;;  %v207_v9 = vld [vmem:[%s252_s0 + $0x20] sm:$0xf] }
   0x4   :  { %v27_v14 = vmul.f32 %v145_v1, %v207_v9 }
   0x5   :  { %v29_v10 = vsel %vm28_vm0, %v23_v3, 0.0  ;;  %v35_v11 = vsel %vm28_vm0, %v25_v4, 0.0  ;;  %v32_v12 = vsel %vm28_vm0, %v24_v7, 0.0  ;;  %v38_v13 = vsel %vm28_vm0, %v26_v8, 0.0 }
   0x6   :  { %30 = vadd.xlane.f32.xlu0 %v29_v10  ;;  %36 = vadd.xlane.f32.xlu1 %v35_v11  ;;  %v42_v15 = vsel %vm41_vm1, %v27_v14, 0.0 }
   0xa   :  { %33 = vadd.xlane.f32.xlu0 %v32_v12  ;;  %39 = vadd.xlane.f32.xlu1 %v38_v13 }
   0xe   :  { %43 = vadd.xlane.f32.xlu0 %v42_v15 }
  0x93   :  { %v31_v16 = vpop.xlane.xlu0 %30  ;;  %v37_v17 = vpop.xlane.xlu1 %36 }
  0x94   :  { %v45_v18 = vmul.f32 %v31_v16, %v31_v16  ;;  %v47_v21 = vmul.f32 %v37_v17, %v37_v17 }
  0x96   :  { %v51_v24 = vsel %vm50_vm2, %v45_v18, 0.0  ;;  %v54_v28 = vsel %vm50_vm2, %v47_v21, 0.0 }
  0x97   :  { %v34_v19 = vpop.xlane.xlu0 %33  ;;  %v40_v20 = vpop.xlane.xlu1 %39 }
  0x98   :  { %v46_v22 = vmul.f32 %v34_v19, %v34_v19  ;;  %v48_v23 = vmul.f32 %v40_v20, %v40_v20 }
  0x9a   :  { %v52_v25 = vsel %vm50_vm2, %v46_v22, 0.0  ;;  %v56_v29 = vsel %vm50_vm2, %v48_v23, 0.0 }
  0x9b   :  { %v53_v26 = vadd.f32 %v52_v25, %v51_v24  ;;  %v44_v27 = vpop.xlane.xlu0 %43 }
  0x9c   :  { %v49_v30 = vmul.f32 %v44_v27, %v44_v27 }
  0x9d   :  { %v55_v31 = vadd.f32 %v54_v28, %v53_v26 }
  0x9e   :  { %v59_v32 = vsel %vm58_vm3, %v49_v30, 0.0 }
  0x9f   :  { %v57_v33 = vadd.f32 %v56_v29, %v55_v31 }
  0xa1   :  { %v60_v34 = vadd.f32 %v59_v32, %v57_v33 }
  0xa3   :  { %61 = vadd.xlane.f32.xlu1 %v60_v34 }
 0x130   :  { %v62_v35 = vpop.xlane.xlu1 %61 }
 0x131   :  { %v63_v36 = vrot.slane %v62_v35, 4 }
 0x133   :  { %v64_v37 = vadd.f32 %v63_v36, %v62_v35 }
 0x135   :  { %v65_v38 = vrot.slane %v64_v37, 2 }
 0x137   :  { %v66_v39 = vadd.f32 %v65_v38, %v64_v37 }
 0x139   :  { %v67_v40 = vrot.slane %v66_v39, 1 }
 0x13b   :  { %v68_v41 = vadd.f32 %v67_v40, %v66_v39 }
 0x13d   :  { %146 = vpush %v68_v41 }
 0x16e   :  { %s147_s0 = spop %146 }
 0x16f   :  { %s70_s20 = sadd.f32 1e-24, %s147_s0 }
 0x171   :  { %v71_v42 = vstv %s70_s20 }
 0x172   :  { %156 = vrsqrt.f32 %v71_v42 }
 0x17c   :  { %v157_v43 = vpop.eup %156 }
 0x17d   :  { %148 = vpush %v157_v43 }
 0x1ae   :  { %s149_s21 = spop %148 }
 0x1af   :  { %v74_v44 = vstv %s149_s21 }
 0x1b0   :  { %v75_v45 = vmul.f32 %v74_v44, %v31_v16  ;;  %v76_v46 = vmul.f32 %v74_v44, %v34_v19  ;;  %v77_v47 = vmul.f32 %v74_v44, %v37_v17  ;;  %v78_v48 = vmul.f32 %v74_v44, %v40_v20 }
 0x1b1   :  { %v79_v49 = vmul.f32 %v74_v44, %v44_v27 }
 0x1b2   :  { %v80_v50 = vmul.f32 %v75_v45, %v180_v0  ;;  %v81_v51 = vmul.f32 %v76_v46, %v195_v5  ;;  %v82_v52 = vmul.f32 %v77_v47, %v188_v2  ;;  %v83_v53 = vmul.f32 %v78_v48, %v200_v6 }
 0x1b3   :  { %v84_v57 = vmul.f32 %v79_v49, %v207_v9 }
 0x1b4   :  { %v85_v54 = vsel %vm28_vm0, %v80_v50, 0.0  ;;  %v86_v55 = vsel %vm28_vm0, %v81_v51, 0.0  ;;  %v88_v58 = vsel %vm28_vm0, %v82_v52, 0.0  ;;  %v90_v60 = vsel %vm28_vm0, %v83_v53, 0.0 }
 0x1b5   :  { %v87_v56 = vadd.f32 %v86_v55, %v85_v54  ;;  %v92_v62 = vsel %vm41_vm1, %v84_v57, 0.0 }
 0x1b7   :  { %v89_v59 = vadd.f32 %v88_v58, %v87_v56 }
 0x1b9   :  { %v91_v61 = vadd.f32 %v90_v60, %v89_v59 }
 0x1bb   :  { %v93_v63 = vadd.f32 %v92_v62, %v91_v61 }
 0x1bd   :  { %v94_v1 = vrot.slane %v93_v63, 4 }
 0x1bf   :  { %v95_v3 = vadd.f32 %v94_v1, %v93_v63 }
 0x1c1   :  { %v96_v4 = vrot.slane %v95_v3, 2 }
 0x1c3   :  { %v97_v7 = vadd.f32 %v96_v4, %v95_v3 }
 0x1c5   :  { %v98_v8 = vrot.slane %v97_v7, 1 }
 0x1c7   :  { %v99_v10 = vadd.f32 %v98_v8, %v97_v7 }
 0x1c9   :  { %v100_v11 = vmul.f32 %v99_v10, %v99_v10 }
 0x1cb   :  { %v102_v12 = vsel %vm101_vm4, %v100_v11, 0.0 }
 0x1cc   :  { %103 = vadd.xlane.f32.xlu0 %v102_v12 }
 0x259   :  { %v104_v13 = vpop.xlane.xlu0 %103 }
 0x25a   :  { %v105_v14 = vrot.slane %v104_v13, 4 }
 0x25c   :  { %v106_v15 = vadd.f32 %v105_v14, %v104_v13 }
 0x25e   :  { %v107_v16 = vrot.slane %v106_v15, 2 }
 0x260   :  { %v108_v17 = vadd.f32 %v107_v16, %v106_v15 }
 0x262   :  { %v109_v18 = vrot.slane %v108_v17, 1 }
 0x264   :  { %v110_v19 = vadd.f32 %v109_v18, %v108_v17 }
 0x266   :  { %150 = vpush %v110_v19 }
 0x297   :  { %s151_s22 = spop %150 }
 0x298   :  { %s112_s23 = sadd.f32 1e-24, %s151_s22 }
 0x29a   :  { %v113_v20 = vstv %s112_s23 }
 0x29b   :  { %158 = vrsqrt.f32 %v113_v20 }
 0x2a5   :  { %v159_v21 = vpop.eup %158 }
 0x2a6   :  { %152 = vpush %v159_v21 }
 0x2d7   :  { %s153_s24 = spop %152 }
 0x2d8   :  { %v116_v22 = vstv %s153_s24 }
 0x2d9   :  { %v117_v23 = vmul.f32 %v116_v22, %v99_v10 }
 0x2db   :  { %v118_v24 = vmul.f32 %v117_v23, %v99_v10 }
 0x2dd   :  { %v119_v25 = vsel %vm101_vm4, %v118_v24, 0.0 }
 0x2de   :  { %120 = vadd.xlane.f32.xlu1 %v119_v25 }
 0x36b   :  { %v121_v26 = vpop.xlane.xlu1 %120 }
 0x36c   :  { %v122_v27 = vrot.slane %v121_v26, 4 }
 0x36e   :  { %v123_v28 = vadd.f32 %v122_v27, %v121_v26 }
 0x370   :  { %v124_v29 = vrot.slane %v123_v28, 2 }
 0x372   :  { %v125_v30 = vadd.f32 %v124_v29, %v123_v28 }
 0x374   :  { %v126_v31 = vrot.slane %v125_v30, 1 }
 0x376   :  { %v127_v32 = vadd.f32 %v126_v31, %v125_v30 }
 0x378   :  { %154 = vpush %v127_v32 }
 0x3a9   :  { %s155_s25 = spop %154 }
 0x3aa   :  { %v129_v33 = vstv %s155_s25 }
 0x3ab   :  { %160 = vrcp.f32 %v129_v33 }
 0x3b5   :  { %v161_v34 = vpop.eup %160 }
 0x3b6   :  { %v131_v35 = vmul.f32 %v161_v34, %v180_v0  ;;  %v132_v36 = vmul.f32 %v161_v34, %v195_v5  ;;  %v133_v37 = vmul.f32 %v161_v34, %v188_v2  ;;  %v134_v38 = vmul.f32 %v161_v34, %v200_v6 }
 0x3b7   :  { %v135_v39 = vmul.f32 %v161_v34, %v207_v9 }
 0x3b8   :  { %136 = vst.msk [vmem:[%s254_s2] sm:$0xff] %vm28_vm0, %v131_v35  ;;  %137 = vst.msk [vmem:[%s254_s2 + $0x8] sm:$0xff] %vm28_vm0, %v132_v36 }
 0x3b9   :  { %138 = vst.msk [vmem:[%s254_s2 + $0x10] sm:$0xff] %vm28_vm0, %v133_v37  ;;  %139 = vst.msk [vmem:[%s254_s2 + $0x18] sm:$0xff] %vm28_vm0, %v134_v38 }
 0x3ba   :  { %140 = vst.msk [vmem:[%s254_s2 + $0x20] sm:$0xf] %vm41_vm1, %v135_v39 }

// kernel: spectral_norm_conv2d.3
= control target key start
LH: loop header
LB: loop body
LE: loop exit
PB: predicated region body
PF: predicated region fallthrough
CT: control target
= control target key end

     0   :  { %s6345_s12 = smov 0   ;;  %s7997_s0 = inlined_call_operand.vmem [shape: bf16[2,18,18,4], index: 0, kind: input, shape index: {}]   ;;  %s7998_s1 = inlined_call_operand.vmem [shape: bf16[9,4,128], index: 1, kind: input, shape index: {}]   ;;  %s7999_s2 = inlined_call_operand.vmem [shape: f32[1,128], index: 2, kind: input, shape index: {}]   ;;  %s8000_s3 = inlined_call_operand.vmem [shape: f32[2,256,128], index: 3, kind: output, shape index: {}]  }
   0x1 LB: > { %s4937_s13 = sadd.s32 4294967295, %s6323_s12   ;;  %p4941_p0 = scmp.ge.s32.totalorder %s6323_s12, 1  ;;  %s6323_s12 = sphi %s6345_s12, %s13_s12  }
   0x2   : > { %p137_p1 = scmp.lt.s32.totalorder %s6323_s12, 3 }
   0x4   : > { %p138_p2 = pnand %p4941_p0, %p137_p1 }
   0x5   : > { %v211_v0 = vld [vmem:[%s7998_s1] sm:$0x3] (!%p138_p2)  ;;  %vm341_vm0 = vcmask (!%p138_p2), 1041408   ;;  %p161_p3 = scmp.lt.s32.totalorder (!%p138_p2), %s4937_s13, 1  ;;  %v5173_v2 = vld [vmem:[%s7998_s1 + $0x8] sm:$0x3] (!%p138_p2) }
   0x6   : > { %141 = sbr.rel (%p138_p2) target bundleno = 538 (0x21a), region = 32  ;;  %6234 = vmatprep.subr.msk.bf16.mxu1 (!%p138_p2), %vm341_vm0, %v211_v0  ;;  %v343_v1 = vsel (!%p138_p2), %vm341_vm0, %v211_v0, 0  ;;  %v4978_v3 = vld [vmem:[%s7998_s1 + $0x2] sm:$0x3] (!%p138_p2)  ;;  %6238 = vmatprep.subr.msk.bf16.mxu0 (!%p138_p2), %vm341_vm0, %v5173_v2  ;;  %v6368_v4 = vsel (!%p138_p2), %vm341_vm0, %v5173_v2, 0  ;;  %vm292_vm1 = vcmask (!%p138_p2), 31744  }
   0x7   : > { %5639 = vmatpush3.bf16.msra.mxu1 (!%p138_p2), %v343_v1  ;;  %5775 = vmatpush3.bf16.msra.mxu0 (!%p138_p2), %v6368_v4  ;;  %v5238_v5 = vld [vmem:[%s7998_s1 + $0xa] sm:$0x3] (!%p138_p2)  ;;  %vm586_vm2 = vsmask.f32 (!%p138_p2), 3328  ;;  %vm587_vm3 = vsmask.f32 (!%p138_p2), 7440 }
   0x8   : > { %6235 = vmatprep.subr.msk.bf16.mxu1 (!%p138_p2), %vm341_vm0, %v4978_v3  ;;  %6240 = vmatprep.subr.msk.bf16.mxu0 (!%p138_p2), %vm341_vm0, %v5238_v5  ;;  %v6385_v6 = vld [vmem:[%s7998_s1 + $0xc] sm:$0x3] (!%p138_p2)  ;;  %v5027_v8 = vld [vmem:[%s7998_s1 + $0x4] sm:$0x3] (!%p138_p2)  ;;  %v1072_v10 = vsel (!%p138_p2), %vm341_vm0, %v4978_v3, 0  ;;  %v6397_v12 = vsel (!%p138_p2), %vm341_vm0, %v5238_v5, 0  ;;  %vm6437_vm4 = vmor (!%p138_p2), %vm586_vm2, %vm587_vm3 }
   0x9   : > { %v6401_v13 = vsel (!%p138_p2), %vm341_vm0, %v6385_v6, 0  ;;  %v6418_v22 = vld [vmem:[%s7998_s1 + $0xe] sm:$0x3] (!%p138_p2)  ;;  %v6426_v27 = vsel (!%p138_p2), %vm341_vm0, %v5027_v8, 0  ;;  %vm1331_vm5 = vcmask (!%p138_p2), 1042432   ;;  %vm1332_vm6 = vcmask (!%p138_p2), 1046532  }
   0xa   : > { %v6444_v46 = vsel (!%p138_p2), %vm341_vm0, %v6418_v22, 0  ;;  %vm6564_vm7 = vmor (!%p138_p2), %vm1331_vm5, %vm1332_vm6 }
   0xd   : > { %s8008_s13 = smov (!%p161_p3, %s4937_s13), 1 }
   0xe   : > { %s6244_s22 = smul.u32 216, %s8008_s13  ;;  %s5484_s15 = sshll.u32 %s8008_s13, 8 }
   0xf   : > { %s7930_s18 = scalar_lea.vmem %s8000_s3, %s5484_s15 }
  0x10   : > { %s6380_s25 = scalar_lea.vmem %s7997_s0, %s6244_s22 }
  0x11   : > { %v6253_v7 = vld [vmem:[%s6380_s25] sm:$0xff]   ;;  %v6254_v9 = vld [vmem:[%s6380_s25 + $0xc] sm:$0xff]   ;;  %v6255_v11 = vld [vmem:[%s6380_s25 + $0x18] sm:$0xff]  }
  0x12   : > { %5640 = vmatprep.mubr.msk.bf16.mxu1 %vm292_vm1, %v6253_v7  ;;  %v5125_v14 = vld [vmem:[%s6380_s25 + $0xc] sm:$0xf]  ;;  %v6406_v15 = vld [vmem:[%s6380_s25 + $0x10] sm:$0xf]  ;;  %v6409_v16 = vld [vmem:[%s6380_s25 + $0x14] sm:$0x1] }
  0x13   : > { %5641 = vmatmul.mubr.msk.bf16.vlgmr.msra.gmra.mrb[0].mxu1 %vm292_vm1, %v6254_v9  ;;  %v2148_v17 = vshrl.u32 %v5125_v14, 16  ;;  %v2151_v18 = vshll.u32 %v5125_v14, 16  ;;  %v2157_v19 = vshll.u32 %v6406_v15, 16  ;;  %v2161_v20 = vshrl.u32 %v6406_v15, 16  ;;  %v5128_v21 = vld [vmem:[%s6380_s25 + $0x18] sm:$0xf] }
  0x14   : > { %5644 = vmatprep.mubr.msk.bf16.mxu1 %vm292_vm1, %v6255_v11  ;;  %5673 = vmatpush3.bf16.msra.mxu1 %v1072_v10  ;;  %v6256_v23 = vld [vmem:[%s6380_s25 + $0x24] sm:$0xff]   ;;  %v2167_v24 = vshll.u32 %v6409_v16, 16  ;;  %v6423_v25 = vld [vmem:[%s6380_s25 + $0x1c] sm:$0xf]  ;;  %v2172_v26 = vshrl.u32 %v5128_v21, 16  ;;  %v2175_v35 = vshll.u32 %v5128_v21, 16 }
  0x15   : > { %6236 = vmatprep.subr.msk.bf16.mxu1 %vm341_vm0, %v5027_v8  ;;  %v2150_v28 = vrot.slane %v2148_v17, 4  ;;  %v2153_v29 = vrot.slane %v2151_v18, 5  ;;  %v2159_v30 = vrot.slane %v2157_v19, 5  ;;  %v2163_v31 = vrot.slane %v2161_v20, 4  ;;  %v6429_v32 = vld [vmem:[%s6380_s25 + $0x20] sm:$0x1] }
  0x16   : > { %v2169_v33 = vrot.slane %v2167_v24, 5  ;;  %v2174_v34 = vrot.slane %v2172_v26, 4  ;;  %v2181_v36 = vshll.u32 %v6423_v25, 16  ;;  %v2185_v39 = vshrl.u32 %v6423_v25, 16  ;;  %v6257_v41 = vld [vmem:[%s6380_s25 + $0x30] sm:$0xff]   ;;  %v6258_v0 = vld [vmem:[%s6380_s25 + $0x3c] sm:$0xff]  }
  0x17   : > { %v2154_v37 = vor.u32 %v2153_v29, %v2150_v28  ;;  %v2164_v38 = vor.u32 %v2163_v31, %v2159_v30  ;;  %v2191_v40 = vshll.u32 %v6429_v32, 16  ;;  %v2891_v43 = vrot.slane %v6406_v15, 5  ;;  %v5131_v54 = vld [vmem:[%s6380_s25 + $0x24] sm:$0xf]  ;;  %v6452_v55 = vld [vmem:[%s6380_s25 + $0x28] sm:$0xf] }
  0x18   : > { %v2177_v44 = vrot.slane %v2175_v35, 5  ;;  %v2183_v45 = vrot.slane %v2181_v36, 5  ;;  %v2894_v49 = vrot.slane %v6409_v16, 5  ;;  %v2187_v50 = vrot.slane %v2185_v39, 4  ;;  %v6459_v59 = vld [vmem:[%s6380_s25 + $0x2c] sm:$0x1] }
  0x19   : > { %v2155_v47 = vrot.slane %v2154_v37, 4  ;;  %v2165_v48 = vrot.slane %v2164_v38, 4  ;;  %v2193_v52 = vrot.slane %v2191_v40, 5  ;;  %v2898_v53 = vrot.slane %v6423_v25, 5  ;;  %v5134_v61 = vld [vmem:[%s6380_s25 + $0x30] sm:$0xf] }
  0x1a   : > { %v2178_v51 = vor.u32 %v2177_v44, %v2174_v34  ;;  %v2188_v58 = vor.u32 %v2187_v50, %v2183_v45  ;;  %v2196_v60 = vshrl.u32 %v5131_v54, 16  ;;  %v2199_v1 = vshll.u32 %v5131_v54, 16  ;;  %v6465_v3 = vld [vmem:[%s6380_s25 + $0x34] sm:$0xf]  ;;  %v6470_v10 = vld [vmem:[%s6380_s25 + $0x38] sm:$0x1] }
  0x1b   : > { %5645 = vmatmul.mubr.msk.bf16.gmra.mrb[4].mxu1 %vm292_vm1, %v6256_v23  ;;  %v2160_v56 = vsel %vm6437_vm4, %v2155_v47, %v2159_v30  ;;  %v2170_v57 = vsel %vm6437_vm4, %v2165_v48, %v2169_v33  ;;  %v2205_v2 = vshll.u32 %v6452_v55, 16  ;;  %v2209_v8 = vshrl.u32 %v6452_v55, 16  ;;  %v6259_v19 = vld [vmem:[%s6380_s25 + $0x48] sm:$0xff]   ;;  %v5137_v36 = vld [vmem:[%s6380_s25 + $0x3c] sm:$0xf] }
  0x1c   : > { %5648 = vmatprep.mubr.msk.bf16.mxu1 %vm292_vm1, %v6257_v41  ;;  %v5174_v62 = vcombine.low %v2160_v56, %v2170_v57  ;;  %v2179_v63 = vrot.slane %v2178_v51, 4  ;;  %v2189_v5 = vrot.slane %v2188_v58, 4  ;;  %v2198_v7 = vrot.slane %v2196_v60, 4  ;;  %v6491_v41 = vld [vmem:[%s6380_s25 + $0x40] sm:$0xf] }
  0x1d   : > { %v2215_v9 = vshll.u32 %v6459_v59, 16  ;;  %v2201_v14 = vrot.slane %v2199_v1, 5  ;;  %v2207_v17 = vrot.slane %v2205_v2, 5  ;;  %v2220_v18 = vshrl.u32 %v5134_v61, 16  ;;  %v6495_v50 = vld [vmem:[%s6380_s25 + $0x44] sm:$0x1] }
  0x1e   : > { %5776 = vmatprep.mubr.msk.bf16.mxu0 %vm292_vm1, %v5174_v62  ;;  %v2184_v11 = vsel %vm6437_vm4, %v2179_v63, %v2183_v45  ;;  %v2194_v20 = vsel %vm6437_vm4, %v2189_v5, %v2193_v52  ;;  %v2211_v21 = vrot.slane %v2209_v8, 4  ;;  %v2223_v24 = vshll.u32 %v5134_v61, 16  ;;  %v6260_v52 = vld [vmem:[%s6380_s25 + $0x54] sm:$0xff]   ;;  %v5140_v58 = vld [vmem:[%s6380_s25 + $0x48] sm:$0xf]  ;;  %v6261_v8 = vld [vmem:[%s6380_s25 + $0x60] sm:$0xff]  }
  0x1f   : > { %v2217_v23 = vrot.slane %v2215_v9, 5  ;;  %v5175_v26 = vcombine.low %v2184_v11, %v2194_v20  ;;  %v2202_v28 = vor.u32 %v2201_v14, %v2198_v7  ;;  %v2222_v29 = vrot.slane %v2220_v18, 4  ;;  %v6508_v63 = vld [vmem:[%s6380_s25 + $0x4c] sm:$0xf]  ;;  %v6511_v7 = vld [vmem:[%s6380_s25 + $0x50] sm:$0x1] }
  0x20   : > { %v2229_v30 = vshll.u32 %v6465_v3, 16  ;;  %v2212_v31 = vor.u32 %v2211_v21, %v2207_v17  ;;  %v2225_v33 = vrot.slane %v2223_v24, 5  ;;  %v2233_v34 = vshrl.u32 %v6465_v3, 16 }
  0x21   : > { %v2239_v35 = vshll.u32 %v6470_v10, 16  ;;  %5777 = vmatmul.mubr.msk.bf16.vlgmr.msra.gmra.mrb[0].mxu0 %vm292_vm1, %v5175_v26  ;;  %v6486_v37 = vrot.slane %v2898_v53, 4  ;;  %v2901_v38 = vrot.slane %v6429_v32, 5  ;;  %v2203_v39 = vrot.slane %v2202_v28, 4  ;;  %v5143_v28 = vld [vmem:[%s6380_s25 + $0x54] sm:$0xf] }
  0x22   : > { %v2231_v40 = vrot.slane %v2229_v30, 5  ;;  %5809 = vmatpush3.bf16.msra.mxu0 %v6397_v12  ;;  %v2213_v44 = vrot.slane %v2212_v31, 4  ;;  %v2226_v45 = vor.u32 %v2225_v33, %v2222_v29  ;;  %v2235_v47 = vrot.slane %v2233_v34, 4  ;;  %v6526_v34 = vld [vmem:[%s6380_s25 + $0x58] sm:$0xf] }
  0x23   : > { %5649 = vmatmul.mubr.msk.bf16.gmra.mrb[8].mxu1 %vm292_vm1, %v6258_v0  ;;  %v2241_v48 = vrot.slane %v2239_v35, 5  ;;  %v2208_v51 = vsel %vm6437_vm4, %v2203_v39, %v2207_v17  ;;  %v2244_v54 = vshrl.u32 %v5137_v36, 16  ;;  %v2247_v56 = vshll.u32 %v5137_v36, 16  ;;  %6241 = vmatprep.subr.msk.bf16.mxu0 %vm341_vm0, %v6385_v6 }
  0x24   : > { %5652 = vmatprep.mubr.msk.bf16.mxu1 %vm292_vm1, %v6259_v19  ;;  %v2253_v57 = vshll.u32 %v6491_v41, 16  ;;  %v2218_v12 = vsel %vm6437_vm4, %v2213_v44, %v2217_v23  ;;  %v2227_v60 = vrot.slane %v2226_v45, 4  ;;  %v2236_v61 = vor.u32 %v2235_v47, %v2231_v40  ;;  %v6262_v44 = vld [vmem:[%s6380_s25 + $0x6c] sm:$0xff]   ;;  %v6531_v45 = vld [vmem:[%s6380_s25 + $0x5c] sm:$0x1] }
  0x25   : > { %v2257_v62 = vshrl.u32 %v6491_v41, 16  ;;  %v5176_v0 = vcombine.low %v2208_v51, %v2218_v12  ;;  %v2246_v1 = vrot.slane %v2244_v54, 4  ;;  %v2249_v2 = vrot.slane %v2247_v56, 5  ;;  %v5146_v54 = vld [vmem:[%s6380_s25 + $0x60] sm:$0xf] }
  0x26   : > { %v2255_v5 = vrot.slane %v2253_v57, 5  ;;  %v2232_v9 = vsel %vm6437_vm4, %v2227_v60, %v2231_v40  ;;  %v2237_v6 = vrot.slane %v2236_v61, 4  ;;  %v2263_v14 = vshll.u32 %v6495_v50, 16  ;;  %v6538_v56 = vld [vmem:[%s6380_s25 + $0x64] sm:$0xf] }
  0x27   : > { %v2259_v11 = vrot.slane %v2257_v62, 4  ;;  %5780 = vmatprep.mubr.msk.bf16.mxu0 %vm292_vm1, %v5176_v0  ;;  %v2250_v17 = vor.u32 %v2249_v2, %v2246_v1  ;;  %v2268_v18 = vshrl.u32 %v5140_v58, 16  ;;  %v2271_v19 = vshll.u32 %v5140_v58, 16  ;;  %v6544_v2 = vld [vmem:[%s6380_s25 + $0x68] sm:$0x1] }
  0x28   : > { %v2277_v20 = vshll.u32 %v6508_v63, 16  ;;  %v2242_v21 = vsel %vm6437_vm4, %v2237_v6, %v2241_v48  ;;  %v2265_v24 = vrot.slane %v2263_v14, 5  ;;  %v2281_v26 = vshrl.u32 %v6508_v63, 16 }
  0x29   : > { %v2260_v23 = vor.u32 %v2259_v11, %v2255_v5  ;;  %v5177_v29 = vcombine.low %v2232_v9, %v2242_v21  ;;  %v2251_v30 = vrot.slane %v2250_v17, 4  ;;  %v2270_v31 = vrot.slane %v2268_v18, 4  ;;  %v5207_v21 = vld [vmem:[%s6380_s25 + $0x18] sm:$0xe] }
  0x2a   : > { %v2273_v33 = vrot.slane %v2271_v19, 5  ;;  %v2279_v36 = vrot.slane %v2277_v20, 5  ;;  %v2283_v39 = vrot.slane %v2281_v26, 4  ;;  %v2287_v40 = vshll.u32 %v6511_v7, 16  ;;  %v5206_v20 = vld [vmem:[%s6380_s25 + $0xc] sm:$0xe] }
  0x2b   : > { %5653 = vmatmul.mubr.msk.bf16.gmra.mrb[12].mxu1 %vm292_vm1, %v6260_v52  ;;  %v2261_v35 = vrot.slane %v2260_v23, 4  ;;  %5781 = vmatmul.mubr.msk.bf16.gmra.mrb[4].mxu0 %vm292_vm1, %v5177_v29  ;;  %v2256_v47 = vsel %vm6437_vm4, %v2251_v30, %v2255_v5  ;;  %v2292_v51 = vshrl.u32 %v5143_v28, 16  ;;  %v2295_v52 = vshll.u32 %v5143_v28, 16  ;;  %v6263_v5 = vld [vmem:[%s6380_s25 + $0x78] sm:$0xff]  }
  0x2c   : > { %5656 = vmatprep.mubr.msk.bf16.mxu1 %vm292_vm1, %v6261_v8  ;;  %v2274_v48 = vor.u32 %v2273_v33, %v2270_v31  ;;  %v2284_v58 = vor.u32 %v2283_v39, %v2279_v36  ;;  %v2289_v12 = vrot.slane %v2287_v40, 5  ;;  %v2301_v60 = vshll.u32 %v6526_v34, 16 }
  0x2d   : > { %v2266_v57 = vsel %vm6437_vm4, %v2261_v35, %v2265_v24  ;;  %v2294_v0 = vrot.slane %v2292_v51, 4  ;;  %v2297_v1 = vrot.slane %v2295_v52, 5  ;;  %v2305_v6 = vshrl.u32 %v6526_v34, 16 }
  0x2e   : > { %v5178_v61 = vcombine.low %v2256_v47, %v2266_v57  ;;  %v2275_v62 = vrot.slane %v2274_v48, 4  ;;  %v2285_v8 = vrot.slane %v2284_v58, 4  ;;  %v2303_v9 = vrot.slane %v2301_v60, 5  ;;  %v6265_v57 = vld [vmem:[%s6380_s25 + $0x90] sm:$0xff]   ;;  %v5208_v58 = vld [vmem:[%s6380_s25 + $0x24] sm:$0xe] }
  0x2f   : > { %v2311_v11 = vshll.u32 %v6531_v45, 16  ;;  %v2298_v17 = vor.u32 %v2297_v1, %v2294_v0  ;;  %v2316_v18 = vshrl.u32 %v5146_v54, 16  ;;  %v2319_v19 = vshll.u32 %v5146_v54, 16  ;;  %v5209_v0 = vld [vmem:[%s6380_s25 + $0x30] sm:$0xe] }
  0x30   : > { %5784 = vmatprep.mubr.msk.bf16.mxu0 %vm292_vm1, %v5178_v61  ;;  %v2280_v14 = vsel %vm6437_vm4, %v2275_v62, %v2279_v36  ;;  %v2290_v23 = vsel %vm6437_vm4, %v2285_v8, %v2289_v12  ;;  %v2307_v24 = vrot.slane %v2305_v6, 4  ;;  %v2325_v28 = vshll.u32 %v6538_v56, 16 }
  0x31   : > { %v2313_v26 = vrot.slane %v2311_v11, 5  ;;  %v5179_v29 = vcombine.low %v2280_v14, %v2290_v23  ;;  %v2299_v30 = vrot.slane %v2298_v17, 4  ;;  %v2318_v31 = vrot.slane %v2316_v18, 4  ;;  %v5210_v14 = vld [vmem:[%s6380_s25 + $0x3c] sm:$0xe] }
  0x32   : > { %v2321_v33 = vrot.slane %v2319_v19, 5  ;;  %v2308_v35 = vor.u32 %v2307_v24, %v2303_v9  ;;  %v2327_v36 = vrot.slane %v2325_v28, 5  ;;  %v2329_v39 = vshrl.u32 %v6538_v56, 16  ;;  %v538_v24 = vld [vmem:[%s6380_s25] sm:$0xf] }
  0x33   : > { %5657 = vmatmul.mubr.msk.bf16.gmra.mrb[16].mxu1 %vm292_vm1, %v6262_v44  ;;  %v2335_v40 = vshll.u32 %v6544_v2, 16  ;;  %v6264_v44 = vld [vmem:[%s6380_s25 + $0x84] sm:$0xff]   ;;  %5785 = vmatmul.mubr.msk.bf16.gmra.mrb[8].mxu0 %vm292_vm1, %v5179_v29  ;;  %v2304_v48 = vsel %vm6437_vm4, %v2299_v30, %v2303_v9  ;;  %v5222_v52 = vrot.slane %v5206_v20, 9  ;;  %v2893_v54 = vrot.slane %v2891_v43, 4 }
  0x34   : > { %5660 = vmatprep.mubr.msk.bf16.mxu1 %vm292_vm1, %v6263_v5  ;;  %v2322_v51 = vor.u32 %v2321_v33, %v2318_v31  ;;  %v2309_v12 = vrot.slane %v2308_v35, 4  ;;  %v2331_v60 = vrot.slane %v2329_v39, 4  ;;  %v5223_v62 = vrot.slane %v5207_v21, 9  ;;  %v5211_v20 = vld [vmem:[%s6380_s25 + $0x48] sm:$0xe]  ;;  %v6266_v31 = vld [vmem:[%s6380_s25 + $0x9c] sm:$0xff]  }
  0x35   : > { %v2337_v61 = vrot.slane %v2335_v40, 5  ;;  %v6581_v5 = vsel %vm6564_vm7, %v6486_v37, %v2901_v38  ;;  %v5224_v8 = vrot.slane %v5208_v58, 9  ;;  %v2892_v11 = vsel %vm6564_vm7, %v5222_v52, %v2891_v43  ;;  %v539_v30 = vld [vmem:[%s6380_s25 + $0x4] sm:$0xf]  ;;  %v6267_v35 = vld [vmem:[%s6380_s25 + $0xa8] sm:$0xff]  }
  0x36   : > { %v2323_v1 = vrot.slane %v2322_v51, 4  ;;  %v2314_v9 = vsel %vm6437_vm4, %v2309_v12, %v2313_v26  ;;  %v2332_v6 = vor.u32 %v2331_v60, %v2327_v36  ;;  %v2895_v32 = vsel %vm6564_vm7, %v2893_v54, %v2894_v49  ;;  %v541_v52 = vld [vmem:[%s6380_s25 + $0xc] sm:$0xf]  ;;  %v6651_v60 = vld [vmem:[%s6380_s25 + $0x10] sm:$0xf] }
  0x37   : > { %v5180_v17 = vcombine.low %v2304_v48, %v2314_v9  ;;  %v6600_v38 = vsel %vm6564_vm7, %v5223_v62, %v2898_v53  ;;  %v2905_v15 = vrot.slane %v6452_v55, 5  ;;  %v2908_v16 = vrot.slane %v6459_v59, 5  ;;  %v6642_v48 = vld [vmem:[%s6380_s25 + $0x8] sm:$0x1] }
  0x38   : > { %v2328_v37 = vsel %vm6437_vm4, %v2323_v1, %v2327_v36  ;;  %v2333_v43 = vrot.slane %v2332_v6, 4  ;;  %v5225_v49 = vrot.slane %v5209_v0, 9  ;;  %v2912_v18 = vrot.slane %v6465_v3, 5 }
  0x39   : > { %5788 = vmatprep.mubr.msk.bf16.mxu0 %vm292_vm1, %v5180_v17  ;;  %v5239_v19 = vcombine.low %v2892_v11, %v2895_v32  ;;  %v2907_v25 = vrot.slane %v2905_v15, 4  ;;  %v2915_v53 = vrot.slane %v6470_v10, 5  ;;  %v5226_v55 = vrot.slane %v5210_v14, 9  ;;  %v6662_v11 = vld [vmem:[%s6380_s25 + $0x14] sm:$0x1] }
  0x3a   : > { %v2338_v21 = vsel %vm6437_vm4, %v2333_v43, %v2337_v61  ;;  %v6614_v59 = vsel %vm6564_vm7, %v5224_v8, %v2905_v15  ;;  %v2914_v3 = vrot.slane %v2912_v18, 4  ;;  %v2919_v23 = vrot.slane %v6491_v41, 5  ;;  %v5212_v43 = vld [vmem:[%s6380_s25 + $0x54] sm:$0xe] }
  0x3b   : > { %5661 = vmatmul.mubr.msk.bf16.gmra.mrb[20].mxu1 %vm292_vm1, %v6264_v44  ;;  %v5181_v26 = vcombine.low %v2328_v37, %v2338_v21  ;;  %v5240_v28 = vcombine.low %v6600_v38, %v6581_v5  ;;  %v2909_v10 = vsel %vm6564_vm7, %v2907_v25, %v2908_v16  ;;  %v2922_v29 = vrot.slane %v6495_v50, 5  ;;  %v6268_v25 = vld [vmem:[%s6380_s25 + $0xb4] sm:$0xff]  }
  0x3c   : > { %5664 = vmatprep.mubr.msk.bf16.mxu1 %vm292_vm1, %v6265_v57  ;;  %v6627_v33 = vsel %vm6564_vm7, %v5225_v49, %v2912_v18  ;;  %v6631_v41 = vsel %vm6564_vm7, %v2914_v3, %v2915_v53  ;;  %v2921_v36 = vrot.slane %v2919_v23, 4  ;;  %v5227_v39 = vrot.slane %v5211_v20, 9 }
  0x3d   : > { %5789 = vmatmul.mubr.msk.bf16.gmra.mrb[12].mxu0 %vm292_vm1, %v5181_v26  ;;  %v5241_v40 = vcombine.low %v6614_v59, %v2909_v10  ;;  %v6638_v50 = vsel %vm6564_vm7, %v5226_v55, %v2919_v23  ;;  %v2926_v44 = vrot.slane %v6508_v63, 5  ;;  %v590_v51 = vshrl.u32 %v538_v24, 16  ;;  %v5213_v59 = vld [vmem:[%s6380_s25 + $0x60] sm:$0xe]  ;;  %v544_v10 = vld [vmem:[%s6380_s25 + $0x18] sm:$0xf] }
  0x3e   : > { %5810 = vmatprep.mubr.msk.bf16.mxu0 %vm292_vm1, %v5239_v19  ;;  %v6648_v54 = vsel %vm6564_vm7, %v2921_v36, %v2922_v29  ;;  %v593_v57 = vshll.u32 %v538_v24, 16  ;;  %v599_v58 = vshll.u32 %v539_v30, 16  ;;  %v603_v12 = vshrl.u32 %v539_v30, 16 }
  0x3f   : > { %v5242_v61 = vcombine.low %v6627_v33, %v6631_v41  ;;  %v2928_v63 = vrot.slane %v2926_v44, 4  ;;  %v2929_v62 = vrot.slane %v6511_v7, 5  ;;  %v592_v0 = vrot.slane %v590_v51, 4  ;;  %v5150_v41 = vld [vmem:[%s6380_s25 + $0x70] sm:$0xf] }
  0x40   : > { %v595_v1 = vrot.slane %v593_v57, 5  ;;  %v601_v5 = vrot.slane %v599_v58, 5  ;;  %v605_v8 = vrot.slane %v603_v12, 4  ;;  %v609_v9 = vshll.u32 %v6642_v48, 16  ;;  %v6701_v58 = vld [vmem:[%s6380_s25 + $0x20] sm:$0x1] }
  0x41   : > { %v5243_v6 = vcombine.low %v6638_v50, %v6648_v54  ;;  %v614_v32 = vshrl.u32 %v541_v52, 16  ;;  %v617_v14 = vshll.u32 %v541_v52, 16  ;;  %v623_v7 = vshll.u32 %v6651_v60, 16 }
  0x42   : > { %v6667_v17 = vsel %vm6564_vm7, %v5227_v39, %v2926_v44  ;;  %v596_v37 = vor.u32 %v595_v1, %v592_v0  ;;  %v606_v38 = vor.u32 %v605_v8, %v601_v5  ;;  %v611_v15 = vrot.slane %v609_v9, 5  ;;  %v547_v1 = vld [vmem:[%s6380_s25 + $0x24] sm:$0xf] }
  0x43   : > { %5665 = vmatmul.mubr.msk.bf16.gmra.mrb[24].mxu1 %vm292_vm1, %v6266_v31  ;;  %v616_v16 = vrot.slane %v614_v32, 4  ;;  %v619_v49 = vrot.slane %v617_v14, 5  ;;  %v625_v18 = vrot.slane %v623_v7, 5  ;;  %v627_v19 = vshrl.u32 %v6651_v60, 16  ;;  %v6721_v14 = vld [vmem:[%s6380_s25 + $0x28] sm:$0xf] }
  0x44   : > { %5668 = vmatprep.mubr.msk.bf16.mxu1 %vm292_vm1, %v6267_v35  ;;  %v6674_v53 = vsel %vm6564_vm7, %v2928_v63, %v2929_v62  ;;  %v597_v55 = vrot.slane %v596_v37, 4  ;;  %v607_v20 = vrot.slane %v606_v38, 4  ;;  %v633_v21 = vshll.u32 %v6662_v11, 16  ;;  %v6689_v35 = vld [vmem:[%s6380_s25 + $0x1c] sm:$0xf] }
  0x45   : > { %5811 = vmatmul.mubr.msk.bf16.vlgmr.msra.gmra.mrb[0].mxu0 %vm292_vm1, %v5240_v28  ;;  %v620_v3 = vor.u32 %v619_v49, %v616_v16  ;;  %v629_v23 = vrot.slane %v627_v19, 4  ;;  %v5228_v24 = vrot.slane %v5212_v43, 9  ;;  %v2933_v26 = vrot.slane %v6526_v34, 5  ;;  %v5214_v19 = vld [vmem:[%s6380_s25 + $0x6c] sm:$0xe] }
  0x46   : > { %5843 = vmatpush3.bf16.msra.mxu0 %v6401_v13  ;;  %5814 = vmatprep.mubr.msk.bf16.mxu0 %vm292_vm1, %v5241_v40  ;;  %v602_v29 = vsel %vm6437_vm4, %v597_v55, %v601_v5  ;;  %v612_v30 = vsel %vm6437_vm4, %v607_v20, %v611_v15  ;;  %v635_v31 = vrot.slane %v633_v21, 5  ;;  %v2936_v28 = vrot.slane %v6531_v45, 5  ;;  %v6726_v15 = vld [vmem:[%s6380_s25 + $0x2c] sm:$0x1] }
  0x47   : > { %v4979_v36 = vcombine.low %v602_v29, %v612_v30  ;;  %v621_v39 = vrot.slane %v620_v3, 4  ;;  %v630_v34 = vor.u32 %v629_v23, %v625_v18  ;;  %v5229_v44 = vrot.slane %v5213_v59, 9  ;;  %6242 = vmatprep.subr.msk.bf16.mxu0 %vm341_vm0, %v6418_v22  ;;  %v5151_v23 = vld [vmem:[%s6380_s25 + $0x74] sm:$0x1] }
  0x48   : > { %v5244_v13 = vcombine.low %v6667_v17, %v6674_v53  ;;  %v2935_v40 = vrot.slane %v2933_v26, 4  ;;  %v2940_v51 = vrot.slane %v6538_v56, 5  ;;  %v638_v52 = vshrl.u32 %v544_v10, 16 }
  0x49   : > { %v626_v45 = vsel %vm6437_vm4, %v621_v39, %v625_v18  ;;  %v631_v57 = vrot.slane %v630_v34, 4  ;;  %v641_v22 = vshll.u32 %v544_v10, 16  ;;  %v647_v12 = vshll.u32 %v6689_v35, 16 }
  0x4a   : > { %v6706_v63 = vsel %vm6564_vm7, %v5228_v24, %v2933_v26  ;;  %v6710_v56 = vsel %vm6564_vm7, %v2935_v40, %v2936_v28  ;;  %v2943_v62 = vrot.slane %v6544_v2, 5  ;;  %v640_v0 = vrot.slane %v638_v52, 4 }
  0x4b   : > { %5669 = vmatmul.mubr.msk.bf16.gmra.mrb[28].mxu1 %vm292_vm1, %v6268_v25  ;;  %v636_v5 = vsel %vm6437_vm4, %v631_v57, %v635_v31  ;;  %v6718_v8 = vsel %vm6564_vm7, %v5229_v44, %v2940_v51  ;;  %v2942_v9 = vrot.slane %v2940_v51, 4  ;;  %v643_v32 = vrot.slane %v641_v22, 5  ;;  %v5153_v31 = vld [vmem:[%s6380_s25 + $0x7c] sm:$0xf] }
  0x4c   : > { %5674 = vmatprep.mubr.msk.bf16.mxu1 %vm292_vm1, %v4979_v36  ;;  %v4980_v7 = vcombine.low %v626_v45, %v636_v5  ;;  %v649_v37 = vrot.slane %v647_v12, 5  ;;  %v651_v38 = vshrl.u32 %v6689_v35, 16  ;;  %v657_v2 = vshll.u32 %v6701_v58, 16  ;;  %v5215_v45 = vld [vmem:[%s6380_s25 + $0x78] sm:$0xe] }
  0x4d   : > { %5815 = vmatmul.mubr.msk.bf16.gmra.mrb[4].mxu0 %vm292_vm1, %v5242_v61  ;;  %v5245_v43 = vcombine.low %v6706_v63, %v6710_v56  ;;  %v644_v16 = vor.u32 %v643_v32, %v640_v0  ;;  %v662_v49 = vshrl.u32 %v547_v1, 16  ;;  %v665_v18 = vshll.u32 %v547_v1, 16  ;;  %v6757_v12 = vld [vmem:[%s6380_s25 + $0x80] sm:$0x1]  ;;  %v550_v5 = vld [vmem:[%s6380_s25 + $0x30] sm:$0xf] }
  0x4e   : > { %5818 = vmatprep.mubr.msk.bf16.mxu0 %vm292_vm1, %v5243_v6  ;;  %v653_v25 = vrot.slane %v651_v38, 4  ;;  %v659_v55 = vrot.slane %v657_v2, 5  ;;  %v671_v20 = vshll.u32 %v6721_v14, 16  ;;  %v675_v33 = vshrl.u32 %v6721_v14, 16 }
  0x4f   : > { %v645_v61 = vrot.slane %v644_v16, 4  ;;  %v664_v21 = vrot.slane %v662_v49, 4  ;;  %v667_v59 = vrot.slane %v665_v18, 5  ;;  %v681_v3 = vshll.u32 %v6726_v15, 16 }
  0x50   : > { %v654_v24 = vor.u32 %v653_v25, %v649_v37  ;;  %v673_v50 = vrot.slane %v671_v20, 5  ;;  %v677_v54 = vrot.slane %v675_v33, 4  ;;  %v5230_v6 = vrot.slane %v5214_v19, 9  ;;  %v553_v19 = vld [vmem:[%s6380_s25 + $0x3c] sm:$0xf] }
  0x51   : > { %v650_v26 = vsel %vm6437_vm4, %v645_v61, %v649_v37  ;;  %v668_v10 = vor.u32 %v667_v59, %v664_v21  ;;  %v683_v29 = vrot.slane %v681_v3, 5  ;;  %v2947_v30 = vrot.slane %v5150_v41, 5  ;;  %v6797_v41 = vld [vmem:[%s6380_s25 + $0x40] sm:$0xf] }
  0x52   : > { %v655_v28 = vrot.slane %v654_v24, 4  ;;  %v678_v36 = vor.u32 %v677_v54, %v673_v50  ;;  %v2950_v39 = vrot.slane %v5151_v23, 5  ;;  %v2373_v34 = vshll.u32 %v5153_v31, 16  ;;  %v6800_v23 = vld [vmem:[%s6380_s25 + $0x44] sm:$0x1] }
  0x53   : > { %5675 = vmatmul.mubr.msk.bf16.vlgmr.msra.gmra.mrb[0].mxu1 %vm292_vm1, %v4980_v7  ;;  %v2944_v44 = vsel %vm6564_vm7, %v2942_v9, %v2943_v62  ;;  %v669_v40 = vrot.slane %v668_v10, 4  ;;  %v2949_v51 = vrot.slane %v2947_v30, 4  ;;  %v2377_v52 = vshrl.u32 %v5153_v31, 16  ;;  %v6773_v9 = vld [vmem:[%s6380_s25 + $0x34] sm:$0xf] }
  0x54   : > { %5707 = vmatpush3.bf16.msra.mxu1 %v6426_v27  ;;  %v660_v27 = vsel %vm6437_vm4, %v655_v28, %v659_v55  ;;  %v679_v57 = vrot.slane %v678_v36, 4  ;;  %v2948_v22 = vsel %vm6564_vm7, %v5230_v6, %v2947_v30  ;;  %v6759_v63 = vrot.slane %v2373_v34, 5  ;;  %v6781_v7 = vld [vmem:[%s6380_s25 + $0x38] sm:$0x1]  ;;  %v5156_v28 = vld [vmem:[%s6380_s25 + $0x88] sm:$0xf] }
  0x55   : > { %5819 = vmatmul.mubr.msk.bf16.gmra.mrb[8].mxu0 %vm292_vm1, %v5244_v13  ;;  %v4981_v56 = vcombine.low %v650_v26, %v660_v27  ;;  %v674_v62 = vsel %vm6437_vm4, %v669_v40, %v673_v50  ;;  %v2951_v0 = vsel %vm6564_vm7, %v2949_v51, %v2950_v39  ;;  %v6769_v1 = vrot.slane %v2377_v52, 4  ;;  %v5216_v26 = vld [vmem:[%s6380_s25 + $0x84] sm:$0xe]  ;;  %v5157_v36 = vld [vmem:[%s6380_s25 + $0x8c] sm:$0x1] }
  0x56   : > { %5822 = vmatprep.mubr.msk.bf16.mxu0 %vm292_vm1, %v5245_v43  ;;  %v5246_v32 = vcombine.low %v6718_v8, %v2944_v44  ;;  %v684_v17 = vsel %vm6437_vm4, %v679_v57, %v683_v29  ;;  %v5231_v13 = vrot.slane %v5215_v45, 9  ;;  %v5247_v38 = vcombine.low %v2948_v22, %v2951_v0  ;;  %v5159_v51 = vld [vmem:[%s6380_s25 + $0x94] sm:$0xf]  ;;  %v5217_v52 = vld [vmem:[%s6380_s25 + $0x90] sm:$0xe] }
  0x57   : > { %5678 = vmatprep.mubr.msk.bf16.mxu1 %vm292_vm1, %v4981_v56  ;;  %v4982_v37 = vcombine.low %v674_v62, %v684_v17  ;;  %v2954_v2 = vrot.slane %v5153_v31, 5  ;;  %v2957_v16 = vrot.slane %v6757_v12, 5  ;;  %v686_v43 = vshrl.u32 %v550_v5, 16  ;;  %v5160_v56 = vld [vmem:[%s6380_s25 + $0x98] sm:$0x1] }
  0x58   : > { %v689_v49 = vshll.u32 %v550_v5, 16  ;;  %v695_v8 = vshll.u32 %v6773_v9, 16  ;;  %v699_v18 = vshrl.u32 %v6773_v9, 16  ;;  %v705_v33 = vshll.u32 %v6781_v7, 16  ;;  %v556_v17 = vld [vmem:[%s6380_s25 + $0x48] sm:$0xf] }
  0x59   : > { %v6793_v55 = vsel %vm6564_vm7, %v5231_v13, %v2954_v2  ;;  %v2956_v20 = vrot.slane %v2954_v2, 4  ;;  %v688_v61 = vrot.slane %v686_v43, 4  ;;  %v710_v54 = vshrl.u32 %v553_v19, 16 }
  0x5a   : > { %v691_v21 = vrot.slane %v689_v49, 5  ;;  %v697_v59 = vrot.slane %v695_v8, 5  ;;  %v701_v3 = vrot.slane %v699_v18, 4  ;;  %v707_v50 = vrot.slane %v705_v33, 5 }
  0x5b   : > { %5679 = vmatmul.mubr.msk.bf16.gmra.mrb[4].mxu1 %vm292_vm1, %v4982_v37  ;;  %v2958_v24 = vsel %vm6564_vm7, %v2956_v20, %v2957_v16  ;;  %v713_v6 = vshll.u32 %v553_v19, 16  ;;  %v719_v31 = vshll.u32 %v6797_v41, 16  ;;  %v712_v39 = vrot.slane %v710_v54, 4  ;;  %v6822_v16 = vld [vmem:[%s6380_s25 + $0x4c] sm:$0xf] }
  0x5c   : > { %v5248_v10 = vcombine.low %v6793_v55, %v2958_v24  ;;  %v692_v29 = vor.u32 %v691_v21, %v688_v61  ;;  %v702_v30 = vor.u32 %v701_v3, %v697_v59  ;;  %v723_v44 = vshrl.u32 %v6797_v41, 16  ;;  %v6827_v19 = vld [vmem:[%s6380_s25 + $0x50] sm:$0x1]  ;;  %v559_v21 = vld [vmem:[%s6380_s25 + $0x54] sm:$0xf] }
  0x5d   : > { %5823 = vmatmul.mubr.msk.bf16.gmra.mrb[12].mxu0 %vm292_vm1, %v5246_v32  ;;  %v715_v34 = vrot.slane %v713_v6, 5  ;;  %v729_v40 = vshll.u32 %v6800_v23, 16  ;;  %v721_v57 = vrot.slane %v719_v31, 5  ;;  %v5232_v22 = vrot.slane %v5216_v26, 9 }
  0x5e   : > { %5826 = vmatprep.mubr.msk.bf16.mxu0 %vm292_vm1, %v5247_v38  ;;  %v693_v45 = vrot.slane %v692_v29, 4  ;;  %v703_v27 = vrot.slane %v702_v30, 4  ;;  %v725_v0 = vrot.slane %v723_v44, 4  ;;  %v2961_v32 = vrot.slane %v5156_v28, 5 }
  0x5f   : > { %v716_v62 = vor.u32 %v715_v34, %v712_v39  ;;  %v731_v5 = vrot.slane %v729_v40, 5  ;;  %v2964_v2 = vrot.slane %v5157_v36, 5  ;;  %v5233_v38 = vrot.slane %v5217_v52, 9  ;;  %v6842_v39 = vld [vmem:[%s6380_s25 + $0x58] sm:$0xf] }
  0x60   : > { %v698_v13 = vsel %vm6437_vm4, %v693_v45, %v697_v59  ;;  %v708_v37 = vsel %vm6437_vm4, %v703_v27, %v707_v50  ;;  %v726_v8 = vor.u32 %v725_v0, %v721_v57  ;;  %v2962_v18 = vsel %vm6564_vm7, %v5232_v22, %v2961_v32  ;;  %v5162_v52 = vld [vmem:[%s6380_s25 + $0xa0] sm:$0xf] }
  0x61   : > { %v4983_v43 = vcombine.low %v698_v13, %v708_v37  ;;  %v717_v49 = vrot.slane %v716_v62, 4  ;;  %v2963_v55 = vrot.slane %v2961_v32, 4  ;;  %v2968_v20 = vrot.slane %v5159_v51, 5  ;;  %v5218_v62 = vld [vmem:[%s6380_s25 + $0x9c] sm:$0xe] }
  0x62   : > { %v2971_v33 = vrot.slane %v5160_v56, 5  ;;  %v734_v61 = vshrl.u32 %v556_v17, 16  ;;  %v727_v3 = vrot.slane %v726_v8, 4  ;;  %v737_v24 = vshll.u32 %v556_v17, 16  ;;  %v5163_v56 = vld [vmem:[%s6380_s25 + $0xa4] sm:$0x1] }
  0x63   : > { %5682 = vmatprep.mubr.msk.bf16.mxu1 %vm292_vm1, %v4983_v43  ;;  %v722_v59 = vsel %vm6437_vm4, %v717_v49, %v721_v57  ;;  %v743_v50 = vshll.u32 %v6822_v16, 16  ;;  %v2965_v54 = vsel %vm6564_vm7, %v2963_v55, %v2964_v2  ;;  %v2969_v6 = vsel %vm6564_vm7, %v5233_v38, %v2968_v20  ;;  %v5165_v13 = vld [vmem:[%s6380_s25 + $0xac] sm:$0xf]  ;;  %v5219_v37 = vld [vmem:[%s6380_s25 + $0xa8] sm:$0xe] }
  0x64   : > { %v2970_v26 = vrot.slane %v2968_v20, 4  ;;  %v736_v29 = vrot.slane %v734_v61, 4  ;;  %v732_v30 = vsel %vm6437_vm4, %v727_v3, %v731_v5  ;;  %v5249_v31 = vcombine.low %v2962_v18, %v2965_v54  ;;  %v5166_v8 = vld [vmem:[%s6380_s25 + $0xb0] sm:$0x1]  ;;  %v562_v18 = vld [vmem:[%s6380_s25 + $0x60] sm:$0xf] }
  0x65   : > { %5827 = vmatmul.mubr.msk.bf16.gmra.mrb[16].mxu0 %vm292_vm1, %v5248_v10  ;;  %v739_v28 = vrot.slane %v737_v24, 5  ;;  %v745_v36 = vrot.slane %v743_v50, 5  ;;  %v4984_v34 = vcombine.low %v722_v59, %v732_v30  ;;  %v747_v40 = vshrl.u32 %v6822_v16, 16  ;;  %v6849_v10 = vld [vmem:[%s6380_s25 + $0x5c] sm:$0x1] }
  0x66   : > { %v2972_v44 = vsel %vm6564_vm7, %v2970_v26, %v2971_v33  ;;  %v753_v51 = vshll.u32 %v6827_v19, 16  ;;  %5830 = vmatprep.mubr.msk.bf16.mxu0 %vm292_vm1, %v5249_v31  ;;  %v758_v57 = vshrl.u32 %v559_v21, 16  ;;  %v761_v22 = vshll.u32 %v559_v21, 16 }
  0x67   : > { %v5250_v45 = vcombine.low %v2969_v6, %v2972_v44  ;;  %v740_v27 = vor.u32 %v739_v28, %v736_v29  ;;  %5683 = vmatmul.mubr.msk.bf16.gmra.mrb[8].mxu1 %vm292_vm1, %v4984_v34  ;;  %v749_v0 = vrot.slane %v747_v40, 4  ;;  %v767_v32 = vshll.u32 %v6842_v39, 16  ;;  %v6871_v40 = vld [vmem:[%s6380_s25 + $0x64] sm:$0xf] }
  0x68   : > { %v755_v5 = vrot.slane %v753_v51, 5  ;;  %v771_v17 = vshrl.u32 %v6842_v39, 16  ;;  %v760_v38 = vrot.slane %v758_v57, 4  ;;  %v763_v43 = vrot.slane %v761_v22, 5  ;;  %v6880_v22 = vld [vmem:[%s6380_s25 + $0x68] sm:$0x1] }
  0x69   : > { %v741_v2 = vrot.slane %v740_v27, 4  ;;  %v777_v49 = vshll.u32 %v6849_v10, 16  ;;  %v750_v55 = vor.u32 %v749_v0, %v745_v36  ;;  %v769_v20 = vrot.slane %v767_v32, 5 }
  0x6a   : > { %v773_v33 = vrot.slane %v771_v17, 4  ;;  %v5234_v61 = vrot.slane %v5218_v62, 9  ;;  %v764_v59 = vor.u32 %v763_v43, %v760_v38  ;;  %v2975_v24 = vrot.slane %v5162_v52, 5  ;;  %v6884_v62 = vld [vmem:[%s6380_s25 + $0x70] sm:$0xf] }
  0x6b   : > { %v746_v21 = vsel %vm6437_vm4, %v741_v2, %v745_v36  ;;  %v779_v3 = vrot.slane %v777_v49, 5  ;;  %v751_v50 = vrot.slane %v750_v55, 4  ;;  %v2978_v6 = vrot.slane %v5163_v56, 5  ;;  %v565_v56 = vld [vmem:[%s6380_s25 + $0x6c] sm:$0xf] }
  0x6c   : > { %v774_v54 = vor.u32 %v773_v33, %v769_v20  ;;  %v5235_v26 = vrot.slane %v5219_v37, 9  ;;  %v765_v29 = vrot.slane %v764_v59, 4  ;;  %v2976_v30 = vsel %vm6564_vm7, %v5234_v61, %v2975_v24  ;;  %v5168_v49 = vld [vmem:[%s6380_s25 + $0xb8] sm:$0xf] }
  0x6d   : > { %5831 = vmatmul.mubr.msk.bf16.gmra.mrb[20].mxu0 %vm292_vm1, %v5250_v45  ;;  %v2977_v31 = vrot.slane %v2975_v24, 4  ;;  %v2982_v28 = vrot.slane %v5165_v13, 5  ;;  %v756_v36 = vsel %vm6437_vm4, %v751_v50, %v755_v5  ;;  %v2985_v44 = vrot.slane %v5166_v8, 5  ;;  %v6889_v13 = vld [vmem:[%s6380_s25 + $0x74] sm:$0x1] }
  0x6e   : > { %v775_v34 = vrot.slane %v774_v54, 4  ;;  %v782_v51 = vshrl.u32 %v562_v18, 16  ;;  %v4985_v52 = vcombine.low %v746_v21, %v756_v36  ;;  %v770_v45 = vsel %vm6437_vm4, %v765_v29, %v769_v20  ;;  %v5220_v24 = vld [vmem:[%s6380_s25 + $0xb4] sm:$0xe]  ;;  %v5221_v29 = vld [vmem:[%s6380_s25 + $0xc0] sm:$0xe] }
  0x6f   : > { %v2979_v27 = vsel %vm6564_vm7, %v2977_v31, %v2978_v6  ;;  %v2983_v57 = vsel %vm6564_vm7, %v5235_v26, %v2982_v28  ;;  %v2984_v32 = vrot.slane %v2982_v28, 4  ;;  %v785_v2 = vshll.u32 %v562_v18, 16 }
  0x70   : > { %v780_v0 = vsel %vm6437_vm4, %v775_v34, %v779_v3  ;;  %v5251_v5 = vcombine.low %v2976_v30, %v2979_v27  ;;  %v784_v17 = vrot.slane %v782_v51, 4  ;;  %5686 = vmatprep.mubr.msk.bf16.mxu1 %vm292_vm1, %v4985_v52  ;;  %v791_v38 = vshll.u32 %v6871_v40, 16  ;;  %v5169_v3 = vld [vmem:[%s6380_s25 + $0xbc] sm:$0x1]  ;;  %v5171_v34 = vld [vmem:[%s6380_s25 + $0xc4] sm:$0xf] }
  0x71   : > { %v4986_v37 = vcombine.low %v770_v45, %v780_v0  ;;  %v795_v43 = vshrl.u32 %v6871_v40, 16  ;;  %v2986_v8 = vsel %vm6564_vm7, %v2984_v32, %v2985_v44  ;;  %v801_v55 = vshll.u32 %v6880_v22, 16  ;;  %v5172_v27 = vld [vmem:[%s6380_s25 + $0xc8] sm:$0x1] }
  0x72   : > { %5834 = vmatprep.mubr.msk.bf16.mxu0 %vm292_vm1, %v5251_v5  ;;  %v806_v20 = vshrl.u32 %v565_v56, 16  ;;  %v809_v33 = vshll.u32 %v565_v56, 16  ;;  %v5252_v61 = vcombine.low %v2983_v57, %v2986_v8  ;;  %v787_v18 = vrot.slane %v785_v2, 5  ;;  %v568_v57 = vld [vmem:[%s6380_s25 + $0x78] sm:$0xf] }
  0x73   : > { %5687 = vmatmul.mubr.msk.bf16.gmra.mrb[12].mxu1 %vm292_vm1, %v4986_v37  ;;  %v793_v21 = vrot.slane %v791_v38, 5  ;;  %v797_v59 = vrot.slane %v795_v43, 4  ;;  %v803_v50 = vrot.slane %v801_v55, 5  ;;  %v815_v26 = vshll.u32 %v6884_v62, 16  ;;  %v6915_v43 = vld [vmem:[%s7998_s1 + $0x6] sm:$0x3] }
  0x74   : > { %v808_v54 = vrot.slane %v806_v20, 4  ;;  %v811_v6 = vrot.slane %v809_v33, 5  ;;  %v788_v30 = vor.u32 %v787_v18, %v784_v17  ;;  %v819_v28 = vshrl.u32 %v6884_v62, 16  ;;  %v6922_v33 = vld [vmem:[%s6380_s25 + $0x7c] sm:$0xf]  ;;  %6237 = vmatprep.subr.msk.bf16.mxu1 %vm341_vm0, %v6915_v43 }
  0x75   : > { %5835 = vmatmul.mubr.msk.bf16.gmra.mrb[24].mxu0 %vm292_vm1, %v5252_v61  ;;  %v798_v31 = vor.u32 %v797_v59, %v793_v21  ;;  %v825_v36 = vshll.u32 %v6889_v13, 16  ;;  %v817_v51 = vrot.slane %v815_v26, 5  ;;  %v5236_v52 = vrot.slane %v5220_v24, 9  ;;  %v6925_v61 = vld [vmem:[%s6380_s25 + $0x80] sm:$0x1] }
  0x76   : > { %v812_v44 = vor.u32 %v811_v6, %v808_v54  ;;  %v2989_v45 = vrot.slane %v5168_v49, 5  ;;  %v789_v56 = vrot.slane %v788_v30, 4  ;;  %v821_v5 = vrot.slane %v819_v28, 4  ;;  %v571_v24 = vld [vmem:[%s6380_s25 + $0x84] sm:$0xf] }
  0x77   : > { %v799_v0 = vrot.slane %v798_v31, 4  ;;  %v827_v32 = vrot.slane %v825_v36, 5  ;;  %v2992_v38 = vrot.slane %v5169_v3, 5  ;;  %v5237_v20 = vrot.slane %v5221_v29, 9  ;;  %v6935_v29 = vld [vmem:[%s6380_s25 + $0x88] sm:$0xf] }
  0x78   : > { %v813_v37 = vrot.slane %v812_v44, 4  ;;  %v2990_v17 = vsel %vm6564_vm7, %v5236_v52, %v2989_v45  ;;  %v2991_v2 = vrot.slane %v2989_v45, 4  ;;  %v794_v49 = vsel %vm6437_vm4, %v789_v56, %v793_v21  ;;  %v6947_v45 = vld [vmem:[%s6380_s25 + $0x8c] sm:$0x1] }
  0x79   : > { %v804_v8 = vsel %vm6437_vm4, %v799_v0, %v803_v50  ;;  %v822_v55 = vor.u32 %v821_v5, %v817_v51  ;;  %v2996_v3 = vrot.slane %v5171_v34, 5  ;;  %v2999_v6 = vrot.slane %v5172_v27, 5  ;;  %v6269_v27 = vld [vmem:[%s6380_s25 + $0x18] sm:$0xff]  }
  0x7a   : > { %v4987_v18 = vcombine.low %v794_v49, %v804_v8  ;;  %v818_v59 = vsel %vm6437_vm4, %v813_v37, %v817_v51  ;;  %v2993_v21 = vsel %vm6564_vm7, %v2991_v2, %v2992_v38  ;;  %v830_v26 = vshrl.u32 %v568_v57, 16  ;;  %v574_v37 = vld [vmem:[%s6380_s25 + $0x90] sm:$0xf]  ;;  %v6954_v49 = vld [vmem:[%s6380_s25 + $0x94] sm:$0xf] }
  0x7b   : > { %v823_v50 = vrot.slane %v822_v55, 4  ;;  %v5253_v54 = vcombine.low %v2990_v17, %v2993_v21  ;;  %v2997_v30 = vsel %vm6564_vm7, %v5237_v20, %v2996_v3  ;;  %v2998_v31 = vrot.slane %v2996_v3, 4 }
  0x7c   : > { %5690 = vmatprep.mubr.msk.bf16.mxu1 %vm292_vm1, %v4987_v18  ;;  %v833_v28 = vshll.u32 %v568_v57, 16  ;;  %v839_v36 = vshll.u32 %v6922_v33, 16  ;;  %v832_v44 = vrot.slane %v830_v26, 4  ;;  %v843_v51 = vshrl.u32 %v6922_v33, 16 }
  0x7d   : > { %v828_v34 = vsel %vm6437_vm4, %v823_v50, %v827_v32  ;;  %5838 = vmatprep.mubr.msk.bf16.mxu0 %vm292_vm1, %v5253_v54  ;;  %v849_v52 = vshll.u32 %v6925_v61, 16  ;;  %v3000_v57 = vsel %vm6564_vm7, %v2998_v31, %v2999_v6  ;;  %v854_v38 = vshrl.u32 %v571_v24, 16 }
  0x7e   : > { %v4988_v56 = vcombine.low %v818_v59, %v828_v34  ;;  %v835_v0 = vrot.slane %v833_v28, 5  ;;  %v841_v5 = vrot.slane %v839_v36, 5  ;;  %v5254_v32 = vcombine.low %v2997_v30, %v3000_v57  ;;  %v6960_v59 = vld [vmem:[%s6380_s25 + $0x98] sm:$0x1] }
  0x7f   : > { %v845_v17 = vrot.slane %v843_v51, 4  ;;  %v851_v2 = vrot.slane %v849_v52, 5  ;;  %v857_v55 = vshll.u32 %v571_v24, 16  ;;  %v863_v20 = vshll.u32 %v6935_v29, 16  ;;  %v577_v24 = vld [vmem:[%s6380_s25 + $0x9c] sm:$0xf] }
  0x80   : > { %5691 = vmatmul.mubr.msk.bf16.gmra.mrb[16].mxu1 %vm292_vm1, %v4988_v56  ;;  %v836_v8 = vor.u32 %v835_v0, %v832_v44  ;;  %v867_v18 = vshrl.u32 %v6935_v29, 16  ;;  %5839 = vmatmul.mubr.msk.bf16.gmra.mrb[28].mxu0 %vm292_vm1, %v5254_v32  ;;  %v856_v3 = vrot.slane %v854_v38, 4  ;;  %v873_v50 = vshll.u32 %v6947_v45, 16  ;;  %v6967_v51 = vld [vmem:[%s6380_s25 + $0xa0] sm:$0xf]  ;;  %v6270_v32 = vld [vmem:[%s6380_s25 + $0x24] sm:$0xff]  }
  0x81   : > { %v846_v21 = vor.u32 %v845_v17, %v841_v5  ;;  %v878_v54 = vshrl.u32 %v574_v37, 16  ;;  %v859_v26 = vrot.slane %v857_v55, 5  ;;  %v865_v30 = vrot.slane %v863_v20, 5  ;;  %5844 = vmatprep.mubr.msk.bf16.mxu0 %vm292_vm1, %v6269_v27 }
  0x82   : > { %v837_v6 = vrot.slane %v836_v8, 4  ;;  %v869_v31 = vrot.slane %v867_v18, 4  ;;  %v875_v36 = vrot.slane %v873_v50, 5  ;;  %v881_v44 = vshll.u32 %v574_v37, 16  ;;  %v6978_v8 = vld [vmem:[%s6380_s25 + $0xa4] sm:$0x1] }
  0x83   : > { %v847_v28 = vrot.slane %v846_v21, 4  ;;  %v880_v34 = vrot.slane %v878_v54, 4  ;;  %v860_v56 = vor.u32 %v859_v26, %v856_v3  ;;  %v887_v0 = vshll.u32 %v6954_v49, 16  ;;  %v6271_v21 = vld [vmem:[%s6380_s25 + $0x30] sm:$0xff]   ;;  %v580_v26 = vld [vmem:[%s6380_s25 + $0xa8] sm:$0xf] }
  0x84   : > { %v842_v52 = vsel %vm6437_vm4, %v837_v6, %v841_v5  ;;  %v870_v57 = vor.u32 %v869_v31, %v865_v30  ;;  %v883_v17 = vrot.slane %v881_v44, 5  ;;  %v891_v38 = vshrl.u32 %v6954_v49, 16 }
  0x85   : > { %v852_v27 = vsel %vm6437_vm4, %v847_v28, %v851_v2  ;;  %v897_v37 = vshll.u32 %v6960_v59, 16  ;;  %v861_v20 = vrot.slane %v860_v56, 4  ;;  %v889_v18 = vrot.slane %v887_v0, 5 }
  0x86   : > { %v4989_v55 = vcombine.low %v842_v52, %v852_v27  ;;  %v871_v5 = vrot.slane %v870_v57, 4  ;;  %v884_v3 = vor.u32 %v883_v17, %v880_v34  ;;  %v893_v50 = vrot.slane %v891_v38, 4  ;;  %v6989_v52 = vld [vmem:[%s6380_s25 + $0xac] sm:$0xf]  ;;  %v7000_v38 = vld [vmem:[%s6380_s25 + $0xb0] sm:$0x1] }
  0x87   : > { %v899_v54 = vrot.slane %v897_v37, 5  ;;  %v902_v6 = vshrl.u32 %v577_v24, 16  ;;  %v866_v2 = vsel %vm6437_vm4, %v861_v20, %v865_v30  ;;  %v905_v28 = vshll.u32 %v577_v24, 16 }
  0x88   : > { %5694 = vmatprep.mubr.msk.bf16.mxu1 %vm292_vm1, %v4989_v55  ;;  %v876_v31 = vsel %vm6437_vm4, %v871_v5, %v875_v36  ;;  %v911_v44 = vshll.u32 %v6967_v51, 16  ;;  %5845 = vmatmul.mubr.msk.bf16.vlgmr.msra.gmra.mrb[0].mxu0 %vm292_vm1, %v6270_v32  ;;  %v885_v34 = vrot.slane %v884_v3, 4  ;;  %v894_v57 = vor.u32 %v893_v50, %v889_v18  ;;  %v583_v50 = vld [vmem:[%s6380_s25 + $0xb4] sm:$0xf] }
  0x89   : > { %v4990_v56 = vcombine.low %v866_v2, %v876_v31  ;;  %v904_v0 = vrot.slane %v902_v6, 4  ;;  %5877 = vmatpush3.bf16.msra.mxu0 %v6444_v46  ;;  %v907_v27 = vrot.slane %v905_v28, 5  ;;  %v915_v36 = vshrl.u32 %v6967_v51, 16  ;;  %5848 = vmatprep.mubr.msk.bf16.mxu0 %vm292_vm1, %v6271_v21  ;;  %v6272_v6 = vld [vmem:[%s6380_s25 + $0x3c] sm:$0xff]   ;;  %v7009_v28 = vld [vmem:[%s6380_s25 + $0xb8] sm:$0xf] }
  0x8a   : > { %v913_v30 = vrot.slane %v911_v44, 5  ;;  %v921_v24 = vshll.u32 %v6978_v8, 16  ;;  %v890_v32 = vsel %vm6437_vm4, %v885_v34, %v889_v18  ;;  %v895_v17 = vrot.slane %v894_v57, 4  ;;  %v6273_v57 = vld [vmem:[%s6380_s25 + $0x48] sm:$0xff]  }
  0x8b   : > { %5695 = vmatmul.mubr.msk.bf16.gmra.mrb[20].mxu1 %vm292_vm1, %v4990_v56  ;;  %v926_v46 = vshrl.u32 %v580_v26, 16  ;;  %v929_v37 = vshll.u32 %v580_v26, 16  ;;  %v908_v55 = vor.u32 %v907_v27, %v904_v0  ;;  %v917_v20 = vrot.slane %v915_v36, 4 }
  0x8c   : > { %v923_v5 = vrot.slane %v921_v24, 5  ;;  %v935_v3 = vshll.u32 %v6989_v52, 16  ;;  %v900_v21 = vsel %vm6437_vm4, %v895_v17, %v899_v54  ;;  %v939_v18 = vshrl.u32 %v6989_v52, 16  ;;  %v7016_v54 = vld [vmem:[%s7998_s1 + $0x10] sm:$0x3] }
  0x8d   : > { %v928_v2 = vrot.slane %v926_v46, 4  ;;  %v931_v31 = vrot.slane %v929_v37, 5  ;;  %v4991_v44 = vcombine.low %v890_v32, %v900_v21  ;;  %v909_v26 = vrot.slane %v908_v55, 4  ;;  %v7022_v46 = vld [vmem:[%s6380_s25 + $0xbc] sm:$0x1]  ;;  %6243 = vmatprep.subr.msk.bf16.mxu0 %vm341_vm0, %v7016_v54 }
  0x8e   : > { %v918_v56 = vor.u32 %v917_v20, %v913_v30  ;;  %v937_v34 = vrot.slane %v935_v3, 5  ;;  %v941_v27 = vrot.slane %v939_v18, 4  ;;  %v945_v36 = vshll.u32 %v7000_v38, 16 }
  0x8f   : > { %v932_v0 = vor.u32 %v931_v31, %v928_v2  ;;  %v950_v24 = vshrl.u32 %v583_v50, 16  ;;  %5698 = vmatprep.mubr.msk.bf16.mxu1 %vm292_vm1, %v4991_v44  ;;  %v914_v32 = vsel %vm6437_vm4, %v909_v26, %v913_v30  ;;  %v953_v37 = vshll.u32 %v583_v50, 16  ;;  %v1267_v31 = vld [vmem:[%s6380_s25] sm:$0xe]  ;;  %v1268_v26 = vld [vmem:[%s6380_s25 + $0xc] sm:$0xe] }
  0x90   : > { %v919_v17 = vrot.slane %v918_v56, 4  ;;  %v959_v55 = vshll.u32 %v7009_v28, 16  ;;  %5849 = vmatmul.mubr.msk.bf16.gmra.mrb[4].mxu0 %vm292_vm1, %v6272_v6  ;;  %v942_v3 = vor.u32 %v941_v27, %v937_v34  ;;  %v947_v21 = vrot.slane %v945_v36, 5 }
  0x91   : > { %v933_v20 = vrot.slane %v932_v0, 4  ;;  %v952_v2 = vrot.slane %v950_v24, 4  ;;  %v955_v18 = vrot.slane %v953_v37, 5  ;;  %v963_v50 = vshrl.u32 %v7009_v28, 16  ;;  %5852 = vmatprep.mubr.msk.bf16.mxu0 %vm292_vm1, %v6273_v57  ;;  %v1269_v37 = vld [vmem:[%s6380_s25 + $0x18] sm:$0xe] }
  0x92   : > { %v924_v30 = vsel %vm6437_vm4, %v919_v17, %v923_v5  ;;  %v961_v44 = vrot.slane %v959_v55, 5  ;;  %v943_v0 = vrot.slane %v942_v3, 4  ;;  %v969_v27 = vshll.u32 %v7022_v46, 16  ;;  %v6301_v5 = vld [vmem:[%s6380_s25 + $0x4] sm:$0xf] }
  0x93   : > { %v4992_v56 = vcombine.low %v914_v32, %v924_v30  ;;  %v938_v6 = vsel %vm6437_vm4, %v933_v20, %v937_v34  ;;  %v956_v36 = vor.u32 %v955_v18, %v952_v2  ;;  %v965_v24 = vrot.slane %v963_v50, 4  ;;  %v6274_v32 = vld [vmem:[%s6380_s25 + $0x54] sm:$0xff]   ;;  %v6275_v18 = vld [vmem:[%s6380_s25 + $0x60] sm:$0xff]  }
  0x94   : > { %v5011_v25 = vrot.slane %v1267_v31, 9  ;;  %v1336_v17 = vrot.slane %v6301_v5, 5  ;;  %v948_v57 = vsel %vm6437_vm4, %v943_v0, %v947_v21  ;;  %v971_v55 = vrot.slane %v969_v27, 5 }
  0x95   : > { %5699 = vmatmul.mubr.msk.bf16.gmra.mrb[24].mxu1 %vm292_vm1, %v4992_v56  ;;  %v1339_v30 = vrot.slane %v6642_v48, 5  ;;  %v5012_v34 = vrot.slane %v1268_v26, 9  ;;  %v4993_v20 = vcombine.low %v938_v6, %v948_v57  ;;  %v957_v3 = vrot.slane %v956_v36, 4 }
  0x96   : > { %v966_v2 = vor.u32 %v965_v24, %v961_v44  ;;  %v1337_v31 = vsel %vm6564_vm7, %v5011_v25, %v1336_v17  ;;  %v1338_v50 = vrot.slane %v1336_v17, 4  ;;  %v1343_v56 = vrot.slane %v6651_v60, 5  ;;  %v1270_v25 = vld [vmem:[%s6380_s25 + $0x24] sm:$0xe] }
  0x97   : > { %v1346_v5 = vrot.slane %v6662_v11, 5  ;;  %v5013_v21 = vrot.slane %v1269_v37, 9  ;;  %5702 = vmatprep.mubr.msk.bf16.mxu1 %vm292_vm1, %v4993_v20  ;;  %v962_v48 = vsel %vm6437_vm4, %v957_v3, %v961_v44  ;;  %v1350_v6 = vrot.slane %v6689_v35, 5  ;;  %v1271_v35 = vld [vmem:[%s6380_s25 + $0x30] sm:$0xe] }
  0x98   : > { %v967_v26 = vrot.slane %v966_v2, 4  ;;  %v1353_v0 = vrot.slane %v6701_v58, 5  ;;  %5853 = vmatmul.mubr.msk.bf16.gmra.mrb[8].mxu0 %vm292_vm1, %v6274_v32  ;;  %v1340_v60 = vsel %vm6564_vm7, %v1338_v50, %v1339_v30  ;;  %v7060_v11 = vsel %vm6564_vm7, %v5012_v34, %v1343_v56  ;;  %v1272_v34 = vld [vmem:[%s6380_s25 + $0x3c] sm:$0xe]  ;;  %v1274_v50 = vld [vmem:[%s6380_s25 + $0x54] sm:$0xe] }
  0x99   : > { %v1345_v27 = vrot.slane %v1343_v56, 4  ;;  %v7064_v44 = vsel %vm341_vm0, %v6915_v43, 0  ;;  %v5028_v36 = vcombine.low %v1337_v31, %v1340_v60  ;;  %5856 = vmatprep.mubr.msk.bf16.mxu0 %vm292_vm1, %v6275_v18  ;;  %v1351_v24 = vsel %vm6564_vm7, %v5013_v21, %v1350_v6  ;;  %v6276_v43 = vld [vmem:[%s6380_s25 + $0x6c] sm:$0xff]   ;;  %v6277_v2 = vld [vmem:[%s6380_s25 + $0x78] sm:$0xff]   ;;  %v1273_v18 = vld [vmem:[%s6380_s25 + $0x48] sm:$0xe] }
  0x9a   : > { %v972_v58 = vsel %vm6437_vm4, %v967_v26, %v971_v55  ;;  %v1352_v17 = vrot.slane %v1350_v6, 4  ;;  %v5014_v32 = vrot.slane %v1270_v25, 9  ;;  %v1357_v30 = vrot.slane %v6721_v14, 5 }
  0x9b   : > { %v4994_v37 = vcombine.low %v962_v48, %v972_v58  ;;  %v1347_v57 = vsel %vm6564_vm7, %v1345_v27, %v1346_v5  ;;  %v1360_v3 = vrot.slane %v6726_v15, 5  ;;  %v5015_v31 = vrot.slane %v1271_v35, 9 }
  0x9c   : > { %v5029_v55 = vcombine.low %v7060_v11, %v1347_v57  ;;  %v1354_v20 = vsel %vm6564_vm7, %v1352_v17, %v1353_v0  ;;  %v7087_v5 = vsel %vm6564_vm7, %v5014_v32, %v1357_v30  ;;  %v1359_v14 = vrot.slane %v1357_v30, 4 }
  0x9d   : > { %5703 = vmatmul.mubr.msk.bf16.gmra.mrb[28].mxu1 %vm292_vm1, %v4994_v37  ;;  %v5030_v56 = vcombine.low %v1351_v24, %v1354_v20  ;;  %v1364_v21 = vrot.slane %v6773_v9, 5  ;;  %v1367_v48 = vrot.slane %v6781_v7, 5  ;;  %v5016_v26 = vrot.slane %v1272_v34, 9  ;;  %v1275_v24 = vld [vmem:[%s6380_s25 + $0x60] sm:$0xe]  ;;  %v6278_v20 = vld [vmem:[%s6380_s25 + $0x84] sm:$0xff]  }
  0x9e   : > { %5708 = vmatprep.mubr.msk.bf16.mxu1 %vm292_vm1, %v5028_v36  ;;  %v1371_v15 = vrot.slane %v6797_v41, 5  ;;  %v1374_v6 = vrot.slane %v6800_v23, 5  ;;  %v7096_v0 = vsel %vm6564_vm7, %v1359_v14, %v1360_v3  ;;  %v5017_v9 = vrot.slane %v1273_v18, 9 }
  0x9f   : > { %v7100_v25 = vsel %vm6564_vm7, %v5015_v31, %v1364_v21  ;;  %v1366_v60 = vrot.slane %v1364_v21, 4  ;;  %v5031_v7 = vcombine.low %v7087_v5, %v7096_v0  ;;  %v1378_v11 = vrot.slane %v6822_v16, 5 }
  0xa0   : > { %v7106_v41 = vsel %vm6564_vm7, %v5016_v26, %v1371_v15  ;;  %v1373_v23 = vrot.slane %v1371_v15, 4  ;;  %5857 = vmatmul.mubr.msk.bf16.gmra.mrb[12].mxu0 %vm292_vm1, %v6276_v43  ;;  %v1381_v35 = vrot.slane %v6827_v19, 5  ;;  %v5018_v58 = vrot.slane %v1274_v50, 9  ;;  %v1276_v43 = vld [vmem:[%s6380_s25 + $0x6c] sm:$0xe] }
  0xa1   : > { %v7112_v27 = vsel %vm6564_vm7, %v1366_v60, %v1367_v48  ;;  %v1385_v36 = vrot.slane %v6842_v39, 5  ;;  %5860 = vmatprep.mubr.msk.bf16.mxu0 %vm292_vm1, %v6277_v2  ;;  %v7126_v37 = vsel %vm6564_vm7, %v5017_v9, %v1378_v11  ;;  %v1380_v57 = vrot.slane %v1378_v11, 4  ;;  %v1277_v19 = vld [vmem:[%s6380_s25 + $0x78] sm:$0xe]  ;;  %v1278_v48 = vld [vmem:[%s6380_s25 + $0x84] sm:$0xe] }
  0xa2   : > { %v5032_v17 = vcombine.low %v7100_v25, %v7112_v27  ;;  %v7122_v16 = vsel %vm6564_vm7, %v1373_v23, %v1374_v6  ;;  %v1388_v34 = vrot.slane %v6849_v10, 5  ;;  %v5019_v2 = vrot.slane %v1275_v24, 9  ;;  %v5336_v6 = vld [vmem:[%s6380_s25 + $0x18] sm:$0xf]  ;;  %v7170_v9 = vld [vmem:[%s6380_s25 + $0x1c] sm:$0xf] }
  0xa3   : > { %v5033_v39 = vcombine.low %v7106_v41, %v7122_v16  ;;  %v7134_v32 = vsel %vm6564_vm7, %v5018_v58, %v1385_v36  ;;  %v1387_v30 = vrot.slane %v1385_v36, 4  ;;  %v7140_v3 = vsel %vm6564_vm7, %v1380_v57, %v1381_v35  ;;  %v6302_v23 = vld [vmem:[%s7998_s1 + $0x8] sm:$0x3]  ;;  %v7183_v36 = vld [vmem:[%s6380_s25 + $0x20] sm:$0x1] }
  0xa4   : > { %v1392_v31 = vrot.slane %v6871_v40, 5  ;;  %v1395_v18 = vrot.slane %v6880_v22, 5  ;;  %v5034_v50 = vcombine.low %v7126_v37, %v7140_v3  ;;  %v5020_v10 = vrot.slane %v1276_v43, 9  ;;  %v6279_v40 = vld [vmem:[%s6380_s25 + $0x90] sm:$0xff]   ;;  %v5339_v43 = vld [vmem:[%s6380_s25 + $0x24] sm:$0xf] }
  0xa5   : > { %5709 = vmatmul.mubr.msk.bf16.vlgmr.msra.gmra.mrb[0].mxu1 %vm292_vm1, %v5029_v55  ;;  %v7149_v14 = vsel %vm6564_vm7, %v1387_v30, %v1388_v34  ;;  %v1399_v21 = vrot.slane %v6884_v62, 5  ;;  %v1402_v15 = vrot.slane %v6889_v13, 5  ;;  %v1406_v60 = vrot.slane %v6922_v33, 5 }
  0xa6   : > { %5712 = vmatprep.mubr.msk.bf16.mxu1 %vm292_vm1, %v5030_v56  ;;  %5741 = vmatpush3.bf16.msra.mxu1 %v7064_v44  ;;  %v5035_v22 = vcombine.low %v7134_v32, %v7149_v14  ;;  %v7160_v55 = vsel %vm6564_vm7, %v5019_v2, %v1392_v31  ;;  %v1394_v26 = vrot.slane %v1392_v31, 4  ;;  %v5021_v44 = vrot.slane %v1277_v19, 9 }
  0xa7   : > { %v7166_v62 = vsel %vm6564_vm7, %v5020_v10, %v1399_v21  ;;  %v1401_v56 = vrot.slane %v1399_v21, 4  ;;  %6239 = vmatprep.subr.msk.bf16.mxu1 %vm341_vm0, %v6302_v23  ;;  %v1409_v11 = vrot.slane %v6925_v61, 5  ;;  %v5022_v35 = vrot.slane %v1278_v48, 9  ;;  %v6281_v23 = vld [vmem:[%s6380_s25 + $0xa8] sm:$0xff]  }
  0xa8   : > { %v7178_v13 = vsel %vm6564_vm7, %v1394_v26, %v1395_v18  ;;  %v1413_v58 = vrot.slane %v6935_v29, 5  ;;  %5861 = vmatmul.mubr.msk.bf16.gmra.mrb[16].mxu0 %vm292_vm1, %v6278_v20  ;;  %v7194_v57 = vsel %vm6564_vm7, %v5021_v44, %v1406_v60  ;;  %v1408_v61 = vrot.slane %v1406_v60, 4  ;;  %v7222_v26 = vld [vmem:[%s6380_s25 + $0x2c] sm:$0x1] }
  0xa9   : > { %v5036_v33 = vcombine.low %v7160_v55, %v7178_v13  ;;  %v7190_v24 = vsel %vm6564_vm7, %v1401_v56, %v1402_v15  ;;  %5864 = vmatprep.mubr.msk.bf16.mxu0 %vm292_vm1, %v6279_v40  ;;  %v1416_v34 = vrot.slane %v6947_v45, 5  ;;  %v3703_v2 = vshrl.u32 %v5336_v6, 16  ;;  %v7219_v40 = vld [vmem:[%s6380_s25 + $0x28] sm:$0xf]  ;;  %v6280_v15 = vld [vmem:[%s6380_s25 + $0x9c] sm:$0xff]  }
  0xaa   : > { %v5037_v29 = vcombine.low %v7166_v62, %v7190_v24  ;;  %v7202_v19 = vsel %vm6564_vm7, %v5022_v35, %v1413_v58  ;;  %v1415_v30 = vrot.slane %v1413_v58, 4  ;;  %v7207_v20 = vsel %vm6564_vm7, %v1408_v61, %v1409_v11  ;;  %v7339_v55 = vld [vmem:[%s6380_s25 + $0x50] sm:$0x1] }
  0xab   : > { %v3706_v31 = vshll.u32 %v5336_v6, 16  ;;  %v3712_v18 = vshll.u32 %v7170_v9, 16  ;;  %v5038_v10 = vcombine.low %v7194_v57, %v7207_v20  ;;  %v3716_v48 = vshrl.u32 %v7170_v9, 16 }
  0xac   : > { %v7214_v21 = vsel %vm6564_vm7, %v1415_v30, %v1416_v34  ;;  %v3722_v45 = vshll.u32 %v7183_v36, 16  ;;  %v3705_v56 = vrot.slane %v3703_v2, 4  ;;  %v3727_v5 = vshrl.u32 %v5339_v43, 16  ;;  %v1279_v34 = vld [vmem:[%s6380_s25 + $0x90] sm:$0xe] }
  0xad   : > { %5713 = vmatmul.mubr.msk.bf16.gmra.mrb[4].mxu1 %vm292_vm1, %v5031_v7  ;;  %v5039_v6 = vcombine.low %v7202_v19, %v7214_v21  ;;  %v3708_v44 = vrot.slane %v3706_v31, 5  ;;  %v3714_v60 = vrot.slane %v3712_v18, 5  ;;  %v3718_v11 = vrot.slane %v3716_v48, 4 }
  0xae   : > { %5716 = vmatprep.mubr.msk.bf16.mxu1 %vm292_vm1, %v5032_v17  ;;  %v3724_v35 = vrot.slane %v3722_v45, 5  ;;  %v3730_v0 = vshll.u32 %v5339_v43, 16  ;;  %v3736_v58 = vshll.u32 %v7219_v40, 16  ;;  %v3740_v61 = vshrl.u32 %v7219_v40, 16  ;;  %v1280_v17 = vld [vmem:[%s6380_s25 + $0x9c] sm:$0xe] }
  0xaf   : > { %v3709_v7 = vor.u32 %v3708_v44, %v3705_v56  ;;  %v3746_v30 = vshll.u32 %v7222_v26, 16  ;;  %v3719_v2 = vor.u32 %v3718_v11, %v3714_v60  ;;  %v3729_v31 = vrot.slane %v3727_v5, 4  ;;  %v5342_v56 = vld [vmem:[%s6380_s25 + $0x30] sm:$0xf] }
  0xb0   : > { %v3732_v25 = vrot.slane %v3730_v0, 5  ;;  %v7242_v27 = vsel %vm341_vm0, %v7016_v54, 0  ;;  %5865 = vmatmul.mubr.msk.bf16.gmra.mrb[20].mxu0 %vm292_vm1, %v6280_v15  ;;  %v3738_v18 = vrot.slane %v3736_v58, 5  ;;  %v3742_v48 = vrot.slane %v3740_v61, 4  ;;  %v6282_v58 = vld [vmem:[%s6380_s25 + $0xb4] sm:$0xff]  }
  0xb1   : > { %v3710_v43 = vrot.slane %v3709_v7, 4  ;;  %v3748_v45 = vrot.slane %v3746_v30, 5  ;;  %5868 = vmatprep.mubr.msk.bf16.mxu0 %vm292_vm1, %v6281_v23  ;;  %v3720_v44 = vrot.slane %v3719_v2, 4  ;;  %v5023_v5 = vrot.slane %v1279_v34, 9  ;;  %v7260_v34 = vld [vmem:[%s6380_s25 + $0x34] sm:$0xf] }
  0xb2   : > { %v3733_v11 = vor.u32 %v3732_v25, %v3729_v31  ;;  %v1420_v0 = vrot.slane %v6954_v49, 5  ;;  %v3743_v53 = vor.u32 %v3742_v48, %v3738_v18  ;;  %v1423_v15 = vrot.slane %v6960_v59, 5  ;;  %v6283_v59 = vld [vmem:[%s6380_s25 + $0xc0] sm:$0xff]   ;;  %v7272_v25 = vld [vmem:[%s6380_s25 + $0x38] sm:$0x1] }
  0xb3   : > { %v3715_v54 = vsel %vm6437_vm4, %v3710_v43, %v3714_v60  ;;  %v5024_v7 = vrot.slane %v1280_v17, 9  ;;  %v3725_v61 = vsel %vm6437_vm4, %v3720_v44, %v3724_v35  ;;  %v1427_v2 = vrot.slane %v6967_v51, 5  ;;  %v5345_v17 = vld [vmem:[%s6380_s25 + $0x3c] sm:$0xf]  ;;  %v7286_v51 = vld [vmem:[%s6380_s25 + $0x40] sm:$0xf] }
  0xb4   : > { %v3734_v30 = vrot.slane %v3733_v11, 4  ;;  %v7257_v23 = vsel %vm6564_vm7, %v5023_v5, %v1420_v0  ;;  %v1422_v49 = vrot.slane %v1420_v0, 4  ;;  %v7267_v60 = vcombine.low %v3715_v54, %v3725_v61  ;;  %v7297_v43 = vld [vmem:[%s6380_s25 + $0x44] sm:$0x1] }
  0xb5   : > { %5717 = vmatmul.mubr.msk.bf16.gmra.mrb[8].mxu1 %vm292_vm1, %v5033_v39  ;;  %v3744_v35 = vrot.slane %v3743_v53, 4  ;;  %v1430_v31 = vrot.slane %v6978_v8, 5  ;;  %v3751_v39 = vshrl.u32 %v5342_v56, 16  ;;  %v3754_v53 = vshll.u32 %v5342_v56, 16 }
  0xb6   : > { %5720 = vmatprep.mubr.msk.bf16.mxu1 %vm292_vm1, %v5034_v50  ;;  %v3739_v41 = vsel %vm6437_vm4, %v3734_v30, %v3738_v18  ;;  %v7282_v16 = vsel %vm6564_vm7, %v1422_v49, %v1423_v15  ;;  %v7294_v3 = vsel %vm6564_vm7, %v5024_v7, %v1427_v2  ;;  %v1429_v50 = vrot.slane %v1427_v2, 4 }
  0xb7   : > { %v3749_v8 = vsel %vm6437_vm4, %v3744_v35, %v3748_v45  ;;  %v5040_v37 = vcombine.low %v7257_v23, %v7282_v16  ;;  %v3753_v48 = vrot.slane %v3751_v39, 4  ;;  %v3756_v56 = vrot.slane %v3754_v53, 5  ;;  %v6284_v53 = vld [vmem:[%s6380_s25 + $0xcc] sm:$0xff]  }
  0xb8   : > { %v7299_v18 = vcombine.low %v3739_v41, %v3749_v8  ;;  %v3760_v44 = vshll.u32 %v7260_v34, 16  ;;  %5869 = vmatmul.mubr.msk.bf16.gmra.mrb[24].mxu0 %vm292_vm1, %v6282_v58  ;;  %v7305_v45 = vsel %vm6564_vm7, %v1429_v50, %v1430_v31  ;;  %v3764_v11 = vshrl.u32 %v7260_v34, 16  ;;  %v1281_v58 = vld [vmem:[%s6380_s25 + $0xa8] sm:$0xe] }
  0xb9   : > { %v3770_v5 = vshll.u32 %v7272_v25, 16  ;;  %v3775_v0 = vshrl.u32 %v5345_v17, 16  ;;  %5872 = vmatprep.mubr.msk.bf16.mxu0 %vm292_vm1, %v6283_v59  ;;  %v5041_v54 = vcombine.low %v7294_v3, %v7305_v45  ;;  %v3757_v15 = vor.u32 %v3756_v56, %v3753_v48  ;;  %v1282_v56 = vld [vmem:[%s6380_s25 + $0xb4] sm:$0xe] }
  0xba   : > { %v3762_v7 = vrot.slane %v3760_v44, 5  ;;  %v3778_v61 = vshll.u32 %v5345_v17, 16  ;;  %v3766_v30 = vrot.slane %v3764_v11, 4  ;;  %v3784_v2 = vshll.u32 %v7286_v51, 16  ;;  %v5348_v11 = vld [vmem:[%s6380_s25 + $0x48] sm:$0xf] }
  0xbb   : > { %v3772_v49 = vrot.slane %v3770_v5, 5  ;;  %v3777_v35 = vrot.slane %v3775_v0, 4  ;;  %v3758_v31 = vrot.slane %v3757_v15, 4  ;;  %v3788_v39 = vshrl.u32 %v7286_v51, 16 }
  0xbc   : > { %v3780_v41 = vrot.slane %v3778_v61, 5  ;;  %v3794_v59 = vshll.u32 %v7297_v43, 16  ;;  %v3767_v17 = vor.u32 %v3766_v30, %v3762_v7  ;;  %v3786_v8 = vrot.slane %v3784_v2, 5  ;;  %v7336_v61 = vld [vmem:[%s6380_s25 + $0x4c] sm:$0xf] }
  0xbd   : > { %5721 = vmatmul.mubr.msk.bf16.gmra.mrb[12].mxu1 %vm292_vm1, %v5035_v22  ;;  %v5025_v50 = vrot.slane %v1281_v58, 9  ;;  %v1434_v48 = vrot.slane %v6989_v52, 5  ;;  %v3763_v44 = vsel %vm6437_vm4, %v3758_v31, %v3762_v7  ;;  %v3790_v14 = vrot.slane %v3788_v39, 4 }
  0xbe   : > { %5724 = vmatprep.mubr.msk.bf16.mxu1 %vm292_vm1, %v5036_v33  ;;  %v3781_v32 = vor.u32 %v3780_v41, %v3777_v35  ;;  %v3796_v22 = vrot.slane %v3794_v59, 5  ;;  %v3768_v5 = vrot.slane %v3767_v17, 4  ;;  %v1437_v52 = vrot.slane %v7000_v38, 5  ;;  %v7358_v59 = vld [vmem:[%s6380_s25 + $0x58] sm:$0xf] }
  0xbf   : > { %v7332_v0 = vsel %vm6564_vm7, %v5025_v50, %v1434_v48  ;;  %v1436_v15 = vrot.slane %v1434_v48, 4  ;;  %v3791_v33 = vor.u32 %v3790_v14, %v3786_v8  ;;  %v5026_v7 = vrot.slane %v1282_v56, 9  ;;  %v7365_v48 = vld [vmem:[%s6380_s25 + $0x5c] sm:$0x1] }
  0xc0   : > { %v3782_v13 = vrot.slane %v3781_v32, 4  ;;  %v1441_v58 = vrot.slane %v7009_v28, 5  ;;  %5873 = vmatmul.mubr.msk.bf16.gmra.mrb[28].mxu0 %vm292_vm1, %v6284_v53  ;;  %v3773_v30 = vsel %vm6437_vm4, %v3768_v5, %v3772_v49  ;;  %v1444_v35 = vrot.slane %v7022_v46, 5  ;;  %v5351_v49 = vld [vmem:[%s6380_s25 + $0x54] sm:$0xf] }
  0xc1   : > { %v7347_v38 = vsel %vm6564_vm7, %v1436_v15, %v1437_v52  ;;  %v3799_v2 = vshrl.u32 %v5348_v11, 16  ;;  %5878 = vmatprep.mubr.msk.bf16.mxu0 %vm292_vm1, %v7267_v60  ;;  %v5387_v31 = vcombine.low %v3763_v44, %v3773_v30  ;;  %v3792_v41 = vrot.slane %v3791_v33, 4  ;;  %v5354_v60 = vld [vmem:[%s6380_s25 + $0x60] sm:$0xf]  ;;  %v7392_v30 = vld [vmem:[%s6380_s25 + $0x68] sm:$0x1] }
  0xc2   : > { %v3787_v28 = vsel %vm6437_vm4, %v3782_v13, %v3786_v8  ;;  %v5042_v39 = vcombine.low %v7332_v0, %v7347_v38  ;;  %v7362_v53 = vsel %vm6564_vm7, %v5026_v7, %v1441_v58  ;;  %v1443_v46 = vrot.slane %v1441_v58, 4  ;;  %v7388_v13 = vld [vmem:[%s6380_s25 + $0x64] sm:$0xf] }
  0xc3   : > { %v3801_v17 = vrot.slane %v3799_v2, 4  ;;  %v3802_v50 = vshll.u32 %v5348_v11, 16  ;;  %v3797_v8 = vsel %vm6437_vm4, %v3792_v41, %v3796_v22  ;;  %v3808_v56 = vshll.u32 %v7336_v61, 16 }
  0xc4   : > { %v3812_v44 = vshrl.u32 %v7336_v61, 16  ;;  %v3818_v32 = vshll.u32 %v7339_v55, 16  ;;  %v5388_v14 = vcombine.low %v3787_v28, %v3797_v8  ;;  %v7379_v11 = vsel %vm6564_vm7, %v1443_v46, %v1444_v35 }
  0xc5   : > { %5725 = vmatmul.mubr.msk.bf16.gmra.mrb[16].mxu1 %vm292_vm1, %v5037_v29  ;;  %v3804_v5 = vrot.slane %v3802_v50, 5  ;;  %v3823_v15 = vshrl.u32 %v5351_v49, 16  ;;  %v5043_v22 = vcombine.low %v7362_v53, %v7379_v11  ;;  %v3810_v52 = vrot.slane %v3808_v56, 5  ;;  %v7496_v11 = vld [vmem:[%s6380_s25 + $0xa4] sm:$0x1] }
  0xc6   : > { %5728 = vmatprep.mubr.msk.bf16.mxu1 %vm292_vm1, %v5038_v10  ;;  %v3814_v62 = vrot.slane %v3812_v44, 4  ;;  %v3820_v24 = vrot.slane %v3818_v32, 5  ;;  %v3826_v7 = vshll.u32 %v5351_v49, 16  ;;  %v3832_v58 = vshll.u32 %v7358_v59, 16 }
  0xc7   : > { %v3805_v29 = vor.u32 %v3804_v5, %v3801_v17  ;;  %v3825_v33 = vrot.slane %v3823_v15, 4  ;;  %v3836_v57 = vshrl.u32 %v7358_v59, 16  ;;  %v3842_v20 = vshll.u32 %v7365_v48, 16  ;;  %v5357_v5 = vld [vmem:[%s6380_s25 + $0x6c] sm:$0xf] }
  0xc8   : > { %v3815_v35 = vor.u32 %v3814_v62, %v3810_v52  ;;  %v3847_v10 = vshrl.u32 %v5354_v60, 16  ;;  %5879 = vmatmul.mubr.msk.bf16.vlgmr.msra.gmra.mrb[0].mxu0 %vm292_vm1, %v7299_v18  ;;  %v3828_v28 = vrot.slane %v3826_v7, 5  ;;  %v3834_v41 = vrot.slane %v3832_v58, 5  ;;  %v7409_v62 = vld [vmem:[%s6380_s25 + $0x70] sm:$0xf] }
  0xc9   : > { %v3806_v2 = vrot.slane %v3805_v29, 4  ;;  %v3850_v46 = vshll.u32 %v5354_v60, 16  ;;  %5911 = vmatpush3.bf16.msra.mxu0 %v7242_v27  ;;  %5882 = vmatprep.mubr.msk.bf16.mxu0 %vm292_vm1, %v5387_v31  ;;  %v3838_v17 = vrot.slane %v3836_v57, 4  ;;  %v3844_v50 = vrot.slane %v3842_v20, 5  ;;  %v7420_v57 = vld [vmem:[%s6380_s25 + $0x74] sm:$0x1] }
  0xca   : > { %v3816_v49 = vrot.slane %v3815_v35, 4  ;;  %v3849_v8 = vrot.slane %v3847_v10, 4  ;;  %v3829_v44 = vor.u32 %v3828_v28, %v3825_v33  ;;  %v3856_v18 = vshll.u32 %v7388_v13, 16 }
  0xcb   : > { %v3811_v56 = vsel %vm6437_vm4, %v3806_v2, %v3810_v52  ;;  %v3852_v32 = vrot.slane %v3850_v46, 5  ;;  %v3839_v15 = vor.u32 %v3838_v17, %v3834_v41  ;;  %v3860_v27 = vshrl.u32 %v7388_v13, 16  ;;  %v5360_v2 = vld [vmem:[%s6380_s25 + $0x78] sm:$0xf]  ;;  %v7430_v46 = vld [vmem:[%s6380_s25 + $0x7c] sm:$0xf] }
  0xcc   : > { %v3821_v60 = vsel %vm6437_vm4, %v3816_v49, %v3820_v24  ;;  %v3866_v31 = vshll.u32 %v7392_v30, 16  ;;  %v3830_v29 = vrot.slane %v3829_v44, 4  ;;  %v3858_v7 = vrot.slane %v3856_v18, 5 }
  0xcd   : > { %5729 = vmatmul.mubr.msk.bf16.gmra.mrb[20].mxu1 %vm292_vm1, %v5039_v6  ;;  %v5389_v52 = vcombine.low %v3811_v56, %v3821_v60  ;;  %v3853_v33 = vor.u32 %v3852_v32, %v3849_v8  ;;  %v3840_v24 = vrot.slane %v3839_v15, 4  ;;  %v3862_v58 = vrot.slane %v3860_v27, 4  ;;  %v7438_v32 = vld [vmem:[%s6380_s25 + $0x80] sm:$0x1]  ;;  %v5363_v27 = vld [vmem:[%s6380_s25 + $0x84] sm:$0xf] }
  0xce   : > { %5732 = vmatprep.mubr.msk.bf16.mxu1 %vm292_vm1, %v5040_v37  ;;  %v3868_v35 = vrot.slane %v3866_v31, 5  ;;  %v3871_v20 = vshrl.u32 %v5357_v5, 16  ;;  %v3835_v19 = vsel %vm6437_vm4, %v3830_v29, %v3834_v41  ;;  %v3874_v6 = vshll.u32 %v5357_v5, 16 }
  0xcf   : > { %v3854_v21 = vrot.slane %v3853_v33, 4  ;;  %v3880_v10 = vshll.u32 %v7409_v62, 16  ;;  %v3845_v23 = vsel %vm6437_vm4, %v3840_v24, %v3844_v50  ;;  %v3863_v16 = vor.u32 %v3862_v58, %v3858_v7 }
  0xd0   : > { %v3873_v37 = vrot.slane %v3871_v20, 4  ;;  %v3884_v28 = vshrl.u32 %v7409_v62, 16  ;;  %5883 = vmatmul.mubr.msk.bf16.gmra.mrb[4].mxu0 %vm292_vm1, %v5388_v14  ;;  %v5390_v49 = vcombine.low %v3835_v19, %v3845_v23  ;;  %v3876_v17 = vrot.slane %v3874_v6, 5 }
  0xd1   : > { %v3859_v41 = vsel %vm6437_vm4, %v3854_v21, %v3858_v7  ;;  %v3882_v8 = vrot.slane %v3880_v10, 5  ;;  %5886 = vmatprep.mubr.msk.bf16.mxu0 %vm292_vm1, %v5389_v52  ;;  %v3864_v56 = vrot.slane %v3863_v16, 4  ;;  %v3890_v44 = vshll.u32 %v7420_v57, 16  ;;  %v7446_v7 = vld [vmem:[%s6380_s25 + $0x88] sm:$0xf] }
  0xd2   : > { %v3886_v50 = vrot.slane %v3884_v28, 4  ;;  %v3895_v18 = vshrl.u32 %v5360_v2, 16  ;;  %v3877_v5 = vor.u32 %v3876_v17, %v3873_v37  ;;  %v3898_v60 = vshll.u32 %v5360_v2, 16  ;;  %v5366_v16 = vld [vmem:[%s6380_s25 + $0x90] sm:$0xf] }
  0xd3   : > { %v3904_v14 = vshll.u32 %v7430_v46, 16  ;;  %v3908_v15 = vshrl.u32 %v7430_v46, 16  ;;  %v3869_v31 = vsel %vm6437_vm4, %v3864_v56, %v3868_v35  ;;  %v3892_v52 = vrot.slane %v3890_v44, 5  ;;  %v7467_v28 = vld [vmem:[%s6380_s25 + $0x94] sm:$0xf] }
  0xd4   : > { %v3887_v29 = vor.u32 %v3886_v50, %v3882_v8  ;;  %v3897_v33 = vrot.slane %v3895_v18, 4  ;;  %v5391_v24 = vcombine.low %v3859_v41, %v3869_v31  ;;  %v3878_v58 = vrot.slane %v3877_v5, 4  ;;  %v6285_v50 = vld [vmem:[%s6380_s25 + $0xc] sm:$0xff]  }
  0xd5   : > { %5733 = vmatmul.mubr.msk.bf16.gmra.mrb[24].mxu1 %vm292_vm1, %v5041_v54  ;;  %v3900_v20 = vrot.slane %v3898_v60, 5  ;;  %v3906_v19 = vrot.slane %v3904_v14, 5  ;;  %v3910_v21 = vrot.slane %v3908_v15, 4  ;;  %v3914_v6 = vshll.u32 %v7438_v32, 16  ;;  %v7460_v54 = vld [vmem:[%s6380_s25 + $0x8c] sm:$0x1] }
  0xd6   : > { %5736 = vmatprep.mubr.msk.bf16.mxu1 %vm292_vm1, %v5042_v39  ;;  %v3888_v35 = vrot.slane %v3887_v29, 4  ;;  %v3919_v10 = vshrl.u32 %v5363_v27, 16  ;;  %v3883_v3 = vsel %vm6437_vm4, %v3878_v58, %v3882_v8  ;;  %v3922_v2 = vshll.u32 %v5363_v27, 16  ;;  %v5369_v29 = vld [vmem:[%s6380_s25 + $0x9c] sm:$0xf] }
  0xd7   : > { %v3901_v45 = vor.u32 %v3900_v20, %v3897_v33  ;;  %v3928_v23 = vshll.u32 %v7446_v7, 16  ;;  %v3911_v38 = vor.u32 %v3910_v21, %v3906_v19  ;;  %v3916_v39 = vrot.slane %v3914_v6, 5  ;;  %v7484_v20 = vld [vmem:[%s6380_s25 + $0xa0] sm:$0xf] }
  0xd8   : > { %v3893_v0 = vsel %vm6437_vm4, %v3888_v35, %v3892_v52  ;;  %v3921_v37 = vrot.slane %v3919_v10, 4  ;;  %5887 = vmatmul.mubr.msk.bf16.gmra.mrb[8].mxu0 %vm292_vm1, %v5390_v49  ;;  %v3924_v8 = vrot.slane %v3922_v2, 5  ;;  %v3932_v18 = vshrl.u32 %v7446_v7, 16  ;;  %v7477_v49 = vld [vmem:[%s6380_s25 + $0x98] sm:$0x1] }
  0xd9   : > { %v5392_v41 = vcombine.low %v3883_v3, %v3893_v0  ;;  %v3902_v17 = vrot.slane %v3901_v45, 4  ;;  %v3930_v56 = vrot.slane %v3928_v23, 5  ;;  %5890 = vmatprep.mubr.msk.bf16.mxu0 %vm292_vm1, %v5391_v24  ;;  %v3912_v44 = vrot.slane %v3911_v38, 4  ;;  %v5372_v0 = vld [vmem:[%s6380_s25 + $0xa8] sm:$0xf] }
  0xda   : > { %v3938_v5 = vshll.u32 %v7460_v54, 16  ;;  %v3943_v60 = vshrl.u32 %v5366_v16, 16  ;;  %v3925_v15 = vor.u32 %v3924_v8, %v3921_v37  ;;  %v3946_v27 = vshll.u32 %v5366_v16, 16  ;;  %v6286_v8 = vld [vmem:[%s6380_s25 + $0x18] sm:$0xff]  }
  0xdb   : > { %v3907_v14 = vsel %vm6437_vm4, %v3902_v17, %v3906_v19  ;;  %v3952_v31 = vshll.u32 %v7467_v28, 16  ;;  %v3917_v52 = vsel %vm6437_vm4, %v3912_v44, %v3916_v39  ;;  %v3934_v33 = vrot.slane %v3932_v18, 4 }
  0xdc   : > { %v3940_v24 = vrot.slane %v3938_v5, 5  ;;  %v3945_v58 = vrot.slane %v3943_v60, 4  ;;  %v5393_v19 = vcombine.low %v3907_v14, %v3917_v52  ;;  %v3926_v35 = vrot.slane %v3925_v15, 4  ;;  %v6287_v5 = vld [vmem:[%s6380_s25 + $0x24] sm:$0xff]  }
  0xdd   : > { %5737 = vmatmul.mubr.msk.bf16.gmra.mrb[28].mxu1 %vm292_vm1, %v5043_v22  ;;  %v3948_v21 = vrot.slane %v3946_v27, 5  ;;  %v3954_v6 = vrot.slane %v3952_v31, 5  ;;  %v3935_v10 = vor.u32 %v3934_v33, %v3930_v56  ;;  %v3956_v3 = vshrl.u32 %v7467_v28, 16  ;;  %v7509_v27 = vld [vmem:[%s6380_s25 + $0xac] sm:$0xf] }
  0xde   : > { %5742 = vmatprep.mubr.msk.bf16.mxu1 %vm292_vm1, %v6285_v50  ;;  %v3962_v45 = vshll.u32 %v7477_v49, 16  ;;  %v3967_v2 = vshrl.u32 %v5369_v29, 16  ;;  %v3931_v23 = vsel %vm6437_vm4, %v3926_v35, %v3930_v56  ;;  %v3970_v22 = vshll.u32 %v5369_v29, 16  ;;  %v5375_v35 = vld [vmem:[%s6380_s25 + $0xb4] sm:$0xf] }
  0xdf   : > { %v3949_v53 = vor.u32 %v3948_v21, %v3945_v58  ;;  %v3976_v16 = vshll.u32 %v7484_v20, 16  ;;  %v3936_v38 = vrot.slane %v3935_v10, 4  ;;  %v3958_v39 = vrot.slane %v3956_v3, 4  ;;  %v7514_v58 = vld [vmem:[%s6380_s25 + $0xb0] sm:$0x1] }
  0xe0   : > { %v3964_v37 = vrot.slane %v3962_v45, 5  ;;  %v3969_v17 = vrot.slane %v3967_v2, 4  ;;  %5891 = vmatmul.mubr.msk.bf16.gmra.mrb[12].mxu0 %vm292_vm1, %v5392_v41  ;;  %v3972_v56 = vrot.slane %v3970_v22, 5  ;;  %v3980_v18 = vshrl.u32 %v7484_v20, 16 }
  0xe1   : > { %v3950_v50 = vrot.slane %v3949_v53, 4  ;;  %v3978_v44 = vrot.slane %v3976_v16, 5  ;;  %5894 = vmatprep.mubr.msk.bf16.mxu0 %vm292_vm1, %v5393_v19  ;;  %v3941_v60 = vsel %vm6437_vm4, %v3936_v38, %v3940_v24  ;;  %v3959_v14 = vor.u32 %v3958_v39, %v3954_v6  ;;  %v7526_v16 = vld [vmem:[%s6380_s25 + $0xb8] sm:$0xf] }
  0xe2   : > { %v3986_v15 = vshll.u32 %v7496_v11, 16  ;;  %v3991_v31 = vshrl.u32 %v5372_v0, 16  ;;  %v5394_v41 = vcombine.low %v3931_v23, %v3941_v60  ;;  %v3973_v52 = vor.u32 %v3972_v56, %v3969_v17  ;;  %v6288_v60 = vld [vmem:[%s6380_s25 + $0x30] sm:$0xff]  }
  0xe3   : > { %v3955_v29 = vsel %vm6437_vm4, %v3950_v50, %v3954_v6  ;;  %v3982_v33 = vrot.slane %v3980_v18, 4  ;;  %v3960_v19 = vrot.slane %v3959_v14, 4  ;;  %v3994_v24 = vshll.u32 %v5372_v0, 16  ;;  %v7531_v50 = vld [vmem:[%s6380_s25 + $0xbc] sm:$0x1] }
  0xe4   : > { %v3988_v21 = vrot.slane %v3986_v15, 5  ;;  %v3993_v10 = vrot.slane %v3991_v31, 4  ;;  %v3974_v3 = vrot.slane %v3973_v52, 4  ;;  %v4000_v2 = vshll.u32 %v7509_v27, 16 }
  0xe5   : > { %5743 = vmatmul.mubr.msk.bf16.vlgmr.msra.gmra.mrb[0].mxu1 %vm292_vm1, %v6286_v8  ;;  %v3983_v45 = vor.u32 %v3982_v33, %v3978_v44  ;;  %v4004_v23 = vshrl.u32 %v7509_v27, 16  ;;  %v3965_v6 = vsel %vm6437_vm4, %v3960_v19, %v3964_v37  ;;  %v3996_v53 = vrot.slane %v3994_v24, 5  ;;  %v7544_v24 = vld [vmem:[%s6380_s25 + $0xc4] sm:$0xf] }
  0xe6   : > { %5746 = vmatprep.mubr.msk.bf16.mxu1 %vm292_vm1, %v6287_v5  ;;  %5945 = vmatpush3.bf16.msra.mxu1 %v6368_v4  ;;  %v4010_v22 = vshll.u32 %v7514_v58, 16  ;;  %v4015_v0 = vshrl.u32 %v5375_v35, 16  ;;  %v5395_v38 = vcombine.low %v3955_v29, %v3965_v6  ;;  %v3979_v39 = vsel %vm6437_vm4, %v3974_v3, %v3978_v44  ;;  %v5378_v5 = vld [vmem:[%s6380_s25 + $0xc0] sm:$0xf] }
  0xe7   : > { %v3984_v17 = vrot.slane %v3983_v45, 4  ;;  %v4002_v8 = vrot.slane %v4000_v2, 5  ;;  %v3997_v4 = vor.u32 %v3996_v53, %v3993_v10  ;;  %v4006_v56 = vrot.slane %v4004_v23, 4  ;;  %v6289_v29 = vld [vmem:[%s6380_s25 + $0x3c] sm:$0xff]  }
  0xe8   : > { %v4012_v18 = vrot.slane %v4010_v22, 5  ;;  %v4017_v37 = vrot.slane %v4015_v0, 4  ;;  %5895 = vmatmul.mubr.msk.bf16.gmra.mrb[16].mxu0 %vm292_vm1, %v5394_v41  ;;  %v4018_v15 = vshll.u32 %v5375_v35, 16  ;;  %v4024_v44 = vshll.u32 %v7526_v16, 16 }
  0xe9   : > { %v3989_v14 = vsel %vm6437_vm4, %v3984_v17, %v3988_v21  ;;  %v4028_v31 = vshrl.u32 %v7526_v16, 16  ;;  %5898 = vmatprep.mubr.msk.bf16.mxu0 %vm292_vm1, %v5395_v38  ;;  %v3998_v33 = vrot.slane %v3997_v4, 4  ;;  %v4007_v19 = vor.u32 %v4006_v56, %v4002_v8  ;;  %v7547_v21 = vld [vmem:[%s6380_s25 + $0xc8] sm:$0x1]  ;;  %v5381_v17 = vld [vmem:[%s6380_s25 + $0xcc] sm:$0xf] }
  0xea   : > { %v5396_v52 = vcombine.low %v3979_v39, %v3989_v14  ;;  %v4034_v10 = vshll.u32 %v7531_v50, 16  ;;  %v4020_v41 = vrot.slane %v4018_v15, 5  ;;  %v4026_v3 = vrot.slane %v4024_v44, 5  ;;  %v7560_v14 = vld [vmem:[%s6380_s25 + $0xd0] sm:$0xf] }
  0xeb   : > { %v4030_v45 = vrot.slane %v4028_v31, 4  ;;  %v4039_v35 = vshrl.u32 %v5378_v5, 16  ;;  %v4003_v2 = vsel %vm6437_vm4, %v3998_v33, %v4002_v8  ;;  %v4008_v23 = vrot.slane %v4007_v19, 4 }
  0xec   : > { %v4036_v6 = vrot.slane %v4034_v10, 5  ;;  %v4042_v53 = vshll.u32 %v5378_v5, 16  ;;  %v4021_v22 = vor.u32 %v4020_v41, %v4017_v37  ;;  %v4048_v39 = vshll.u32 %v7544_v24, 16 }
  0xed   : > { %5747 = vmatmul.mubr.msk.bf16.gmra.mrb[4].mxu1 %vm292_vm1, %v6288_v60  ;;  %v4031_v0 = vor.u32 %v4030_v45, %v4026_v3  ;;  %v4041_v38 = vrot.slane %v4039_v35, 4  ;;  %v4013_v4 = vsel %vm6437_vm4, %v4008_v23, %v4012_v18  ;;  %v4052_v8 = vshrl.u32 %v7544_v24, 16  ;;  %v6290_v18 = vld [vmem:[%s6380_s25 + $0x48] sm:$0xff]   ;;  %v5417_v23 = vld [vmem:[%s6380_s25 + $0x18] sm:$0xe] }
  0xee   : > { %5750 = vmatprep.mubr.msk.bf16.mxu1 %vm292_vm1, %v6289_v29  ;;  %v4044_v56 = vrot.slane %v4042_v53, 5  ;;  %v4058_v5 = vshll.u32 %v7547_v21, 16  ;;  %v5397_v37 = vcombine.low %v4003_v2, %v4013_v4  ;;  %v4022_v60 = vrot.slane %v4021_v22, 4  ;;  %v7563_v29 = vld [vmem:[%s6380_s25 + $0xd4] sm:$0x1] }
  0xef   : > { %v4032_v15 = vrot.slane %v4031_v0, 4  ;;  %v4050_v44 = vrot.slane %v4048_v39, 5  ;;  %v4054_v33 = vrot.slane %v4052_v8, 4  ;;  %v4063_v10 = vshrl.u32 %v5381_v17, 16  ;;  %v6291_v53 = vld [vmem:[%s6380_s25 + $0x54] sm:$0xff]  }
  0xf0   : > { %v4045_v31 = vor.u32 %v4044_v56, %v4041_v38  ;;  %v4060_v19 = vrot.slane %v4058_v5, 5  ;;  %5899 = vmatmul.mubr.msk.bf16.gmra.mrb[20].mxu0 %vm292_vm1, %v5396_v52  ;;  %v4027_v41 = vsel %vm6437_vm4, %v4022_v60, %v4026_v3  ;;  %v4066_v35 = vshll.u32 %v5381_v17, 16  ;;  %v5418_v8 = vld [vmem:[%s6380_s25 + $0x24] sm:$0xe] }
  0xf1   : > { %v4037_v45 = vsel %vm6437_vm4, %v4032_v15, %v4036_v6  ;;  %v4072_v2 = vshll.u32 %v7560_v14, 16  ;;  %5902 = vmatprep.mubr.msk.bf16.mxu0 %vm292_vm1, %v5397_v37  ;;  %v4055_v38 = vor.u32 %v4054_v33, %v4050_v44  ;;  %v4065_v39 = vrot.slane %v4063_v10, 4  ;;  %v5419_v10 = vld [vmem:[%s6380_s25 + $0x30] sm:$0xe] }
  0xf2   : > { %v5398_v22 = vcombine.low %v4027_v41, %v4037_v45  ;;  %v4046_v0 = vrot.slane %v4045_v31, 4  ;;  %v4068_v52 = vrot.slane %v4066_v35, 5  ;;  %v4076_v56 = vshrl.u32 %v7560_v14, 16 }
  0xf3   : > { %v4074_v4 = vrot.slane %v4072_v2, 5  ;;  %v4082_v3 = vshll.u32 %v7563_v29, 16  ;;  %v4056_v17 = vrot.slane %v4055_v38, 4  ;;  %v5433_v5 = vrot.slane %v5417_v23, 9 }
  0xf4   : > { %v4051_v6 = vsel %vm6437_vm4, %v4046_v0, %v4050_v44  ;;  %v4446_v60 = vrot.slane %v7170_v9, 5  ;;  %v4069_v37 = vor.u32 %v4068_v52, %v4065_v39  ;;  %v4078_v15 = vrot.slane %v4076_v56, 4  ;;  %v5420_v39 = vld [vmem:[%s6380_s25 + $0x3c] sm:$0xe] }
  0xf5   : > { %5751 = vmatmul.mubr.msk.bf16.gmra.mrb[8].mxu1 %vm292_vm1, %v6290_v18  ;;  %v4084_v31 = vrot.slane %v4082_v3, 5  ;;  %v4449_v33 = vrot.slane %v7183_v36, 5  ;;  %v4061_v41 = vsel %vm6437_vm4, %v4056_v17, %v4060_v19  ;;  %v5434_v9 = vrot.slane %v5418_v8, 9  ;;  %v6292_v3 = vld [vmem:[%s6380_s25 + $0x60] sm:$0xff]   ;;  %v5421_v8 = vld [vmem:[%s6380_s25 + $0x48] sm:$0xe] }
  0xf6   : > { %5754 = vmatprep.mubr.msk.bf16.mxu1 %vm292_vm1, %v6291_v53  ;;  %v4447_v44 = vsel %vm6564_vm7, %v5433_v5, %v4446_v60  ;;  %v4448_v45 = vrot.slane %v4446_v60, 4  ;;  %v5399_v18 = vcombine.low %v4051_v6, %v4061_v41  ;;  %v4070_v35 = vrot.slane %v4069_v37, 4  ;;  %v6293_v6 = vld [vmem:[%s6380_s25 + $0x6c] sm:$0xff]  }
  0xf7   : > { %v4079_v2 = vor.u32 %v4078_v15, %v4074_v4  ;;  %v4453_v23 = vrot.slane %v7219_v40, 5  ;;  %v8005_v36 = vshll.u32 %v6757_v12, 16  ;;  %v5435_v19 = vrot.slane %v5419_v10, 9  ;;  %v5422_v15 = vld [vmem:[%s6380_s25 + $0x54] sm:$0xe] }
  0xf8   : > { %v4450_v53 = vsel %vm6564_vm7, %v4448_v45, %v4449_v33  ;;  %v4460_v38 = vrot.slane %v7260_v34, 5  ;;  %v8006_v52 = vor.u32 %v6769_v1, %v6759_v63  ;;  %5903 = vmatmul.mubr.msk.bf16.gmra.mrb[24].mxu0 %vm292_vm1, %v5398_v22  ;;  %v4456_v12 = vrot.slane %v7222_v26, 5 }
  0xf9   : > { %v7592_v0 = vrot.slane %v8005_v36, 5  ;;  %v4080_v40 = vrot.slane %v4079_v2, 4  ;;  %5906 = vmatprep.mubr.msk.bf16.mxu0 %vm292_vm1, %v5399_v18  ;;  %v4075_v34 = vsel %vm6437_vm4, %v4070_v35, %v4074_v4  ;;  %v5450_v17 = vcombine.low %v4447_v44, %v4450_v53  ;;  %v5149_v44 = vld [vmem:[%s6380_s25 + $0x6c] sm:$0xf] }
  0xfa   : > { %v7601_v56 = vrot.slane %v8006_v52, 4  ;;  %v7613_v1 = vsel %vm6564_vm7, %v5434_v9, %v4453_v23  ;;  %v4455_v5 = vrot.slane %v4453_v23, 4  ;;  %v5436_v60 = vrot.slane %v5420_v39, 9  ;;  %v6294_v39 = vld [vmem:[%s6380_s25 + $0x78] sm:$0xff]  }
  0xfb   : > { %v4085_v22 = vsel %vm6437_vm4, %v4080_v40, %v4084_v31  ;;  %v4467_v26 = vrot.slane %v7286_v51, 5  ;;  %v4470_v37 = vrot.slane %v7297_v43, 5  ;;  %v7622_v33 = vsel %vm6564_vm7, %v5435_v19, %v4460_v38  ;;  %v5152_v19 = vld [vmem:[%s6380_s25 + $0x78] sm:$0xf]  ;;  %v6303_v40 = vld [vmem:[%s6380_s25 + $0x70] sm:$0xf] }
  0xfc   : > { %v4462_v4 = vrot.slane %v4460_v38, 4  ;;  %v4463_v10 = vrot.slane %v7272_v25, 5  ;;  %v5437_v41 = vrot.slane %v5421_v8, 9  ;;  %v5400_v45 = vcombine.low %v4075_v34, %v4085_v22  ;;  %v6295_v8 = vld [vmem:[%s6380_s25 + $0x84] sm:$0xff]  }
  0xfd   : > { %5755 = vmatmul.mubr.msk.bf16.gmra.mrb[12].mxu1 %vm292_vm1, %v6292_v3  ;;  %v4457_v31 = vsel %vm6564_vm7, %v4455_v5, %v4456_v12  ;;  %v7631_v51 = vsel %vm6564_vm7, %v5436_v60, %v4467_v26  ;;  %v4469_v43 = vrot.slane %v4467_v26, 4  ;;  %v4474_v9 = vrot.slane %v7336_v61, 5  ;;  %v5423_v60 = vld [vmem:[%s6380_s25 + $0x60] sm:$0xe] }
  0xfe   : > { %5758 = vmatprep.mubr.msk.bf16.mxu1 %vm292_vm1, %v6293_v6  ;;  %v4477_v25 = vrot.slane %v7339_v55, 5  ;;  %v5438_v18 = vrot.slane %v5422_v15, 9  ;;  %v4481_v35 = vrot.slane %v7358_v59, 5  ;;  %v4484_v23 = vrot.slane %v7365_v48, 5 }
  0xff   : > { %v7639_v2 = vsel %vm6564_vm7, %v4469_v43, %v4470_v37  ;;  %v2340_v36 = vshrl.u32 %v5149_v44, 16  ;;  %v2343_v53 = vshll.u32 %v5149_v44, 16  ;;  %v4464_v38 = vsel %vm6564_vm7, %v4462_v4, %v4463_v10 }
 0x100   : > { %v5453_v61 = vcombine.low %v7631_v51, %v7639_v2  ;;  %v7649_v55 = vsel %vm6564_vm7, %v5437_v41, %v4474_v9  ;;  %v4476_v59 = vrot.slane %v4474_v9, 4  ;;  %5907 = vmatmul.mubr.msk.bf16.gmra.mrb[28].mxu0 %vm292_vm1, %v5400_v45  ;;  %v7655_v48 = vsel %vm6564_vm7, %v5438_v18, %v4481_v35  ;;  %v6304_v45 = vld [vmem:[%s6380_s25 + $0x74] sm:$0x1] }
 0x101   : > { %v4483_v52 = vrot.slane %v4481_v35, 4  ;;  %v2342_v3 = vrot.slane %v2340_v36, 4  ;;  %v2349_v12 = vshll.u32 %v6303_v40, 16  ;;  %5912 = vmatprep.mubr.msk.bf16.mxu0 %vm292_vm1, %v5450_v17  ;;  %v2345_v34 = vrot.slane %v2343_v53, 5  ;;  %v5424_v17 = vld [vmem:[%s6380_s25 + $0x6c] sm:$0xe] }
 0x102   : > { %v7662_v6 = vsel %vm6564_vm7, %v4476_v59, %v4477_v25  ;;  %v2353_v5 = vshrl.u32 %v6303_v40, 16  ;;  %v2364_v22 = vshrl.u32 %v5152_v19, 16  ;;  %v5451_v26 = vcombine.low %v7613_v1, %v4457_v31  ;;  %v5155_v25 = vld [vmem:[%s6380_s25 + $0x84] sm:$0xf] }
 0x103   : > { %v5452_v37 = vcombine.low %v7622_v33, %v4464_v38  ;;  %v5454_v15 = vcombine.low %v7649_v55, %v7662_v6  ;;  %v7671_v4 = vsel %vm6564_vm7, %v4483_v52, %v4484_v23  ;;  %v7676_v41 = vrot.slane %v2349_v12, 5 }
 0x104   : > { %v5455_v10 = vcombine.low %v7655_v48, %v7671_v4  ;;  %v2355_v44 = vrot.slane %v2353_v5, 4  ;;  %v2359_v43 = vshll.u32 %v6304_v45, 16  ;;  %v2366_v1 = vrot.slane %v2364_v22, 4  ;;  %v5158_v22 = vld [vmem:[%s6380_s25 + $0x90] sm:$0xf] }
 0x105   : > { %5759 = vmatmul.mubr.msk.bf16.gmra.mrb[16].mxu1 %vm292_vm1, %v6294_v39  ;;  %v2367_v33 = vshll.u32 %v5152_v19, 16  ;;  %v2386_v31 = vsel %vm6437_vm4, %v7601_v56, %v7592_v0  ;;  %v5439_v9 = vrot.slane %v5423_v60, 9  ;;  %v2346_v18 = vor.u32 %v2345_v34, %v2342_v3  ;;  %v6297_v3 = vld [vmem:[%s6380_s25 + $0x9c] sm:$0xff]   ;;  %v6305_v34 = vld [vmem:[%s6380_s25 + $0x88] sm:$0xf] }
 0x106   : > { %5762 = vmatprep.mubr.msk.bf16.mxu1 %vm292_vm1, %v6295_v8  ;;  %v4488_v35 = vrot.slane %v7388_v13, 5  ;;  %v4491_v23 = vrot.slane %v7392_v30, 5  ;;  %v5440_v36 = vrot.slane %v5424_v17, 9  ;;  %v4495_v19 = vrot.slane %v7409_v62, 5  ;;  %v6296_v13 = vld [vmem:[%s6380_s25 + $0x90] sm:$0xff]  }
 0x107   : > { %v2369_v53 = vrot.slane %v2367_v33, 5  ;;  %v4498_v38 = vrot.slane %v7420_v57, 5  ;;  %v2356_v59 = vor.u32 %v2355_v44, %v7676_v41  ;;  %v2388_v39 = vshrl.u32 %v5155_v25, 16 }
 0x108   : > { %v7693_v0 = vsel %vm6564_vm7, %v5439_v9, %v4488_v35  ;;  %v4490_v56 = vrot.slane %v4488_v35, 4  ;;  %5913 = vmatmul.mubr.msk.bf16.vlgmr.msra.gmra.mrb[0].mxu0 %vm292_vm1, %v5451_v26  ;;  %v7699_v52 = vsel %vm6564_vm7, %v5440_v36, %v4495_v19  ;;  %v4497_v62 = vrot.slane %v4495_v19, 4  ;;  %v6306_v36 = vld [vmem:[%s6380_s25 + $0x8c] sm:$0x1]  ;;  %v6307_v19 = vld [vmem:[%s6380_s25 + $0x94] sm:$0xf] }
 0x109   : > { %v2370_v30 = vor.u32 %v2369_v53, %v2366_v1  ;;  %v2391_v57 = vshll.u32 %v5155_v25, 16  ;;  %5916 = vmatprep.mubr.msk.bf16.mxu0 %vm292_vm1, %v5452_v37  ;;  %v7703_v40 = vrot.slane %v2346_v18, 4  ;;  %v7705_v12 = vrot.slane %v2359_v43, 5 }
 0x10a   : > { %v7709_v8 = vsel %vm6564_vm7, %v4490_v56, %v4491_v23  ;;  %v2397_v5 = vshll.u32 %v6305_v34, 16  ;;  %v7717_v17 = vsel %vm6564_vm7, %v4497_v62, %v4498_v38  ;;  %v2390_v37 = vrot.slane %v2388_v39, 4  ;;  %v5425_v56 = vld [vmem:[%s6380_s25 + $0x78] sm:$0xe] }
 0x10b   : > { %v2371_v60 = vrot.slane %v2370_v30, 4  ;;  %v5456_v26 = vcombine.low %v7693_v0, %v7709_v8  ;;  %v5457_v44 = vcombine.low %v7699_v52, %v7717_v17  ;;  %v2393_v45 = vrot.slane %v2391_v57, 5  ;;  %v6308_v57 = vld [vmem:[%s6380_s25 + $0x98] sm:$0x1]  ;;  %v6311_v0 = vld [vmem:[%s6380_s25 + $0xa4] sm:$0x1] }
 0x10c   : > { %v7721_v43 = vrot.slane %v2397_v5, 5  ;;  %v2401_v1 = vshrl.u32 %v6305_v34, 16  ;;  %v2357_v33 = vrot.slane %v2356_v59, 4  ;;  %v2412_v25 = vshrl.u32 %v5158_v22, 16 }
 0x10d   : > { %5763 = vmatmul.mubr.msk.bf16.gmra.mrb[20].mxu1 %vm292_vm1, %v6296_v13  ;;  %v2376_v9 = vsel %vm6437_vm4, %v2371_v60, %v6759_v63  ;;  %v2415_v18 = vshll.u32 %v5158_v22, 16  ;;  %v2407_v53 = vshll.u32 %v6306_v36, 16  ;;  %v2421_v38 = vshll.u32 %v6307_v19, 16 }
 0x10e   : > { %5766 = vmatprep.mubr.msk.bf16.mxu1 %vm292_vm1, %v6297_v3  ;;  %v7728_v35 = vcombine.low %v2376_v9, %v2386_v31  ;;  %v2403_v23 = vrot.slane %v2401_v1, 4  ;;  %v2394_v59 = vor.u32 %v2393_v45, %v2390_v37  ;;  %v2414_v39 = vrot.slane %v2412_v25, 4  ;;  %v6298_v31 = vld [vmem:[%s6380_s25 + $0xa8] sm:$0xff]   ;;  %v5426_v37 = vld [vmem:[%s6380_s25 + $0x84] sm:$0xe]  ;;  %v6299_v45 = vld [vmem:[%s6380_s25 + $0xb4] sm:$0xff]  }
 0x10f   : > { %v2417_v13 = vrot.slane %v2415_v18, 5  ;;  %v2425_v63 = vshrl.u32 %v6307_v19, 16  ;;  %v7734_v62 = vrot.slane %v2421_v38, 5  ;;  %v2431_v3 = vshll.u32 %v6308_v57, 16 }
 0x110   : > { %v2404_v30 = vor.u32 %v2403_v23, %v7721_v43  ;;  %5917 = vmatmul.mubr.msk.bf16.gmra.mrb[4].mxu0 %vm292_vm1, %v5453_v61  ;;  %v5441_v22 = vrot.slane %v5425_v56, 9  ;;  %v4502_v60 = vrot.slane %v7430_v46, 5  ;;  %v2352_v51 = vsel %vm6437_vm4, %v7703_v40, %v7676_v41  ;;  %v6309_v56 = vld [vmem:[%s6380_s25 + $0xa0] sm:$0xf] }
 0x111   : > { %v2418_v34 = vor.u32 %v2417_v13, %v2414_v39  ;;  %v2427_v5 = vrot.slane %v2425_v63, 4  ;;  %5920 = vmatprep.mubr.msk.bf16.mxu0 %vm292_vm1, %v5454_v15  ;;  %v2362_v2 = vsel %vm6437_vm4, %v2357_v33, %v7705_v12  ;;  %v2409_v61 = vrot.slane %v2407_v53, 5  ;;  %v5161_v15 = vld [vmem:[%s6380_s25 + $0x9c] sm:$0xf]  ;;  %v5164_v13 = vld [vmem:[%s6380_s25 + $0xa8] sm:$0xf] }
 0x112   : > { %v4505_v1 = vrot.slane %v7438_v32, 5  ;;  %v2395_v46 = vrot.slane %v2394_v59, 4  ;;  %v7760_v55 = vsel %vm6564_vm7, %v5441_v22, %v4502_v60  ;;  %v4504_v6 = vrot.slane %v4502_v60, 4 }
 0x113   : > { %v2428_v9 = vor.u32 %v2427_v5, %v7734_v62  ;;  %v2405_v25 = vrot.slane %v2404_v30, 4  ;;  %v5442_v18 = vrot.slane %v5426_v37, 9  ;;  %v4509_v41 = vrot.slane %v7446_v7, 5  ;;  %v5427_v37 = vld [vmem:[%s6380_s25 + $0x90] sm:$0xe] }
 0x114   : > { %v4512_v40 = vrot.slane %v7460_v54, 5  ;;  %v2419_v32 = vrot.slane %v2418_v34, 4  ;;  %v2433_v33 = vrot.slane %v2431_v3, 5  ;;  %v7768_v23 = vsel %vm6564_vm7, %v4504_v6, %v4505_v1  ;;  %v5428_v1 = vld [vmem:[%s6380_s25 + $0x9c] sm:$0xe] }
 0x115   : > { %5767 = vmatmul.mubr.msk.bf16.gmra.mrb[24].mxu1 %vm292_vm1, %v6298_v31  ;;  %v2429_v12 = vrot.slane %v2428_v9, 4  ;;  %v5458_v36 = vcombine.low %v7760_v55, %v7768_v23  ;;  %v7775_v7 = vsel %vm6564_vm7, %v5442_v18, %v4509_v41  ;;  %v4511_v54 = vrot.slane %v4509_v41, 4  ;;  %v6300_v31 = vld [vmem:[%s6380_s25 + $0xc0] sm:$0xff]  }
 0x116   : > { %5770 = vmatprep.mubr.msk.bf16.mxu1 %vm292_vm1, %v6299_v45  ;;  %v2436_v53 = vshrl.u32 %v5161_v15, 16  ;;  %v5182_v19 = vcombine.low %v2352_v51, %v2362_v2  ;;  %v2439_v38 = vshll.u32 %v5161_v15, 16  ;;  %v2445_v59 = vshll.u32 %v6309_v56, 16  ;;  %v6310_v51 = vld [vmem:[%s6380_s25 + $0xac] sm:$0xf] }
 0x117   : > { %v2449_v39 = vshrl.u32 %v6309_v56, 16  ;;  %v2400_v63 = vsel %vm6437_vm4, %v2395_v46, %v7721_v43  ;;  %v2410_v30 = vsel %vm6437_vm4, %v2405_v25, %v2409_v61  ;;  %v7786_v57 = vsel %vm6564_vm7, %v4511_v54, %v4512_v40  ;;  %v5167_v54 = vld [vmem:[%s6380_s25 + $0xb4] sm:$0xf] }
 0x118   : > { %v2438_v3 = vrot.slane %v2436_v53, 4  ;;  %5921 = vmatmul.mubr.msk.bf16.gmra.mrb[8].mxu0 %vm292_vm1, %v5455_v10  ;;  %v5459_v34 = vcombine.low %v7775_v7, %v7786_v57  ;;  %v2441_v43 = vrot.slane %v2439_v38, 5  ;;  %v7795_v5 = vrot.slane %v2445_v59, 5 }
 0x119   : > { %v2451_v22 = vrot.slane %v2449_v39, 4  ;;  %5924 = vmatprep.mubr.msk.bf16.mxu0 %vm292_vm1, %v5456_v26  ;;  %v2424_v48 = vsel %vm6437_vm4, %v2419_v32, %v7734_v62  ;;  %v2434_v4 = vsel %vm6437_vm4, %v2429_v12, %v2433_v33  ;;  %v2460_v10 = vshrl.u32 %v5164_v13, 16  ;;  %v6312_v26 = vld [vmem:[%s6380_s25 + $0xb0] sm:$0x1] }
 0x11a   : > { %v2463_v60 = vshll.u32 %v5164_v13, 16  ;;  %v2442_v45 = vor.u32 %v2441_v43, %v2438_v3  ;;  %v2469_v2 = vshll.u32 %v6310_v51, 16  ;;  %v2473_v61 = vshrl.u32 %v6310_v51, 16 }
 0x11b   : > { %v2452_v46 = vor.u32 %v2451_v22, %v7795_v5  ;;  %v2455_v8 = vshll.u32 %v6311_v0, 16  ;;  %v2479_v9 = vshll.u32 %v6312_v26, 16  ;;  %v5184_v62 = vcombine.low %v2400_v63, %v2410_v30 }
 0x11c   : > { %v7813_v55 = vcombine.low %v2424_v48, %v2434_v4  ;;  %v2462_v6 = vrot.slane %v2460_v10, 4  ;;  %v5443_v15 = vrot.slane %v5427_v37, 9  ;;  %v2465_v25 = vrot.slane %v2463_v60, 5  ;;  %v6314_v10 = vld [vmem:[%s6380_s25 + $0xbc] sm:$0x1] }
 0x11d   : > { %5771 = vmatmul.mubr.msk.bf16.gmra.mrb[28].mxu1 %vm292_vm1, %v6300_v31  ;;  %v4516_v18 = vrot.slane %v7467_v28, 5  ;;  %v4519_v41 = vrot.slane %v7477_v49, 5  ;;  %v5444_v40 = vrot.slane %v5428_v1, 9  ;;  %v2443_v32 = vrot.slane %v2442_v45, 4 }
 0x11e   : > { %5792 = vmatprep.mubr.msk.bf16.mxu1 %vm292_vm1, %v5182_v19  ;;  %v7818_v12 = vrot.slane %v2469_v2, 5  ;;  %v2475_v33 = vrot.slane %v2473_v61, 4  ;;  %v4523_v23 = vrot.slane %v7484_v20, 5  ;;  %v2453_v53 = vrot.slane %v2452_v46, 4  ;;  %v6315_v2 = vld [vmem:[%s6380_s25 + $0xc4] sm:$0xf] }
 0x11f   : > { %v2457_v38 = vrot.slane %v2455_v8, 5  ;;  %v7822_v56 = vrot.slane %v2479_v9, 5  ;;  %v4518_v19 = vrot.slane %v4516_v18, 4  ;;  %v4517_v28 = vsel %vm6564_vm7, %v5443_v15, %v4516_v18  ;;  %v5429_v46 = vld [vmem:[%s6380_s25 + $0xa8] sm:$0xe] }
 0x120   : > { %5925 = vmatmul.mubr.msk.bf16.gmra.mrb[12].mxu0 %vm292_vm1, %v5457_v44  ;;  %v7832_v49 = vsel %vm6564_vm7, %v5444_v40, %v4523_v23  ;;  %v4525_v20 = vrot.slane %v4523_v23, 4  ;;  %v4526_v59 = vrot.slane %v7496_v11, 5  ;;  %v2466_v39 = vor.u32 %v2465_v25, %v2462_v6  ;;  %v5170_v44 = vld [vmem:[%s6380_s25 + $0xc0] sm:$0xf]  ;;  %v6313_v11 = vld [vmem:[%s6380_s25 + $0xb8] sm:$0xf] }
 0x121   : > { %5928 = vmatprep.mubr.msk.bf16.mxu0 %vm292_vm1, %v5458_v36  ;;  %v4520_v13 = vsel %vm6564_vm7, %v4518_v19, %v4519_v41  ;;  %v2484_v52 = vshrl.u32 %v5167_v54, 16  ;;  %v2487_v17 = vshll.u32 %v5167_v54, 16  ;;  %v2448_v63 = vsel %vm6437_vm4, %v2443_v32, %v7795_v5 }
 0x122   : > { %v2476_v30 = vor.u32 %v2475_v33, %v7818_v12  ;;  %v7845_v3 = vsel %vm6564_vm7, %v4525_v20, %v4526_v59  ;;  %v2493_v36 = vshll.u32 %v6313_v11, 16  ;;  %v5460_v31 = vcombine.low %v4517_v28, %v4520_v13  ;;  %v5431_v20 = vld [vmem:[%s6380_s25 + $0xc0] sm:$0xe] }
 0x123   : > { %v5461_v43 = vcombine.low %v7832_v49, %v7845_v3  ;;  %v2486_v22 = vrot.slane %v2484_v52, 4  ;;  %v2489_v48 = vrot.slane %v2487_v17, 5  ;;  %v2497_v4 = vshrl.u32 %v6313_v11, 16  ;;  %v5432_v52 = vld [vmem:[%s6380_s25 + $0xcc] sm:$0xe] }
 0x124   : > { %v2495_v5 = vrot.slane %v2493_v36, 5  ;;  %v2503_v60 = vshll.u32 %v6314_v10, 16  ;;  %v2508_v37 = vshrl.u32 %v5170_v44, 16  ;;  %v2511_v51 = vshll.u32 %v5170_v44, 16 }
 0x125   : > { %5793 = vmatmul.mubr.msk.bf16.vlgmr.msra.gmra.mrb[16].mxu1 %vm292_vm1, %v7728_v35  ;;  %v2490_v45 = vor.u32 %v2489_v48, %v2486_v22  ;;  %v2517_v61 = vshll.u32 %v6315_v2, 16  ;;  %v2521_v1 = vshrl.u32 %v6315_v2, 16  ;;  %v2458_v0 = vsel %vm6437_vm4, %v2453_v53, %v2457_v38  ;;  %v6316_v53 = vld [vmem:[%s6380_s25 + $0xc8] sm:$0x1] }
 0x126   : > { %5796 = vmatprep.mubr.msk.bf16.mxu1 %vm292_vm1, %v5184_v62  ;;  %v2467_v8 = vrot.slane %v2466_v39, 4  ;;  %v2477_v26 = vrot.slane %v2476_v30, 4  ;;  %v2499_v35 = vrot.slane %v2497_v4, 4  ;;  %v2510_v6 = vrot.slane %v2508_v37, 4 }
 0x127   : > { %v2491_v9 = vrot.slane %v2490_v45, 4  ;;  %v2513_v15 = vrot.slane %v2511_v51, 5  ;;  %v2519_v25 = vrot.slane %v2517_v61, 5  ;;  %v2523_v18 = vrot.slane %v2521_v1, 4 }
 0x128   : > { %5929 = vmatmul.mubr.msk.bf16.gmra.mrb[16].mxu0 %vm292_vm1, %v5459_v34  ;;  %v2500_v62 = vor.u32 %v2499_v35, %v2495_v5  ;;  %v5445_v41 = vrot.slane %v5429_v46, 9  ;;  %v4530_v40 = vrot.slane %v7509_v27, 5  ;;  %v5186_v32 = vcombine.low %v2448_v63, %v2458_v0  ;;  %v5430_v34 = vld [vmem:[%s6380_s25 + $0xb4] sm:$0xe] }
 0x129   : > { %5932 = vmatprep.mubr.msk.bf16.mxu0 %vm292_vm1, %v5460_v31  ;;  %v2505_v33 = vrot.slane %v2503_v60, 5  ;;  %v4533_v23 = vrot.slane %v7514_v58, 5  ;;  %v2527_v38 = vshll.u32 %v6316_v53, 16  ;;  %v2472_v19 = vsel %vm6437_vm4, %v2467_v8, %v7818_v12 }
 0x12a   : > { %v2501_v54 = vrot.slane %v2500_v62, 4  ;;  %v4531_v7 = vsel %vm6564_vm7, %v5445_v41, %v4530_v40  ;;  %v4532_v57 = vrot.slane %v4530_v40, 4  ;;  %v2482_v27 = vsel %vm6437_vm4, %v2477_v26, %v7822_v56 }
 0x12b   : > { %v2496_v58 = vsel %vm6437_vm4, %v2491_v9, %v2495_v5  ;;  %v4537_v28 = vrot.slane %v7526_v16, 5  ;;  %v2514_v59 = vor.u32 %v2513_v15, %v2510_v6  ;;  %v2524_v39 = vor.u32 %v2523_v18, %v2519_v25 }
 0x12c   : > { %v4534_v13 = vsel %vm6564_vm7, %v4532_v57, %v4533_v23  ;;  %v4544_v12 = vrot.slane %v7544_v24, 5  ;;  %v2506_v56 = vsel %vm6437_vm4, %v2501_v54, %v2505_v33  ;;  %v5446_v44 = vrot.slane %v5430_v34, 9 }
 0x12d   : > { %5797 = vmatmul.mubr.msk.bf16.gmra.mrb[20].mxu1 %vm292_vm1, %v7813_v55  ;;  %v5462_v17 = vcombine.low %v4531_v7, %v4534_v13  ;;  %v4540_v16 = vrot.slane %v7531_v50, 5  ;;  %v5187_v63 = vcombine.low %v2472_v19, %v2482_v27  ;;  %v2529_v30 = vrot.slane %v2527_v38, 5 }
 0x12e   : > { %5800 = vmatprep.mubr.msk.bf16.mxu1 %vm292_vm1, %v5186_v32  ;;  %v4539_v55 = vrot.slane %v4537_v28, 4  ;;  %v5447_v11 = vrot.slane %v5431_v20, 9  ;;  %v4546_v36 = vrot.slane %v4544_v12, 4  ;;  %v4547_v31 = vrot.slane %v7547_v21, 5  ;;  %v7922_v32 = vld [vmem:[%s7999_s2] ss:$0 sm:$0xff] }
 0x12f   : > { %v5448_v22 = vrot.slane %v5432_v52, 9  ;;  %v4551_v24 = vrot.slane %v7560_v14, 5  ;;  %v5188_v48 = vcombine.low %v2496_v58, %v2506_v56  ;;  %v2515_v5 = vrot.slane %v2514_v59, 4 }
 0x130   : > { %5933 = vmatmul.mubr.msk.bf16.gmra.mrb[20].mxu0 %vm292_vm1, %v5461_v43  ;;  %v2525_v4 = vrot.slane %v2524_v39, 4  ;;  %v4554_v50 = vrot.slane %v7563_v29, 5  ;;  %v4538_v10 = vsel %vm6564_vm7, %v5446_v44, %v4537_v28  ;;  %v4541_v21 = vsel %vm6564_vm7, %v4539_v55, %v4540_v16 }
 0x131   : > { %5936 = vmatprep.mubr.msk.bf16.mxu0 %vm292_vm1, %v5462_v17  ;;  %v4552_v14 = vsel %vm6564_vm7, %v5448_v22, %v4551_v24  ;;  %v4553_v60 = vrot.slane %v4551_v24, 4  ;;  %v4545_v49 = vsel %vm6564_vm7, %v5447_v11, %v4544_v12  ;;  %v4548_v3 = vsel %vm6564_vm7, %v4546_v36, %v4547_v31 }
 0x132   : > { %v5463_v43 = vcombine.low %v4538_v10, %v4541_v21  ;;  %v2520_v45 = vsel %vm6437_vm4, %v2515_v5, %v2519_v25  ;;  %v2530_v51 = vsel %vm6437_vm4, %v2525_v4, %v2529_v30  ;;  %v5464_v2 = vcombine.low %v4545_v49, %v4548_v3 }
 0x133   : > { %v4555_v29 = vsel %vm6564_vm7, %v4553_v60, %v4554_v50  ;;  %v5189_v61 = vcombine.low %v2520_v45, %v2530_v51 }
 0x134   : > { %v5465_v37 = vcombine.low %v4552_v14, %v4555_v29 }
 0x135   : > { %5801 = vmatmul.mubr.msk.bf16.gmra.mrb[24].mxu1 %vm292_vm1, %v5187_v63 }
 0x136   : > { %5804 = vmatprep.mubr.msk.bf16.mxu1 %vm292_vm1, %v5188_v48 }
 0x138   : > { %5937 = vmatmul.mubr.msk.bf16.gmra.mrb[24].mxu0 %vm292_vm1, %v5463_v43 }
 0x139   : > { %5940 = vmatprep.mubr.msk.bf16.mxu0 %vm292_vm1, %v5464_v2 }
 0x13d   : > { %5805 = vmatmul.mubr.msk.bf16.gmra.mrb[28].mxu1 %vm292_vm1, %v5189_v61 }
 0x140   : > { %5941 = vmatmul.mubr.msk.bf16.gmra.mrb[28].mxu0 %vm292_vm1, %v5465_v37 }
 0x1b8   : > { %v5744_v47 = vpop.f32.mrb[0].mxu1 }
 0x1b9   : > { %v1940_v1 = vpop.f32.mrb[1].mxu1  ;;  %v5946_v33 = vadd.f32 %v5744_v47, %v7922_v32 }
 0x1ba   : > { %v5745_v46 = vpop.f32.mrb[2].mxu1  ;;  %v5948_v23 = vadd.f32 %v7922_v32, %v1940_v1 }
 0x1bb   : > { %v1943_v0 = vpop.f32.mrb[3].mxu1  ;;  %v5950_v53 = vadd.f32 %v5745_v46, %v7922_v32 }
 0x1bc   : > { %v5952_v57 = vadd.f32 %v7922_v32, %v1943_v0 }
 0x1c0   : > { %v5748_v8 = vpop.f32.mrb[4].mxu1 }
 0x1c1   : > { %v1956_v26 = vpop.f32.mrb[5].mxu1  ;;  %v5954_v20 = vadd.f32 %v5748_v8, %v7922_v32 }
 0x1c2   : > { %v5749_v35 = vpop.f32.mrb[6].mxu1  ;;  %v5956_v59 = vadd.f32 %v7922_v32, %v1956_v26 }
 0x1c3   : > { %v1959_v42 = vpop.f32.mrb[7].mxu1  ;;  %v5958_v13 = vadd.f32 %v5749_v35, %v7922_v32 }
 0x1c4   : > { %v5960_v56 = vadd.f32 %v7922_v32, %v1959_v42 }
 0x1c8   : > { %v5752_v9 = vpop.f32.mrb[8].mxu1 }
 0x1c9   : > { %v1972_v6 = vpop.f32.mrb[9].mxu1  ;;  %v5962_v55 = vadd.f32 %v5752_v9, %v7922_v32 }
 0x1ca   : > { %v5753_v15 = vpop.f32.mrb[10].mxu1  ;;  %v5964_v11 = vadd.f32 %v7922_v32, %v1972_v6 }
 0x1cb   : > { %v1975_v25 = vpop.f32.mrb[11].mxu1  ;;  %v5966_v31 = vadd.f32 %v5753_v15, %v7922_v32 }
 0x1cc   : > { %v5968_v48 = vadd.f32 %v7922_v32, %v1975_v25 }
 0x1d0   : > { %v5756_v62 = vpop.f32.mrb[12].mxu1 }
 0x1d1   : > { %v1988_v18 = vpop.f32.mrb[13].mxu1  ;;  %v5970_v14 = vadd.f32 %v5756_v62, %v7922_v32 }
 0x1d2   : > { %v5757_v41 = vpop.f32.mrb[14].mxu1  ;;  %v5972_v60 = vadd.f32 %v7922_v32, %v1988_v18 }
 0x1d3   : > { %v1991_v40 = vpop.f32.mrb[15].mxu1  ;;  %v5974_v3 = vadd.f32 %v5757_v41, %v7922_v32 }
 0x1d4   : > { %v5976_v37 = vadd.f32 %v7922_v32, %v1991_v40 }
 0x1db   : > { %v5914_v54 = vpop.f32.mrb[0].mxu0 }
 0x1dc   : > { %v5947_v38 = vadd.f32 %v5946_v33, %v5914_v54  ;;  %v4691_v7 = vpop.f32.mrb[1].mxu0 }
 0x1dd   : > { %v5949_v34 = vadd.f32 %v5948_v23, %v4691_v7  ;;  %v5915_v19 = vpop.f32.mrb[2].mxu0 }
 0x1de   : > { %4852 = vst [vmem:[%s7930_s18 + $0x10] sm:$0xff] %v5947_v38  ;;  %v5951_v27 = vadd.f32 %v5950_v53, %v5915_v19  ;;  %v4694_v58 = vpop.f32.mrb[3].mxu0 }
 0x1df   : > { %4850 = vst [vmem:[%s7930_s18] sm:$0xff] %v5949_v34  ;;  %v5953_v28 = vadd.f32 %v5952_v57, %v4694_v58 }
 0x1e0   : > { %4853 = vst [vmem:[%s7930_s18 + $0x18] sm:$0xff] %v5951_v27 }
 0x1e1   : > { %4851 = vst [vmem:[%s7930_s18 + $0x8] sm:$0xff] %v5953_v28 }
 0x1e3   : > { %v5918_v39 = vpop.f32.mrb[4].mxu0 }
 0x1e4   : > { %v5955_v12 = vadd.f32 %v5954_v20, %v5918_v39  ;;  %v4707_v52 = vpop.f32.mrb[5].mxu0 }
 0x1e5   : > { %v5957_v17 = vadd.f32 %v5956_v59, %v4707_v52  ;;  %v5919_v44 = vpop.f32.mrb[6].mxu0 }
 0x1e6   : > { %4856 = vst [vmem:[%s7930_s18 + $0x30] sm:$0xff] %v5955_v12  ;;  %v5959_v16 = vadd.f32 %v5958_v13, %v5919_v44  ;;  %v4710_v63 = vpop.f32.mrb[7].mxu0 }
 0x1e7   : > { %4854 = vst [vmem:[%s7930_s18 + $0x20] sm:$0xff] %v5957_v17  ;;  %v5961_v30 = vadd.f32 %v5960_v56, %v4710_v63 }
 0x1e8   : > { %4857 = vst [vmem:[%s7930_s18 + $0x38] sm:$0xff] %v5959_v16 }
 0x1e9   : > { %4855 = vst [vmem:[%s7930_s18 + $0x28] sm:$0xff] %v5961_v30 }
 0x1eb   : > { %v5922_v36 = vpop.f32.mrb[8].mxu0 }
 0x1ec   : > { %v5963_v22 = vadd.f32 %v5962_v55, %v5922_v36  ;;  %v4723_v24 = vpop.f32.mrb[9].mxu0 }
 0x1ed   : > { %v5965_v5 = vadd.f32 %v5964_v11, %v4723_v24  ;;  %v5923_v4 = vpop.f32.mrb[10].mxu0 }
 0x1ee   : > { %4860 = vst [vmem:[%s7930_s18 + $0x50] sm:$0xff] %v5963_v22  ;;  %v5967_v50 = vadd.f32 %v5966_v31, %v5923_v4  ;;  %v4726_v10 = vpop.f32.mrb[11].mxu0 }
 0x1ef   : > { %4858 = vst [vmem:[%s7930_s18 + $0x40] sm:$0xff] %v5965_v5  ;;  %v5969_v21 = vadd.f32 %v5968_v48, %v4726_v10 }
 0x1f0   : > { %4861 = vst [vmem:[%s7930_s18 + $0x58] sm:$0xff] %v5967_v50 }
 0x1f1   : > { %4859 = vst [vmem:[%s7930_s18 + $0x48] sm:$0xff] %v5969_v21 }
 0x1f3   : > { %v5926_v49 = vpop.f32.mrb[12].mxu0 }
 0x1f4   : > { %v5971_v29 = vadd.f32 %v5970_v14, %v5926_v49  ;;  %v4739_v43 = vpop.f32.mrb[13].mxu0 }
 0x1f5   : > { %v5973_v45 = vadd.f32 %v5972_v60, %v4739_v43  ;;  %v5927_v51 = vpop.f32.mrb[14].mxu0 }
 0x1f6   : > { %4864 = vst [vmem:[%s7930_s18 + $0x70] sm:$0xff] %v5971_v29  ;;  %v5975_v2 = vadd.f32 %v5974_v3, %v5927_v51  ;;  %v4742_v61 = vpop.f32.mrb[15].mxu0 }
 0x1f7   : > { %4862 = vst [vmem:[%s7930_s18 + $0x60] sm:$0xff] %v5973_v45  ;;  %v5977_v1 = vadd.f32 %v5976_v37, %v4742_v61 }
 0x1f8   : > { %v5794_v47 = vpop.f32.mrb[16].mxu1  ;;  %4865 = vst [vmem:[%s7930_s18 + $0x78] sm:$0xff] %v5975_v2 }
 0x1f9   : > { %v2730_v46 = vpop.f32.mrb[17].mxu1  ;;  %4863 = vst [vmem:[%s7930_s18 + $0x68] sm:$0xff] %v5977_v1  ;;  %v5978_v8 = vadd.f32 %v5794_v47, %v7922_v32 }
 0x1fa   : > { %v5795_v0 = vpop.f32.mrb[18].mxu1  ;;  %v5980_v35 = vadd.f32 %v7922_v32, %v2730_v46 }
 0x1fb   : > { %v2733_v26 = vpop.f32.mrb[19].mxu1  ;;  %v5930_v42 = vpop.f32.mrb[16].mxu0  ;;  %v5982_v9 = vadd.f32 %v5795_v0, %v7922_v32 }
 0x1fc   : > { %v5979_v6 = vadd.f32 %v5978_v8, %v5930_v42  ;;  %v4755_v15 = vpop.f32.mrb[17].mxu0  ;;  %v5984_v25 = vadd.f32 %v7922_v32, %v2733_v26 }
 0x1fd   : > { %v5981_v62 = vadd.f32 %v5980_v35, %v4755_v15  ;;  %v5931_v18 = vpop.f32.mrb[18].mxu0 }
 0x1fe   : > { %4868 = vst [vmem:[%s7930_s18 + $0x90] sm:$0xff] %v5979_v6  ;;  %v5983_v41 = vadd.f32 %v5982_v9, %v5931_v18  ;;  %v4758_v40 = vpop.f32.mrb[19].mxu0 }
 0x1ff   : > { %4866 = vst [vmem:[%s7930_s18 + $0x80] sm:$0xff] %v5981_v62  ;;  %v5985_v23 = vadd.f32 %v5984_v25, %v4758_v40 }
 0x200   : > { %v5798_v33 = vpop.f32.mrb[20].mxu1  ;;  %4869 = vst [vmem:[%s7930_s18 + $0x98] sm:$0xff] %v5983_v41 }
 0x201   : > { %v2746_v54 = vpop.f32.mrb[21].mxu1  ;;  %4867 = vst [vmem:[%s7930_s18 + $0x88] sm:$0xff] %v5985_v23  ;;  %v5986_v38 = vadd.f32 %v5798_v33, %v7922_v32 }
 0x202   : > { %v5799_v53 = vpop.f32.mrb[22].mxu1  ;;  %v5988_v57 = vadd.f32 %v7922_v32, %v2746_v54 }
 0x203   : > { %v2749_v7 = vpop.f32.mrb[23].mxu1  ;;  %v5934_v34 = vpop.f32.mrb[20].mxu0  ;;  %v5990_v19 = vadd.f32 %v5799_v53, %v7922_v32 }
 0x204   : > { %v5987_v27 = vadd.f32 %v5986_v38, %v5934_v34  ;;  %v4771_v58 = vpop.f32.mrb[21].mxu0  ;;  %v5992_v28 = vadd.f32 %v7922_v32, %v2749_v7 }
 0x205   : > { %v5989_v20 = vadd.f32 %v5988_v57, %v4771_v58  ;;  %v5935_v59 = vpop.f32.mrb[22].mxu0 }
 0x206   : > { %4872 = vst [vmem:[%s7930_s18 + $0xb0] sm:$0xff] %v5987_v27  ;;  %v5991_v39 = vadd.f32 %v5990_v19, %v5935_v59  ;;  %v4774_v13 = vpop.f32.mrb[23].mxu0 }
 0x207   : > { %4870 = vst [vmem:[%s7930_s18 + $0xa0] sm:$0xff] %v5989_v20  ;;  %v5993_v52 = vadd.f32 %v5992_v28, %v4774_v13 }
 0x208   : > { %v5802_v12 = vpop.f32.mrb[24].mxu1  ;;  %4873 = vst [vmem:[%s7930_s18 + $0xb8] sm:$0xff] %v5991_v39 }
 0x209   : > { %v2762_v56 = vpop.f32.mrb[25].mxu1  ;;  %4871 = vst [vmem:[%s7930_s18 + $0xa8] sm:$0xff] %v5993_v52  ;;  %v5994_v44 = vadd.f32 %v5802_v12, %v7922_v32 }
 0x20a   : > { %v5803_v17 = vpop.f32.mrb[26].mxu1  ;;  %v5996_v63 = vadd.f32 %v7922_v32, %v2762_v56 }
 0x20b   : > { %v2765_v16 = vpop.f32.mrb[27].mxu1  ;;  %v5938_v30 = vpop.f32.mrb[24].mxu0  ;;  %v5998_v55 = vadd.f32 %v5803_v17, %v7922_v32 }
 0x20c   : > { %v5995_v11 = vadd.f32 %v5994_v44, %v5938_v30  ;;  %v4787_v36 = vpop.f32.mrb[25].mxu0  ;;  %v6000_v31 = vadd.f32 %v7922_v32, %v2765_v16 }
 0x20d   : > { %v5997_v22 = vadd.f32 %v5996_v63, %v4787_v36  ;;  %v5939_v24 = vpop.f32.mrb[26].mxu0 }
 0x20e   : > { %4876 = vst [vmem:[%s7930_s18 + $0xd0] sm:$0xff] %v5995_v11  ;;  %v5999_v48 = vadd.f32 %v5998_v55, %v5939_v24  ;;  %v4790_v5 = vpop.f32.mrb[27].mxu0 }
 0x20f   : > { %4874 = vst [vmem:[%s7930_s18 + $0xc0] sm:$0xff] %v5997_v22  ;;  %v6001_v50 = vadd.f32 %v6000_v31, %v4790_v5 }
 0x210   : > { %v5806_v4 = vpop.f32.mrb[28].mxu1  ;;  %4877 = vst [vmem:[%s7930_s18 + $0xd8] sm:$0xff] %v5999_v48 }
 0x211   : > { %v2778_v10 = vpop.f32.mrb[29].mxu1  ;;  %4875 = vst [vmem:[%s7930_s18 + $0xc8] sm:$0xff] %v6001_v50  ;;  %v6002_v14 = vadd.f32 %v5806_v4, %v7922_v32 }
 0x212   : > { %v5807_v21 = vpop.f32.mrb[30].mxu1  ;;  %v6004_v49 = vadd.f32 %v7922_v32, %v2778_v10 }
 0x213   : > { %v2781_v60 = vpop.f32.mrb[31].mxu1  ;;  %v5942_v3 = vpop.f32.mrb[28].mxu0  ;;  %v6006_v29 = vadd.f32 %v5807_v21, %v7922_v32 }
 0x214   : > { %v6003_v43 = vadd.f32 %v6002_v14, %v5942_v3  ;;  %v4803_v37 = vpop.f32.mrb[29].mxu0  ;;  %v6008_v45 = vadd.f32 %v7922_v32, %v2781_v60 }
 0x215   : > { %v6005_v51 = vadd.f32 %v6004_v49, %v4803_v37  ;;  %v5943_v2 = vpop.f32.mrb[30].mxu0 }
 0x216   : > { %4880 = vst [vmem:[%s7930_s18 + $0xf0] sm:$0xff] %v6003_v43  ;;  %v6007_v61 = vadd.f32 %v6006_v29, %v5943_v2  ;;  %v4806_v47 = vpop.f32.mrb[31].mxu0 }
 0x217   : > { %4878 = vst [vmem:[%s7930_s18 + $0xe0] sm:$0xff] %v6005_v51  ;;  %v6009_v1 = vadd.f32 %v6008_v45, %v4806_v47 }
 0x218   : > { %4881 = vst [vmem:[%s7930_s18 + $0xf8] sm:$0xff] %v6007_v61 }
 0x219   : > { %4879 = vst [vmem:[%s7930_s18 + $0xe8] sm:$0xff] %v6009_v1 }
 0x21a PF: > { %s13_s12 = sadd.s32 1, %s6323_s12  }
 0x21b   : > { %p10_p4 = scmp.ge.s32.totalorder %s13_s12, 4  }
 0x21d   :  { %12 = sbr.rel (!%p10_p4) target bundleno = 1 (0x1), region = 72 }

</bundles_post_ra>
